<compile_context>
chip_gen: v7x
topology: tpu7x:2x2x1
jax: 0.10.0
libtpu: 0.0.40
codegen_flags: <defaults>
</compile_context>

<pallas_src>
import functools

import jax
import jax.numpy as jnp
import numpy as np
from jax.experimental import pallas as pl
from jax.experimental.pallas import tpu as pltpu


# ----------------------------- Pallas kernel --------------------------------

def _build_patches(xin, masks_ref, patch_ref, W):
    """Stream the 9 shifted+masked taps of xin into patch_ref rows [0, 9*Cin).

    xin:       (Cin, H*W)  lane-dense activations, flat spatial index i = y*W + x
    masks_ref: (9, H*W)    0/1 border-validity mask per tap (emulates padding=1)
    patch_ref: VMEM scratch, rows [t*Cin:(t+1)*Cin) hold tap t (tap-major, matches
               the (Cout, 9*Cin) weight column order)
    """
    cin, hw = xin.shape
    for dy in range(3):
        for dx in range(3):
            t = dy * 3 + dx
            offset = (dy - 1) * W + (dx - 1)          # flat-index shift of this tap
            if offset == 0:
                tap = xin                             # centre tap: mask is all ones
            else:
                # shifted[:, i] = xin[:, (i + offset) % hw]; the circular wrap and
                # cross-row contamination are zeroed by the per-tap border mask.
                shifted = pltpu.roll(xin, shift=(-offset) % hw, axis=1)
                tap = shifted * masks_ref[t:t + 1, :]
            patch_ref[t * cin:(t + 1) * cin, :] = tap


def _conv3x3_bn_relu(xin, wmat, scale, bias, masks_ref, patch_ref, W):
    """3x3 conv (padding=1) + folded BN affine + ReLU, lane-dense.

    xin:   (Cin, H*W)     activations
    wmat:  (Cout, 9*Cin)  weights, tap-major ((dy*3+dx)*Cin + cin)
    scale: (Cout, 1)      gamma / sqrt(var + eps)
    bias:  (Cout, 1)      beta + scale * (conv_bias - running_mean)
    """
    cin = xin.shape[0]
    _build_patches(xin, masks_ref, patch_ref, W)
    y = jnp.dot(wmat, patch_ref[:9 * cin, :],           # single im2col matmul
                preferred_element_type=jnp.float32)
    y = y * scale + bias
    return jnp.maximum(y, 0.0)


def up_triple_conv_kernel(x2_ref, x1_ref, bt_ref, masks_ref,
                          w1_ref, s1_ref, b1_ref,
                          w2_ref, s2_ref, b2_ref,
                          w3_ref, s3_ref, b3_ref,
                          o_ref, patch_ref, *, W):
    """Whole Up.forward for one batch element, fully VMEM-resident.

    x2_ref:    (1, C2, H*W)   skip connection (flattened spatial)
    x1_ref:    (1, C1, h*w)   low-res feature (flattened spatial)
    bt_ref:    (h*w, H*W)     bilinear-upsample (+pad) interpolation matrix
    masks_ref: (9, H*W)       3x3-tap border masks
    o_ref:     (1, Cout, H*W)
    patch_ref: (9*(C1+C2), H*W) VMEM scratch for im2col patches (reused per conv)
    """
    # bilinear x2 upsample (align_corners=True) + zero pad, as one MXU matmul
    x1_up = jnp.dot(x1_ref[0], bt_ref[...], preferred_element_type=jnp.float32)

    # channel concat [x2, upsampled x1]; keeping the concat keeps the per-tap
    # rolls/muls operating on full 8-sublane vregs (cheaper than two half slabs)
    x = jnp.concatenate([x2_ref[0], x1_up], axis=0)

    # TripleConv: intermediates never touch HBM
    x = _conv3x3_bn_relu(x, w1_ref[...], s1_ref[...], b1_ref[...],
                         masks_ref, patch_ref, W)
    x = _conv3x3_bn_relu(x, w2_ref[...], s2_ref[...], b2_ref[...],
                         masks_ref, patch_ref, W)
    x = _conv3x3_bn_relu(x, w3_ref[...], s3_ref[...], b3_ref[...],
                         masks_ref, patch_ref, W)

    o_ref[0] = x.astype(o_ref.dtype)


# ------------------------------- wrapper (JAX) -------------------------------

def upsample_matrix(n_in, n_out):
    """Interpolation matrix A (n_out, n_in) for bilinear, align_corners=True."""
    if n_in == 1:
        return jnp.ones((n_out, 1), jnp.float32)
    src = jnp.arange(n_out, dtype=jnp.float32) * (n_in - 1) / (n_out - 1)
    idx = jnp.arange(n_in, dtype=jnp.float32)
    return jnp.maximum(0.0, 1.0 - jnp.abs(src[:, None] - idx[None, :]))


def _const_spec(shape):
    """BlockSpec for an operand whose block index is constant over the grid.

    Requests single buffering (the default 2nd pipeline buffer is pure waste
    for a constant-index operand). Falls back to a plain BlockSpec if this
    JAX version does not accept pipeline_mode.
    """
    nd = len(shape)
    idx = lambda n: (0,) * nd
    try:
        return pl.BlockSpec(shape, idx, pipeline_mode=pl.Buffered(1))
    except (TypeError, AttributeError):
        return pl.BlockSpec(shape, idx)


@jax.jit
def up_forward(x1_nchw, x2_nchw, params):
    """Up(x1, x2): upsample + pad + concat + TripleConv fused into one kernel."""
    N, C1, h, w = x1_nchw.shape
    _, C2, H, W = x2_nchw.shape
    HW = H * W
    assert HW % 128 == 0, "lane-dense layout requires H*W to be a multiple of 128"

    # Bilinear x2 upsample + F.pad folded into one matrix: padded rows of
    # Ah/Aw are zero, so the in-kernel matmul emits the zero border directly.
    dY, dX = H - 2 * h, W - 2 * w
    assert dY >= 0 and dX >= 0, "negative pad (crop) is not supported"
    Ah = jnp.pad(upsample_matrix(h, 2 * h), ((dY // 2, dY - dY // 2), (0, 0)))
    Aw = jnp.pad(upsample_matrix(w, 2 * w), ((dX // 2, dX - dX // 2), (0, 0)))
    BT = jnp.einsum('yh,xw->hwyx', Ah, Aw).reshape(h * w, HW)        # (h*w, H*W)

    # Per-tap validity masks on the flattened spatial index (emulates padding=1).
    yy, xx = jnp.meshgrid(jnp.arange(H), jnp.arange(W), indexing='ij')
    masks = []
    for dy in range(3):
        for dx in range(3):
            ys, xs = yy + dy - 1, xx + dx - 1
            ok = (ys >= 0) & (ys < H) & (xs >= 0) & (xs < W)
            masks.append(ok.astype(jnp.float32).reshape(HW))
    masks = jnp.stack(masks)                                         # (9, H*W)

    # Flattened-spatial activations; reshapes of contiguous NCHW are free.
    x1_flat = x1_nchw.reshape(N, C1, h * w).astype(jnp.float32)
    x2_flat = x2_nchw.reshape(N, C2, HW).astype(jnp.float32)

    # Fold HWIO conv weights to (Cout, 9*Cin) (tap-major), BN scale/bias to (Cout, 1).
    kargs = []
    for (wq, s, b) in params:
        cout = wq.shape[-1]
        kargs += [jnp.transpose(wq, (3, 0, 1, 2)).reshape(cout, -1),
                  s.reshape(cout, 1).astype(jnp.float32),
                  b.reshape(cout, 1).astype(jnp.float32)]
    Cout = params[-1][0].shape[-1]

    in_specs = [
        pl.BlockSpec((1, C2, HW), lambda n: (n, 0, 0)),
        pl.BlockSpec((1, C1, h * w), lambda n: (n, 0, 0)),
        _const_spec(BT.shape),
        _const_spec(masks.shape),
    ] + [_const_spec(a.shape) for a in kargs]

    out = pl.pallas_call(
        functools.partial(up_triple_conv_kernel, W=W),
        out_shape=jax.ShapeDtypeStruct((N, Cout, HW), jnp.float32),
        grid=(N,),
        in_specs=in_specs,
        out_specs=pl.BlockSpec((1, Cout, HW), lambda n: (n, 0, 0)),
        scratch_shapes=[pltpu.VMEM((9 * (C1 + C2), HW), jnp.float32)],
        compiler_params=pltpu.CompilerParams(
            dimension_semantics=("parallel",)),
    )(x2_flat, x1_flat, BT, masks, *kargs)

    return out.reshape(N, Cout, H, W)          # already NCHW, no transpose


# --------------------------- params & reference ------------------------------

def make_conv_bn_params(key, cin, cout):
    k1, k2, k3, k4, k5, k6 = jax.random.split(key, 6)
    w = jax.random.normal(k1, (3, 3, cin, cout), jnp.float32) * 0.1     # HWIO
    b = jax.random.normal(k2, (cout,), jnp.float32) * 0.1               # conv bias
    gamma = 1.0 + 0.1 * jax.random.normal(k3, (cout,), jnp.float32)
    beta = 0.1 * jax.random.normal(k4, (cout,), jnp.float32)
    mean = 0.1 * jax.random.normal(k5, (cout,), jnp.float32)
    var = jax.random.uniform(k6, (cout,), jnp.float32, minval=0.5, maxval=1.5)
    eps = 1e-5
    scale = gamma / jnp.sqrt(var + eps)
    bias = beta + scale * (b - mean)
    return w, scale, bias


def ref_conv_bn_relu(x, w, s, b):
    y = jax.lax.conv_general_dilated(
        x, w, window_strides=(1, 1), padding='SAME',
        dimension_numbers=('NHWC', 'HWIO', 'NHWC'))
    return jnp.maximum(y * s.reshape(1, 1, 1, -1) + b.reshape(1, 1, 1, -1), 0.0)


# --------------------------------- main --------------------------------------

if __name__ == "__main__":
    key = jax.random.PRNGKey(0)
    k_x1, k_x2, k_p1, k_p2, k_p3 = jax.random.split(key, 5)

    # Up(in_channels=4, out_channels=4, bilinear=True)
    C_in, C_out = 4, 4
    x1 = jax.random.normal(k_x1, (2, C_in, 16, 16), jnp.float32)   # low-res feature
    x2 = jax.random.normal(k_x2, (2, C_in, 32, 32), jnp.float32)   # skip connection

    # TripleConv(2*C_in -> C_out, mid=C_in): 8->4, 4->4, 4->4
    params = [
        make_conv_bn_params(k_p1, 2 * C_in, C_in),
        make_conv_bn_params(k_p2, C_in, C_out),
        make_conv_bn_params(k_p3, C_in, C_out),
    ]

    out = jax.block_until_ready(up_forward(x1, x2, params))

    # silent correctness check against a pure-XLA reference path
    Ah = upsample_matrix(16, 32)
    Aw = upsample_matrix(16, 32)
    x1_up = jnp.einsum('nchw,Hh,Ww->ncHW', x1, Ah, Aw)
    xr = jnp.transpose(jnp.concatenate([x2, x1_up], axis=1), (0, 2, 3, 1))
    for (wq, s, b) in params:
        xr = ref_conv_bn_relu(xr, wq, s, b)
    ref = jnp.transpose(xr, (0, 3, 1, 2))
    np.testing.assert_allclose(np.asarray(out), np.asarray(ref),
                               rtol=2e-4, atol=2e-4)

    print("KERNEL_OK")
</pallas_src>

<mosaic_0001>
module attributes {stable_mosaic.version = 11 : i64} {
  func.func @up_triple_conv_kernel(%arg0: i32, %arg1: memref<1x4x1024xf32, #tpu.memory_space<vmem>>, %arg2: memref<1x4x256xf32, #tpu.memory_space<vmem>>, %arg3: memref<256x1024xf32, #tpu.memory_space<vmem>>, %arg4: memref<9x1024xf32, #tpu.memory_space<vmem>>, %arg5: memref<4x72xf32, #tpu.memory_space<vmem>>, %arg6: memref<4x1xf32, #tpu.memory_space<vmem>>, %arg7: memref<4x1xf32, #tpu.memory_space<vmem>>, %arg8: memref<4x36xf32, #tpu.memory_space<vmem>>, %arg9: memref<4x1xf32, #tpu.memory_space<vmem>>, %arg10: memref<4x1xf32, #tpu.memory_space<vmem>>, %arg11: memref<4x36xf32, #tpu.memory_space<vmem>>, %arg12: memref<4x1xf32, #tpu.memory_space<vmem>>, %arg13: memref<4x1xf32, #tpu.memory_space<vmem>>, %arg14: memref<1x4x1024xf32, #tpu.memory_space<vmem>>, %arg15: memref<72x1024xf32, #tpu.memory_space<vmem>>) attributes {dimension_semantics = [#tpu.dimension_semantics<parallel>], iteration_bounds = array<i64: 2>, scalar_prefetch = 0 : i64, scratch_operands = 1 : i64, tpu.core_type = #tpu.core_type<tc>, window_params = [{transform_indices = @transform_0, window_bounds = array<i64: 1, 4, 1024>}, {transform_indices = @transform_1, window_bounds = array<i64: 1, 4, 256>}, {pipeline_mode = #tpu.pipeline_mode<synchronous>, transform_indices = @transform_2, window_bounds = array<i64: 256, 1024>}, {pipeline_mode = #tpu.pipeline_mode<synchronous>, transform_indices = @transform_3, window_bounds = array<i64: 9, 1024>}, {pipeline_mode = #tpu.pipeline_mode<synchronous>, transform_indices = @transform_4, window_bounds = array<i64: 4, 72>}, {pipeline_mode = #tpu.pipeline_mode<synchronous>, transform_indices = @transform_5, window_bounds = array<i64: 4, 1>}, {pipeline_mode = #tpu.pipeline_mode<synchronous>, transform_indices = @transform_6, window_bounds = array<i64: 4, 1>}, {pipeline_mode = #tpu.pipeline_mode<synchronous>, transform_indices = @transform_7, window_bounds = array<i64: 4, 36>}, {pipeline_mode = #tpu.pipeline_mode<synchronous>, transform_indices = @transform_8, window_bounds = array<i64: 4, 1>}, {pipeline_mode = #tpu.pipeline_mode<synchronous>, transform_indices = @transform_9, window_bounds = array<i64: 4, 1>}, {pipeline_mode = #tpu.pipeline_mode<synchronous>, transform_indices = @transform_10, window_bounds = array<i64: 4, 36>}, {pipeline_mode = #tpu.pipeline_mode<synchronous>, transform_indices = @transform_11, window_bounds = array<i64: 4, 1>}, {pipeline_mode = #tpu.pipeline_mode<synchronous>, transform_indices = @transform_12, window_bounds = array<i64: 4, 1>}, {transform_indices = @transform_13, window_bounds = array<i64: 1, 4, 1024>}]} {
    %c0 = arith.constant 0 : index
    %c0_0 = arith.constant 0 : index
    %c0_1 = arith.constant 0 : index
    %0 = vector.load %arg2[%c0, %c0_0, %c0_1] : memref<1x4x256xf32, #tpu.memory_space<vmem>>, vector<1x4x256xf32>
    %1 = vector.shape_cast %0 : vector<1x4x256xf32> to vector<4x256xf32>
    %c0_2 = arith.constant 0 : index
    %c0_3 = arith.constant 0 : index
    %2 = vector.load %arg3[%c0_2, %c0_3] : memref<256x1024xf32, #tpu.memory_space<vmem>>, vector<256x1024xf32>
    %cst = arith.constant dense<0.000000e+00> : vector<4x1024xf32>
    %3 = tpu.matmul %1, %2, %cst {dimension_numbers = #tpu.dot_dimension_numbers<[1], [0], [0], [1], [0, 0, 1, 1], [], []>} : vector<4x256xf32>, vector<256x1024xf32>, vector<4x1024xf32> -> vector<4x1024xf32>
    %c0_4 = arith.constant 0 : index
    %c0_5 = arith.constant 0 : index
    %c0_6 = arith.constant 0 : index
    %4 = vector.load %arg1[%c0_4, %c0_5, %c0_6] : memref<1x4x1024xf32, #tpu.memory_space<vmem>>, vector<1x4x1024xf32>
    %5 = vector.shape_cast %4 : vector<1x4x1024xf32> to vector<4x1024xf32>
    %6 = tpu.concatenate %5, %3 in 0 : vector<4x1024xf32>, vector<4x1024xf32> -> vector<8x1024xf32>
    %c0_7 = arith.constant 0 : index
    %c0_8 = arith.constant 0 : index
    %7 = vector.load %arg5[%c0_7, %c0_8] : memref<4x72xf32, #tpu.memory_space<vmem>>, vector<4x72xf32>
    %c0_9 = arith.constant 0 : index
    %c0_10 = arith.constant 0 : index
    %8 = vector.load %arg6[%c0_9, %c0_10] : memref<4x1xf32, #tpu.memory_space<vmem>>, vector<4x1xf32>
    %c0_11 = arith.constant 0 : index
    %c0_12 = arith.constant 0 : index
    %9 = vector.load %arg7[%c0_11, %c0_12] : memref<4x1xf32, #tpu.memory_space<vmem>>, vector<4x1xf32>
    %c33_i32 = arith.constant 33 : i32
    %10 = tpu.dynamic_rotate %6 by %c33_i32 dim 1 : vector<8x1024xf32>, i32 -> vector<8x1024xf32>
    %c0_13 = arith.constant 0 : index
    %c0_14 = arith.constant 0 : index
    %11 = vector.load %arg4[%c0_13, %c0_14] : memref<9x1024xf32, #tpu.memory_space<vmem>>, vector<1x1024xf32>
    %12 = vector.broadcast %11 : vector<1x1024xf32> to vector<8x1024xf32>
    %13 = arith.mulf %10, %12 : vector<8x1024xf32>
    %c0_15 = arith.constant 0 : index
    %c0_16 = arith.constant 0 : index
    %14 = vector.load %arg15[%c0_15, %c0_16] : memref<72x1024xf32, #tpu.memory_space<vmem>>, vector<8x1024xf32>
    tpu.vector_store %arg15[%c0_15, %c0_16], %13 {strides = array<i32>} : memref<72x1024xf32, #tpu.memory_space<vmem>>, vector<8x1024xf32>,
    %c32_i32 = arith.constant 32 : i32
    %15 = tpu.dynamic_rotate %6 by %c32_i32 dim 1 : vector<8x1024xf32>, i32 -> vector<8x1024xf32>
    %c1 = arith.constant 1 : index
    %c0_17 = arith.constant 0 : index
    %16 = vector.load %arg4[%c1, %c0_17] : memref<9x1024xf32, #tpu.memory_space<vmem>>, vector<1x1024xf32>
    %17 = vector.broadcast %16 : vector<1x1024xf32> to vector<8x1024xf32>
    %18 = arith.mulf %15, %17 : vector<8x1024xf32>
    %c8 = arith.constant 8 : index
    %c0_18 = arith.constant 0 : index
    %19 = vector.load %arg15[%c8, %c0_18] : memref<72x1024xf32, #tpu.memory_space<vmem>>, vector<8x1024xf32>
    tpu.vector_store %arg15[%c8, %c0_18], %18 {strides = array<i32>} : memref<72x1024xf32, #tpu.memory_space<vmem>>, vector<8x1024xf32>,
    %c31_i32 = arith.constant 31 : i32
    %20 = tpu.dynamic_rotate %6 by %c31_i32 dim 1 : vector<8x1024xf32>, i32 -> vector<8x1024xf32>
    %c2 = arith.constant 2 : index
    %c0_19 = arith.constant 0 : index
    %21 = vector.load %arg4[%c2, %c0_19] : memref<9x1024xf32, #tpu.memory_space<vmem>>, vector<1x1024xf32>
    %22 = vector.broadcast %21 : vector<1x1024xf32> to vector<8x1024xf32>
    %23 = arith.mulf %20, %22 : vector<8x1024xf32>
    %c16 = arith.constant 16 : index
    %c0_20 = arith.constant 0 : index
    %24 = vector.load %arg15[%c16, %c0_20] : memref<72x1024xf32, #tpu.memory_space<vmem>>, vector<8x1024xf32>
    tpu.vector_store %arg15[%c16, %c0_20], %23 {strides = array<i32>} : memref<72x1024xf32, #tpu.memory_space<vmem>>, vector<8x1024xf32>,
    %c1_i32 = arith.constant 1 : i32
    %25 = tpu.dynamic_rotate %6 by %c1_i32 dim 1 : vector<8x1024xf32>, i32 -> vector<8x1024xf32>
    %c3 = arith.constant 3 : index
    %c0_21 = arith.constant 0 : index
    %26 = vector.load %arg4[%c3, %c0_21] : memref<9x1024xf32, #tpu.memory_space<vmem>>, vector<1x1024xf32>
    %27 = vector.broadcast %26 : vector<1x1024xf32> to vector<8x1024xf32>
    %28 = arith.mulf %25, %27 : vector<8x1024xf32>
    %c24 = arith.constant 24 : index
    %c0_22 = arith.constant 0 : index
    %29 = vector.load %arg15[%c24, %c0_22] : memref<72x1024xf32, #tpu.memory_space<vmem>>, vector<8x1024xf32>
    tpu.vector_store %arg15[%c24, %c0_22], %28 {strides = array<i32>} : memref<72x1024xf32, #tpu.memory_space<vmem>>, vector<8x1024xf32>,
    %c32 = arith.constant 32 : index
    %c0_23 = arith.constant 0 : index
    %30 = vector.load %arg15[%c32, %c0_23] : memref<72x1024xf32, #tpu.memory_space<vmem>>, vector<8x1024xf32>
    tpu.vector_store %arg15[%c32, %c0_23], %6 {strides = array<i32>} : memref<72x1024xf32, #tpu.memory_space<vmem>>, vector<8x1024xf32>,
    %c1023_i32 = arith.constant 1023 : i32
    %31 = tpu.dynamic_rotate %6 by %c1023_i32 dim 1 : vector<8x1024xf32>, i32 -> vector<8x1024xf32>
    %c5 = arith.constant 5 : index
    %c0_24 = arith.constant 0 : index
    %32 = vector.load %arg4[%c5, %c0_24] : memref<9x1024xf32, #tpu.memory_space<vmem>>, vector<1x1024xf32>
    %33 = vector.broadcast %32 : vector<1x1024xf32> to vector<8x1024xf32>
    %34 = arith.mulf %31, %33 : vector<8x1024xf32>
    %c40 = arith.constant 40 : index
    %c0_25 = arith.constant 0 : index
    %35 = vector.load %arg15[%c40, %c0_25] : memref<72x1024xf32, #tpu.memory_space<vmem>>, vector<8x1024xf32>
    tpu.vector_store %arg15[%c40, %c0_25], %34 {strides = array<i32>} : memref<72x1024xf32, #tpu.memory_space<vmem>>, vector<8x1024xf32>,
    %c993_i32 = arith.constant 993 : i32
    %36 = tpu.dynamic_rotate %6 by %c993_i32 dim 1 : vector<8x1024xf32>, i32 -> vector<8x1024xf32>
    %c6 = arith.constant 6 : index
    %c0_26 = arith.constant 0 : index
    %37 = vector.load %arg4[%c6, %c0_26] : memref<9x1024xf32, #tpu.memory_space<vmem>>, vector<1x1024xf32>
    %38 = vector.broadcast %37 : vector<1x1024xf32> to vector<8x1024xf32>
    %39 = arith.mulf %36, %38 : vector<8x1024xf32>
    %c48 = arith.constant 48 : index
    %c0_27 = arith.constant 0 : index
    %40 = vector.load %arg15[%c48, %c0_27] : memref<72x1024xf32, #tpu.memory_space<vmem>>, vector<8x1024xf32>
    tpu.vector_store %arg15[%c48, %c0_27], %39 {strides = array<i32>} : memref<72x1024xf32, #tpu.memory_space<vmem>>, vector<8x1024xf32>,
    %c992_i32 = arith.constant 992 : i32
    %41 = tpu.dynamic_rotate %6 by %c992_i32 dim 1 : vector<8x1024xf32>, i32 -> vector<8x1024xf32>
    %c7 = arith.constant 7 : index
    %c0_28 = arith.constant 0 : index
    %42 = vector.load %arg4[%c7, %c0_28] : memref<9x1024xf32, #tpu.memory_space<vmem>>, vector<1x1024xf32>
    %43 = vector.broadcast %42 : vector<1x1024xf32> to vector<8x1024xf32>
    %44 = arith.mulf %41, %43 : vector<8x1024xf32>
    %c56 = arith.constant 56 : index
    %c0_29 = arith.constant 0 : index
    %45 = vector.load %arg15[%c56, %c0_29] : memref<72x1024xf32, #tpu.memory_space<vmem>>, vector<8x1024xf32>
    tpu.vector_store %arg15[%c56, %c0_29], %44 {strides = array<i32>} : memref<72x1024xf32, #tpu.memory_space<vmem>>, vector<8x1024xf32>,
    %c991_i32 = arith.constant 991 : i32
    %46 = tpu.dynamic_rotate %6 by %c991_i32 dim 1 : vector<8x1024xf32>, i32 -> vector<8x1024xf32>
    %c8_30 = arith.constant 8 : index
    %c0_31 = arith.constant 0 : index
    %47 = vector.load %arg4[%c8_30, %c0_31] : memref<9x1024xf32, #tpu.memory_space<vmem>>, vector<1x1024xf32>
    %48 = vector.broadcast %47 : vector<1x1024xf32> to vector<8x1024xf32>
    %49 = arith.mulf %46, %48 : vector<8x1024xf32>
    %c64 = arith.constant 64 : index
    %c0_32 = arith.constant 0 : index
    %50 = vector.load %arg15[%c64, %c0_32] : memref<72x1024xf32, #tpu.memory_space<vmem>>, vector<8x1024xf32>
    tpu.vector_store %arg15[%c64, %c0_32], %49 {strides = array<i32>} : memref<72x1024xf32, #tpu.memory_space<vmem>>, vector<8x1024xf32>,
    %c0_33 = arith.constant 0 : index
    %c0_34 = arith.constant 0 : index
    %51 = vector.load %arg15[%c0_33, %c0_34] : memref<72x1024xf32, #tpu.memory_space<vmem>>, vector<72x1024xf32>
    %cst_35 = arith.constant dense<0.000000e+00> : vector<4x1024xf32>
    %52 = tpu.matmul %7, %51, %cst_35 {dimension_numbers = #tpu.dot_dimension_numbers<[1], [0], [0], [1], [0, 0, 1, 1], [], []>} : vector<4x72xf32>, vector<72x1024xf32>, vector<4x1024xf32> -> vector<4x1024xf32>
    %53 = vector.broadcast %8 : vector<4x1xf32> to vector<4x1024xf32>
    %54 = arith.mulf %52, %53 : vector<4x1024xf32>
    %55 = vector.broadcast %9 : vector<4x1xf32> to vector<4x1024xf32>
    %56 = arith.addf %54, %55 : vector<4x1024xf32>
    %cst_36 = arith.constant 0.000000e+00 : f32
    %57 = vector.broadcast %cst_36 : f32 to vector<4x1024xf32>
    %58 = arith.maximumf %56, %57 : vector<4x1024xf32>
    %c0_37 = arith.constant 0 : index
    %c0_38 = arith.constant 0 : index
    %59 = vector.load %arg8[%c0_37, %c0_38] : memref<4x36xf32, #tpu.memory_space<vmem>>, vector<4x36xf32>
    %c0_39 = arith.constant 0 : index
    %c0_40 = arith.constant 0 : index
    %60 = vector.load %arg9[%c0_39, %c0_40] : memref<4x1xf32, #tpu.memory_space<vmem>>, vector<4x1xf32>
    %c0_41 = arith.constant 0 : index
    %c0_42 = arith.constant 0 : index
    %61 = vector.load %arg10[%c0_41, %c0_42] : memref<4x1xf32, #tpu.memory_space<vmem>>, vector<4x1xf32>
    %c33_i32_43 = arith.constant 33 : i32
    %62 = tpu.dynamic_rotate %58 by %c33_i32_43 dim 1 : vector<4x1024xf32>, i32 -> vector<4x1024xf32>
    %c0_44 = arith.constant 0 : index
    %c0_45 = arith.constant 0 : index
    %63 = vector.load %arg4[%c0_44, %c0_45] : memref<9x1024xf32, #tpu.memory_space<vmem>>, vector<1x1024xf32>
    %64 = vector.broadcast %63 : vector<1x1024xf32> to vector<4x1024xf32>
    %65 = arith.mulf %62, %64 : vector<4x1024xf32>
    %c0_46 = arith.constant 0 : index
    %c0_47 = arith.constant 0 : index
    %66 = vector.load %arg15[%c0_46, %c0_47] : memref<72x1024xf32, #tpu.memory_space<vmem>>, vector<4x1024xf32>
    tpu.vector_store %arg15[%c0_46, %c0_47], %65 {strides = array<i32>} : memref<72x1024xf32, #tpu.memory_space<vmem>>, vector<4x1024xf32>,
    %c32_i32_48 = arith.constant 32 : i32
    %67 = tpu.dynamic_rotate %58 by %c32_i32_48 dim 1 : vector<4x1024xf32>, i32 -> vector<4x1024xf32>
    %c1_49 = arith.constant 1 : index
    %c0_50 = arith.constant 0 : index
    %68 = vector.load %arg4[%c1_49, %c0_50] : memref<9x1024xf32, #tpu.memory_space<vmem>>, vector<1x1024xf32>
    %69 = vector.broadcast %68 : vector<1x1024xf32> to vector<4x1024xf32>
    %70 = arith.mulf %67, %69 : vector<4x1024xf32>
    %c4 = arith.constant 4 : index
    %c0_51 = arith.constant 0 : index
    %71 = vector.load %arg15[%c4, %c0_51] : memref<72x1024xf32, #tpu.memory_space<vmem>>, vector<4x1024xf32>
    tpu.vector_store %arg15[%c4, %c0_51], %70 {strides = array<i32>} : memref<72x1024xf32, #tpu.memory_space<vmem>>, vector<4x1024xf32>,
    %c31_i32_52 = arith.constant 31 : i32
    %72 = tpu.dynamic_rotate %58 by %c31_i32_52 dim 1 : vector<4x1024xf32>, i32 -> vector<4x1024xf32>
    %c2_53 = arith.constant 2 : index
    %c0_54 = arith.constant 0 : index
    %73 = vector.load %arg4[%c2_53, %c0_54] : memref<9x1024xf32, #tpu.memory_space<vmem>>, vector<1x1024xf32>
    %74 = vector.broadcast %73 : vector<1x1024xf32> to vector<4x1024xf32>
    %75 = arith.mulf %72, %74 : vector<4x1024xf32>
    %c8_55 = arith.constant 8 : index
    %c0_56 = arith.constant 0 : index
    %76 = vector.load %arg15[%c8_55, %c0_56] : memref<72x1024xf32, #tpu.memory_space<vmem>>, vector<4x1024xf32>
    tpu.vector_store %arg15[%c8_55, %c0_56], %75 {strides = array<i32>} : memref<72x1024xf32, #tpu.memory_space<vmem>>, vector<4x1024xf32>,
    %c1_i32_57 = arith.constant 1 : i32
    %77 = tpu.dynamic_rotate %58 by %c1_i32_57 dim 1 : vector<4x1024xf32>, i32 -> vector<4x1024xf32>
    %c3_58 = arith.constant 3 : index
    %c0_59 = arith.constant 0 : index
    %78 = vector.load %arg4[%c3_58, %c0_59] : memref<9x1024xf32, #tpu.memory_space<vmem>>, vector<1x1024xf32>
    %79 = vector.broadcast %78 : vector<1x1024xf32> to vector<4x1024xf32>
    %80 = arith.mulf %77, %79 : vector<4x1024xf32>
    %c12 = arith.constant 12 : index
    %c0_60 = arith.constant 0 : index
    %81 = vector.load %arg15[%c12, %c0_60] : memref<72x1024xf32, #tpu.memory_space<vmem>>, vector<4x1024xf32>
    tpu.vector_store %arg15[%c12, %c0_60], %80 {strides = array<i32>} : memref<72x1024xf32, #tpu.memory_space<vmem>>, vector<4x1024xf32>,
    %c16_61 = arith.constant 16 : index
    %c0_62 = arith.constant 0 : index
    %82 = vector.load %arg15[%c16_61, %c0_62] : memref<72x1024xf32, #tpu.memory_space<vmem>>, vector<4x1024xf32>
    tpu.vector_store %arg15[%c16_61, %c0_62], %58 {strides = array<i32>} : memref<72x1024xf32, #tpu.memory_space<vmem>>, vector<4x1024xf32>,
    %c1023_i32_63 = arith.constant 1023 : i32
    %83 = tpu.dynamic_rotate %58 by %c1023_i32_63 dim 1 : vector<4x1024xf32>, i32 -> vector<4x1024xf32>
    %c5_64 = arith.constant 5 : index
    %c0_65 = arith.constant 0 : index
    %84 = vector.load %arg4[%c5_64, %c0_65] : memref<9x1024xf32, #tpu.memory_space<vmem>>, vector<1x1024xf32>
    %85 = vector.broadcast %84 : vector<1x1024xf32> to vector<4x1024xf32>
    %86 = arith.mulf %83, %85 : vector<4x1024xf32>
    %c20 = arith.constant 20 : index
    %c0_66 = arith.constant 0 : index
    %87 = vector.load %arg15[%c20, %c0_66] : memref<72x1024xf32, #tpu.memory_space<vmem>>, vector<4x1024xf32>
    tpu.vector_store %arg15[%c20, %c0_66], %86 {strides = array<i32>} : memref<72x1024xf32, #tpu.memory_space<vmem>>, vector<4x1024xf32>,
    %c993_i32_67 = arith.constant 993 : i32
    %88 = tpu.dynamic_rotate %58 by %c993_i32_67 dim 1 : vector<4x1024xf32>, i32 -> vector<4x1024xf32>
    %c6_68 = arith.constant 6 : index
    %c0_69 = arith.constant 0 : index
    %89 = vector.load %arg4[%c6_68, %c0_69] : memref<9x1024xf32, #tpu.memory_space<vmem>>, vector<1x1024xf32>
    %90 = vector.broadcast %89 : vector<1x1024xf32> to vector<4x1024xf32>
    %91 = arith.mulf %88, %90 : vector<4x1024xf32>
    %c24_70 = arith.constant 24 : index
    %c0_71 = arith.constant 0 : index
    %92 = vector.load %arg15[%c24_70, %c0_71] : memref<72x1024xf32, #tpu.memory_space<vmem>>, vector<4x1024xf32>
    tpu.vector_store %arg15[%c24_70, %c0_71], %91 {strides = array<i32>} : memref<72x1024xf32, #tpu.memory_space<vmem>>, vector<4x1024xf32>,
    %c992_i32_72 = arith.constant 992 : i32
    %93 = tpu.dynamic_rotate %58 by %c992_i32_72 dim 1 : vector<4x1024xf32>, i32 -> vector<4x1024xf32>
    %c7_73 = arith.constant 7 : index
    %c0_74 = arith.constant 0 : index
    %94 = vector.load %arg4[%c7_73, %c0_74] : memref<9x1024xf32, #tpu.memory_space<vmem>>, vector<1x1024xf32>
    %95 = vector.broadcast %94 : vector<1x1024xf32> to vector<4x1024xf32>
    %96 = arith.mulf %93, %95 : vector<4x1024xf32>
    %c28 = arith.constant 28 : index
    %c0_75 = arith.constant 0 : index
    %97 = vector.load %arg15[%c28, %c0_75] : memref<72x1024xf32, #tpu.memory_space<vmem>>, vector<4x1024xf32>
    tpu.vector_store %arg15[%c28, %c0_75], %96 {strides = array<i32>} : memref<72x1024xf32, #tpu.memory_space<vmem>>, vector<4x1024xf32>,
    %c991_i32_76 = arith.constant 991 : i32
    %98 = tpu.dynamic_rotate %58 by %c991_i32_76 dim 1 : vector<4x1024xf32>, i32 -> vector<4x1024xf32>
    %c8_77 = arith.constant 8 : index
    %c0_78 = arith.constant 0 : index
    %99 = vector.load %arg4[%c8_77, %c0_78] : memref<9x1024xf32, #tpu.memory_space<vmem>>, vector<1x1024xf32>
    %100 = vector.broadcast %99 : vector<1x1024xf32> to vector<4x1024xf32>
    %101 = arith.mulf %98, %100 : vector<4x1024xf32>
    %c32_79 = arith.constant 32 : index
    %c0_80 = arith.constant 0 : index
    %102 = vector.load %arg15[%c32_79, %c0_80] : memref<72x1024xf32, #tpu.memory_space<vmem>>, vector<4x1024xf32>
    tpu.vector_store %arg15[%c32_79, %c0_80], %101 {strides = array<i32>} : memref<72x1024xf32, #tpu.memory_space<vmem>>, vector<4x1024xf32>,
    %c0_81 = arith.constant 0 : index
    %c0_82 = arith.constant 0 : index
    %103 = vector.load %arg15[%c0_81, %c0_82] : memref<72x1024xf32, #tpu.memory_space<vmem>>, vector<36x1024xf32>
    %cst_83 = arith.constant dense<0.000000e+00> : vector<4x1024xf32>
    %104 = tpu.matmul %59, %103, %cst_83 {dimension_numbers = #tpu.dot_dimension_numbers<[1], [0], [0], [1], [0, 0, 1, 1], [], []>} : vector<4x36xf32>, vector<36x1024xf32>, vector<4x1024xf32> -> vector<4x1024xf32>
    %105 = vector.broadcast %60 : vector<4x1xf32> to vector<4x1024xf32>
    %106 = arith.mulf %104, %105 : vector<4x1024xf32>
    %107 = vector.broadcast %61 : vector<4x1xf32> to vector<4x1024xf32>
    %108 = arith.addf %106, %107 : vector<4x1024xf32>
    %cst_84 = arith.constant 0.000000e+00 : f32
    %109 = vector.broadcast %cst_84 : f32 to vector<4x1024xf32>
    %110 = arith.maximumf %108, %109 : vector<4x1024xf32>
    %c0_85 = arith.constant 0 : index
    %c0_86 = arith.constant 0 : index
    %111 = vector.load %arg11[%c0_85, %c0_86] : memref<4x36xf32, #tpu.memory_space<vmem>>, vector<4x36xf32>
    %c0_87 = arith.constant 0 : index
    %c0_88 = arith.constant 0 : index
    %112 = vector.load %arg12[%c0_87, %c0_88] : memref<4x1xf32, #tpu.memory_space<vmem>>, vector<4x1xf32>
    %c0_89 = arith.constant 0 : index
    %c0_90 = arith.constant 0 : index
    %113 = vector.load %arg13[%c0_89, %c0_90] : memref<4x1xf32, #tpu.memory_space<vmem>>, vector<4x1xf32>
    %c33_i32_91 = arith.constant 33 : i32
    %114 = tpu.dynamic_rotate %110 by %c33_i32_91 dim 1 : vector<4x1024xf32>, i32 -> vector<4x1024xf32>
    %c0_92 = arith.constant 0 : index
    %c0_93 = arith.constant 0 : index
    %115 = vector.load %arg4[%c0_92, %c0_93] : memref<9x1024xf32, #tpu.memory_space<vmem>>, vector<1x1024xf32>
    %116 = vector.broadcast %115 : vector<1x1024xf32> to vector<4x1024xf32>
    %117 = arith.mulf %114, %116 : vector<4x1024xf32>
    %c0_94 = arith.constant 0 : index
    %c0_95 = arith.constant 0 : index
    %118 = vector.load %arg15[%c0_94, %c0_95] : memref<72x1024xf32, #tpu.memory_space<vmem>>, vector<4x1024xf32>
    tpu.vector_store %arg15[%c0_94, %c0_95], %117 {strides = array<i32>} : memref<72x1024xf32, #tpu.memory_space<vmem>>, vector<4x1024xf32>,
    %c32_i32_96 = arith.constant 32 : i32
    %119 = tpu.dynamic_rotate %110 by %c32_i32_96 dim 1 : vector<4x1024xf32>, i32 -> vector<4x1024xf32>
    %c1_97 = arith.constant 1 : index
    %c0_98 = arith.constant 0 : index
    %120 = vector.load %arg4[%c1_97, %c0_98] : memref<9x1024xf32, #tpu.memory_space<vmem>>, vector<1x1024xf32>
    %121 = vector.broadcast %120 : vector<1x1024xf32> to vector<4x1024xf32>
    %122 = arith.mulf %119, %121 : vector<4x1024xf32>
    %c4_99 = arith.constant 4 : index
    %c0_100 = arith.constant 0 : index
    %123 = vector.load %arg15[%c4_99, %c0_100] : memref<72x1024xf32, #tpu.memory_space<vmem>>, vector<4x1024xf32>
    tpu.vector_store %arg15[%c4_99, %c0_100], %122 {strides = array<i32>} : memref<72x1024xf32, #tpu.memory_space<vmem>>, vector<4x1024xf32>,
    %c31_i32_101 = arith.constant 31 : i32
    %124 = tpu.dynamic_rotate %110 by %c31_i32_101 dim 1 : vector<4x1024xf32>, i32 -> vector<4x1024xf32>
    %c2_102 = arith.constant 2 : index
    %c0_103 = arith.constant 0 : index
    %125 = vector.load %arg4[%c2_102, %c0_103] : memref<9x1024xf32, #tpu.memory_space<vmem>>, vector<1x1024xf32>
    %126 = vector.broadcast %125 : vector<1x1024xf32> to vector<4x1024xf32>
    %127 = arith.mulf %124, %126 : vector<4x1024xf32>
    %c8_104 = arith.constant 8 : index
    %c0_105 = arith.constant 0 : index
    %128 = vector.load %arg15[%c8_104, %c0_105] : memref<72x1024xf32, #tpu.memory_space<vmem>>, vector<4x1024xf32>
    tpu.vector_store %arg15[%c8_104, %c0_105], %127 {strides = array<i32>} : memref<72x1024xf32, #tpu.memory_space<vmem>>, vector<4x1024xf32>,
    %c1_i32_106 = arith.constant 1 : i32
    %129 = tpu.dynamic_rotate %110 by %c1_i32_106 dim 1 : vector<4x1024xf32>, i32 -> vector<4x1024xf32>
    %c3_107 = arith.constant 3 : index
    %c0_108 = arith.constant 0 : index
    %130 = vector.load %arg4[%c3_107, %c0_108] : memref<9x1024xf32, #tpu.memory_space<vmem>>, vector<1x1024xf32>
    %131 = vector.broadcast %130 : vector<1x1024xf32> to vector<4x1024xf32>
    %132 = arith.mulf %129, %131 : vector<4x1024xf32>
    %c12_109 = arith.constant 12 : index
    %c0_110 = arith.constant 0 : index
    %133 = vector.load %arg15[%c12_109, %c0_110] : memref<72x1024xf32, #tpu.memory_space<vmem>>, vector<4x1024xf32>
    tpu.vector_store %arg15[%c12_109, %c0_110], %132 {strides = array<i32>} : memref<72x1024xf32, #tpu.memory_space<vmem>>, vector<4x1024xf32>,
    %c16_111 = arith.constant 16 : index
    %c0_112 = arith.constant 0 : index
    %134 = vector.load %arg15[%c16_111, %c0_112] : memref<72x1024xf32, #tpu.memory_space<vmem>>, vector<4x1024xf32>
    tpu.vector_store %arg15[%c16_111, %c0_112], %110 {strides = array<i32>} : memref<72x1024xf32, #tpu.memory_space<vmem>>, vector<4x1024xf32>,
    %c1023_i32_113 = arith.constant 1023 : i32
    %135 = tpu.dynamic_rotate %110 by %c1023_i32_113 dim 1 : vector<4x1024xf32>, i32 -> vector<4x1024xf32>
    %c5_114 = arith.constant 5 : index
    %c0_115 = arith.constant 0 : index
    %136 = vector.load %arg4[%c5_114, %c0_115] : memref<9x1024xf32, #tpu.memory_space<vmem>>, vector<1x1024xf32>
    %137 = vector.broadcast %136 : vector<1x1024xf32> to vector<4x1024xf32>
    %138 = arith.mulf %135, %137 : vector<4x1024xf32>
    %c20_116 = arith.constant 20 : index
    %c0_117 = arith.constant 0 : index
    %139 = vector.load %arg15[%c20_116, %c0_117] : memref<72x1024xf32, #tpu.memory_space<vmem>>, vector<4x1024xf32>
    tpu.vector_store %arg15[%c20_116, %c0_117], %138 {strides = array<i32>} : memref<72x1024xf32, #tpu.memory_space<vmem>>, vector<4x1024xf32>,
    %c993_i32_118 = arith.constant 993 : i32
    %140 = tpu.dynamic_rotate %110 by %c993_i32_118 dim 1 : vector<4x1024xf32>, i32 -> vector<4x1024xf32>
    %c6_119 = arith.constant 6 : index
    %c0_120 = arith.constant 0 : index
    %141 = vector.load %arg4[%c6_119, %c0_120] : memref<9x1024xf32, #tpu.memory_space<vmem>>, vector<1x1024xf32>
    %142 = vector.broadcast %141 : vector<1x1024xf32> to vector<4x1024xf32>
    %143 = arith.mulf %140, %142 : vector<4x1024xf32>
    %c24_121 = arith.constant 24 : index
    %c0_122 = arith.constant 0 : index
    %144 = vector.load %arg15[%c24_121, %c0_122] : memref<72x1024xf32, #tpu.memory_space<vmem>>, vector<4x1024xf32>
    tpu.vector_store %arg15[%c24_121, %c0_122], %143 {strides = array<i32>} : memref<72x1024xf32, #tpu.memory_space<vmem>>, vector<4x1024xf32>,
    %c992_i32_123 = arith.constant 992 : i32
    %145 = tpu.dynamic_rotate %110 by %c992_i32_123 dim 1 : vector<4x1024xf32>, i32 -> vector<4x1024xf32>
    %c7_124 = arith.constant 7 : index
    %c0_125 = arith.constant 0 : index
    %146 = vector.load %arg4[%c7_124, %c0_125] : memref<9x1024xf32, #tpu.memory_space<vmem>>, vector<1x1024xf32>
    %147 = vector.broadcast %146 : vector<1x1024xf32> to vector<4x1024xf32>
    %148 = arith.mulf %145, %147 : vector<4x1024xf32>
    %c28_126 = arith.constant 28 : index
    %c0_127 = arith.constant 0 : index
    %149 = vector.load %arg15[%c28_126, %c0_127] : memref<72x1024xf32, #tpu.memory_space<vmem>>, vector<4x1024xf32>
    tpu.vector_store %arg15[%c28_126, %c0_127], %148 {strides = array<i32>} : memref<72x1024xf32, #tpu.memory_space<vmem>>, vector<4x1024xf32>,
    %c991_i32_128 = arith.constant 991 : i32
    %150 = tpu.dynamic_rotate %110 by %c991_i32_128 dim 1 : vector<4x1024xf32>, i32 -> vector<4x1024xf32>
    %c8_129 = arith.constant 8 : index
    %c0_130 = arith.constant 0 : index
    %151 = vector.load %arg4[%c8_129, %c0_130] : memref<9x1024xf32, #tpu.memory_space<vmem>>, vector<1x1024xf32>
    %152 = vector.broadcast %151 : vector<1x1024xf32> to vector<4x1024xf32>
    %153 = arith.mulf %150, %152 : vector<4x1024xf32>
    %c32_131 = arith.constant 32 : index
    %c0_132 = arith.constant 0 : index
    %154 = vector.load %arg15[%c32_131, %c0_132] : memref<72x1024xf32, #tpu.memory_space<vmem>>, vector<4x1024xf32>
    tpu.vector_store %arg15[%c32_131, %c0_132], %153 {strides = array<i32>} : memref<72x1024xf32, #tpu.memory_space<vmem>>, vector<4x1024xf32>,
    %c0_133 = arith.constant 0 : index
    %c0_134 = arith.constant 0 : index
    %155 = vector.load %arg15[%c0_133, %c0_134] : memref<72x1024xf32, #tpu.memory_space<vmem>>, vector<36x1024xf32>
    %cst_135 = arith.constant dense<0.000000e+00> : vector<4x1024xf32>
    %156 = tpu.matmul %111, %155, %cst_135 {dimension_numbers = #tpu.dot_dimension_numbers<[1], [0], [0], [1], [0, 0, 1, 1], [], []>} : vector<4x36xf32>, vector<36x1024xf32>, vector<4x1024xf32> -> vector<4x1024xf32>
    %157 = vector.broadcast %112 : vector<4x1xf32> to vector<4x1024xf32>
    %158 = arith.mulf %156, %157 : vector<4x1024xf32>
    %159 = vector.broadcast %113 : vector<4x1xf32> to vector<4x1024xf32>
    %160 = arith.addf %158, %159 : vector<4x1024xf32>
    %cst_136 = arith.constant 0.000000e+00 : f32
    %161 = vector.broadcast %cst_136 : f32 to vector<4x1024xf32>
    %162 = arith.maximumf %160, %161 : vector<4x1024xf32>
    %c0_137 = arith.constant 0 : index
    %c0_138 = arith.constant 0 : index
    %c0_139 = arith.constant 0 : index
    %163 = vector.load %arg14[%c0_137, %c0_138, %c0_139] : memref<1x4x1024xf32, #tpu.memory_space<vmem>>, vector<1x4x1024xf32>
    %164 = vector.shape_cast %163 : vector<1x4x1024xf32> to vector<4x1024xf32>
    %165 = vector.shape_cast %162 : vector<4x1024xf32> to vector<1x4x1024xf32>
    tpu.vector_store %arg14[%c0_137, %c0_138, %c0_139], %165 {strides = array<i32>} : memref<1x4x1024xf32, #tpu.memory_space<vmem>>, vector<1x4x1024xf32>,
    return
  }
  func.func @transform_0(%arg0: i32) -> (i32, i32, i32) {
    %c0_i32 = arith.constant 0 : i32
    %c0_i32_0 = arith.constant 0 : i32
    %c0_i32_1 = arith.constant 0 : i32
    return %arg0, %c0_i32, %c0_i32_0 : i32, i32, i32
  }
  func.func @transform_1(%arg0: i32) -> (i32, i32, i32) {
    %c0_i32 = arith.constant 0 : i32
    %c0_i32_0 = arith.constant 0 : i32
    %c0_i32_1 = arith.constant 0 : i32
    return %arg0, %c0_i32, %c0_i32_0 : i32, i32, i32
  }
  func.func @transform_2(%arg0: i32) -> (i32, i32) {
    %c0_i32 = arith.constant 0 : i32
    %c0_i32_0 = arith.constant 0 : i32
    %c0_i32_1 = arith.constant 0 : i32
    return %c0_i32, %c0_i32_0 : i32, i32
  }
  func.func @transform_3(%arg0: i32) -> (i32, i32) {
    %c0_i32 = arith.constant 0 : i32
    %c0_i32_0 = arith.constant 0 : i32
    %c0_i32_1 = arith.constant 0 : i32
    return %c0_i32, %c0_i32_0 : i32, i32
  }
  func.func @transform_4(%arg0: i32) -> (i32, i32) {
    %c0_i32 = arith.constant 0 : i32
    %c0_i32_0 = arith.constant 0 : i32
    %c0_i32_1 = arith.constant 0 : i32
    return %c0_i32, %c0_i32_0 : i32, i32
  }
  func.func @transform_5(%arg0: i32) -> (i32, i32) {
    %c0_i32 = arith.constant 0 : i32
    %c0_i32_0 = arith.constant 0 : i32
    %c0_i32_1 = arith.constant 0 : i32
    return %c0_i32, %c0_i32_0 : i32, i32
  }
  func.func @transform_6(%arg0: i32) -> (i32, i32) {
    %c0_i32 = arith.constant 0 : i32
    %c0_i32_0 = arith.constant 0 : i32
    %c0_i32_1 = arith.constant 0 : i32
    return %c0_i32, %c0_i32_0 : i32, i32
  }
  func.func @transform_7(%arg0: i32) -> (i32, i32) {
    %c0_i32 = arith.constant 0 : i32
    %c0_i32_0 = arith.constant 0 : i32
    %c0_i32_1 = arith.constant 0 : i32
    return %c0_i32, %c0_i32_0 : i32, i32
  }
  func.func @transform_8(%arg0: i32) -> (i32, i32) {
    %c0_i32 = arith.constant 0 : i32
    %c0_i32_0 = arith.constant 0 : i32
    %c0_i32_1 = arith.constant 0 : i32
    return %c0_i32, %c0_i32_0 : i32, i32
  }
  func.func @transform_9(%arg0: i32) -> (i32, i32) {
    %c0_i32 = arith.constant 0 : i32
    %c0_i32_0 = arith.constant 0 : i32
    %c0_i32_1 = arith.constant 0 : i32
    return %c0_i32, %c0_i32_0 : i32, i32
  }
  func.func @transform_10(%arg0: i32) -> (i32, i32) {
    %c0_i32 = arith.constant 0 : i32
    %c0_i32_0 = arith.constant 0 : i32
    %c0_i32_1 = arith.constant 0 : i32
    return %c0_i32, %c0_i32_0 : i32, i32
  }
  func.func @transform_11(%arg0: i32) -> (i32, i32) {
    %c0_i32 = arith.constant 0 : i32
    %c0_i32_0 = arith.constant 0 : i32
    %c0_i32_1 = arith.constant 0 : i32
    return %c0_i32, %c0_i32_0 : i32, i32
  }
  func.func @transform_12(%arg0: i32) -> (i32, i32) {
    %c0_i32 = arith.constant 0 : i32
    %c0_i32_0 = arith.constant 0 : i32
    %c0_i32_1 = arith.constant 0 : i32
    return %c0_i32, %c0_i32_0 : i32, i32
  }
  func.func @transform_13(%arg0: i32) -> (i32, i32, i32) {
    %c0_i32 = arith.constant 0 : i32
    %c0_i32_0 = arith.constant 0 : i32
    %c0_i32_1 = arith.constant 0 : i32
    return %arg0, %c0_i32, %c0_i32_0 : i32, i32, i32
  }
}

</mosaic_0001>

<bundles_post_ra>
// kernel: up_forward.1
= control target key start
LH: loop header
LB: loop body
LE: loop exit
PB: predicated region body
PF: predicated region fallthrough
CT: control target
= control target key end

     0   :  { %s5147_s25 = smov 0   ;;  %s7840_s0 = inlined_call_operand.vmem [shape: f32[2,4,1024], index: 0, kind: input, shape index: {}]   ;;  %s7841_s1 = inlined_call_operand.vmem [shape: f32[2,4,256], index: 1, kind: input, shape index: {}]   ;;  %s7842_s2 = inlined_call_operand.vmem [shape: f32[256,1024], index: 2, kind: input, shape index: {}]   ;;  %s7843_s3 = inlined_call_operand.vmem [shape: f32[9,1024], index: 3, kind: input, shape index: {}]   ;;  %s7844_s4 = inlined_call_operand.vmem [shape: f32[4,72], index: 4, kind: input, shape index: {}]   ;;  %s7845_s5 = inlined_call_operand.vmem [shape: f32[4,1], index: 5, kind: input, shape index: {}]   ;;  %s7846_s6 = inlined_call_operand.vmem [shape: f32[4,1], index: 6, kind: input, shape index: {}]   ;;  %s7847_s7 = inlined_call_operand.vmem [shape: f32[4,36], index: 7, kind: input, shape index: {}]   ;;  %s7848_s8 = inlined_call_operand.vmem [shape: f32[4,1], index: 8, kind: input, shape index: {}]   ;;  %s7849_s9 = inlined_call_operand.vmem [shape: f32[4,1], index: 9, kind: input, shape index: {}]   ;;  %s7850_s10 = inlined_call_operand.vmem [shape: f32[4,36], index: 10, kind: input, shape index: {}]   ;;  %s7851_s11 = inlined_call_operand.vmem [shape: f32[4,1], index: 11, kind: input, shape index: {}]   ;;  %s7852_s12 = inlined_call_operand.vmem [shape: f32[4,1], index: 12, kind: input, shape index: {}]   ;;  %s7853_s13 = inlined_call_operand.vmem [shape: f32[2,4,1024], index: 13, kind: output, shape index: {}]  }
   0x1 LB: > { %s4564_s26 = sadd.s32 4294967295, %s5065_s25   ;;  %p4568_p0 = scmp.ge.s32.totalorder %s5065_s25, 1  ;;  %s5065_s25 = sphi %s5147_s25, %s23_s25  }
   0x2   : > { %p397_p1 = scmp.lt.s32.totalorder %s5065_s25, 3 }
   0x4   : > { %p398_p2 = pnand %p4568_p0, %p397_p1 }
   0x6   : > { %401 = sbr.rel (%p398_p2) target bundleno = 1649 (0x671), region = 72 }
   0xd   : > { %v463_v0 = vld [vmem:[%s7842_s2 + $0x8] sm:$0xff]  ;;  %v465_v2 = vld [vmem:[%s7842_s2 + $0x18] sm:$0xff]  ;;  %v462_v5 = vld [vmem:[%s7842_s2] sm:$0xff]  ;;  %p5361_p3 = scmp.lt.s32.totalorder %s4564_s26, 1  ;;  %vm1045_vm0 = vcmask 1043456   ;;  %s5067_s22 = smov 33  }
   0xe   : > { %v471_v1 = vld [vmem:[%s7842_s2 + $0x48] sm:$0xff]  ;;  %v473_v4 = vld [vmem:[%s7842_s2 + $0x58] sm:$0xff]  ;;  %v470_v6 = vld [vmem:[%s7842_s2 + $0x40] sm:$0xff]  ;;  %s5068_s23 = smov 32   ;;  %s5069_s24 = smov 127   ;;  %vm1826_vm9 = vcmask 588800  }
   0xf   : > { %v4650_v3 = vpack.c.bf16 %v471_v1, %v463_v0  ;;  %v4714_v7 = vpack.c.bf16 %v473_v4, %v465_v2  ;;  %v4652_v8 = vpack.c.bf16 %v470_v6, %v462_v5  ;;  %v464_v9 = vld [vmem:[%s7842_s2 + $0x10] sm:$0xff]  ;;  %v479_v11 = vld [vmem:[%s7842_s2 + $0x88] sm:$0xff]  ;;  %v481_v14 = vld [vmem:[%s7842_s2 + $0x98] sm:$0xff]  ;;  %s7901_s26 = smov (!%p5361_p3, %s4564_s26), 1  ;;  %s7872_s27 = smov 97   ;;  %vm2967_vm10 = vcmask 293888  }
  0x10   : > { %v472_v10 = vld [vmem:[%s7842_s2 + $0x50] sm:$0xff]  ;;  %v487_v13 = vld [vmem:[%s7842_s2 + $0xc8] sm:$0xff]  ;;  %v489_v15 = vld [vmem:[%s7842_s2 + $0xd8] sm:$0xff]  ;;  %s4648_s15 = sshll.u32 %s7901_s26, 3  ;;  %s7871_s19 = sshll.u32 %s7901_s26, 5 }
  0x11   : > { %4651 = vmatprep.subr.bf16.mxu0 %v4650_v3  ;;  %v4716_v12 = vpack.c.bf16 %v472_v10, %v464_v9  ;;  %4715 = vmatprep.subr.bf16.mxu1 %v4714_v7  ;;  %v4654_v16 = vpack.c.bf16 %v487_v13, %v479_v11  ;;  %v4718_v17 = vpack.c.bf16 %v489_v15, %v481_v14  ;;  %v478_v18 = vld [vmem:[%s7842_s2 + $0x80] sm:$0xff]  ;;  %v480_v20 = vld [vmem:[%s7842_s2 + $0x90] sm:$0xff]  ;;  %v495_v23 = vld [vmem:[%s7842_s2 + $0x108] sm:$0xff]  ;;  %s455_s28 = scalar_lea.vmem %s7841_s1, %s4648_s15  ;;  %s5071_s29 = smov 31  }
  0x12   : > { %4653 = vmatpush1.bf16.msra.mxu0 %v4652_v8  ;;  %v486_v19 = vld [vmem:[%s7842_s2 + $0xc0] sm:$0xff]  ;;  %v488_v22 = vld [vmem:[%s7842_s2 + $0xd0] sm:$0xff]  ;;  %v503_v24 = vld [vmem:[%s7842_s2 + $0x148] sm:$0xff]  ;;  %s5072_s15 = smov 95   ;;  %s5073_s30 = smov 1  }
  0x13   : > { %4717 = vmatpush1.bf16.msra.mxu1 %v4716_v12  ;;  %v4656_v21 = vpack.c.bf16 %v486_v19, %v478_v18  ;;  %4655 = vmatprep.subr.bf16.mxu0 %v4654_v16  ;;  %v4720_v25 = vpack.c.bf16 %v488_v22, %v480_v20  ;;  %v4658_v26 = vpack.c.bf16 %v503_v24, %v495_v23  ;;  %v497_v27 = vld [vmem:[%s7842_s2 + $0x118] sm:$0xff]  ;;  %v494_v29 = vld [vmem:[%s7842_s2 + $0x100] sm:$0xff]  ;;  %v496_v32 = vld [vmem:[%s7842_s2 + $0x110] sm:$0xff]  ;;  %s5074_s14 = smov 96   ;;  %s7898_s21 = smov 97  }
  0x14   : > { %4719 = vmatprep.subr.bf16.mxu1 %v4718_v17  ;;  %v505_v28 = vld [vmem:[%s7842_s2 + $0x158] sm:$0xff]  ;;  %v502_v31 = vld [vmem:[%s7842_s2 + $0x140] sm:$0xff]  ;;  %v504_v33 = vld [vmem:[%s7842_s2 + $0x150] sm:$0xff] }
  0x15   : > { %v4722_v30 = vpack.c.bf16 %v505_v28, %v497_v27  ;;  %v4660_v34 = vpack.c.bf16 %v502_v31, %v494_v29  ;;  %v511_v35 = vld [vmem:[%s7842_s2 + $0x188] sm:$0xff]  ;;  %v513_v37 = vld [vmem:[%s7842_s2 + $0x198] sm:$0xff]  ;;  %v4724_v38 = vpack.c.bf16 %v504_v33, %v496_v32  ;;  %v510_v41 = vld [vmem:[%s7842_s2 + $0x180] sm:$0xff] }
  0x16   : > { %4657 = vmatpush1.bf16.msra.mxu0 %v4656_v21  ;;  %v519_v36 = vld [vmem:[%s7842_s2 + $0x1c8] sm:$0xff]  ;;  %v521_v40 = vld [vmem:[%s7842_s2 + $0x1d8] sm:$0xff]  ;;  %v518_v42 = vld [vmem:[%s7842_s2 + $0x1c0] sm:$0xff] }
  0x17   : > { %4721 = vmatpush1.bf16.msra.mxu1 %v4720_v25  ;;  %4659 = vmatprep.subr.bf16.mxu0 %v4658_v26  ;;  %v4662_v39 = vpack.c.bf16 %v519_v36, %v511_v35  ;;  %v4726_v43 = vpack.c.bf16 %v521_v40, %v513_v37  ;;  %v512_v44 = vld [vmem:[%s7842_s2 + $0x190] sm:$0xff]  ;;  %v527_v46 = vld [vmem:[%s7842_s2 + $0x208] sm:$0xff]  ;;  %v529_v48 = vld [vmem:[%s7842_s2 + $0x218] sm:$0xff]  ;;  %v4664_v50 = vpack.c.bf16 %v518_v42, %v510_v41 }
  0x18   : > { %4723 = vmatprep.subr.bf16.mxu1 %v4722_v30  ;;  %v520_v45 = vld [vmem:[%s7842_s2 + $0x1d0] sm:$0xff]  ;;  %v535_v47 = vld [vmem:[%s7842_s2 + $0x248] sm:$0xff]  ;;  %v537_v49 = vld [vmem:[%s7842_s2 + $0x258] sm:$0xff] }
  0x19   : > { %v4728_v51 = vpack.c.bf16 %v520_v45, %v512_v44  ;;  %v4666_v52 = vpack.c.bf16 %v535_v47, %v527_v46  ;;  %v526_v53 = vld [vmem:[%s7842_s2 + $0x200] sm:$0xff]  ;;  %v528_v55 = vld [vmem:[%s7842_s2 + $0x210] sm:$0xff]  ;;  %v4730_v56 = vpack.c.bf16 %v537_v49, %v529_v48  ;;  %v543_v58 = vld [vmem:[%s7842_s2 + $0x288] sm:$0xff] }
  0x1a   : > { %4661 = vmatpush1.bf16.msra.mxu0 %v4660_v34  ;;  %v534_v54 = vld [vmem:[%s7842_s2 + $0x240] sm:$0xff]  ;;  %v536_v57 = vld [vmem:[%s7842_s2 + $0x250] sm:$0xff]  ;;  %v551_v59 = vld [vmem:[%s7842_s2 + $0x2c8] sm:$0xff] }
  0x1b   : > { %4725 = vmatpush1.bf16.msra.mxu1 %v4724_v38  ;;  %4663 = vmatprep.subr.bf16.mxu0 %v4662_v39  ;;  %v545_v60 = vld [vmem:[%s7842_s2 + $0x298] sm:$0xff]  ;;  %v4668_v62 = vpack.c.bf16 %v534_v54, %v526_v53  ;;  %v4732_v63 = vpack.c.bf16 %v536_v57, %v528_v55  ;;  %v4670_v0 = vpack.c.bf16 %v551_v59, %v543_v58  ;;  %v542_v1 = vld [vmem:[%s7842_s2 + $0x280] sm:$0xff]  ;;  %v544_v3 = vld [vmem:[%s7842_s2 + $0x290] sm:$0xff] }
  0x1c   : > { %4727 = vmatprep.subr.bf16.mxu1 %v4726_v43  ;;  %v553_v61 = vld [vmem:[%s7842_s2 + $0x2d8] sm:$0xff]  ;;  %v550_v2 = vld [vmem:[%s7842_s2 + $0x2c0] sm:$0xff]  ;;  %v552_v5 = vld [vmem:[%s7842_s2 + $0x2d0] sm:$0xff] }
  0x1d   : > { %v4734_v4 = vpack.c.bf16 %v553_v61, %v545_v60  ;;  %v559_v6 = vld [vmem:[%s7842_s2 + $0x308] sm:$0xff]  ;;  %v561_v8 = vld [vmem:[%s7842_s2 + $0x318] sm:$0xff]  ;;  %v4672_v10 = vpack.c.bf16 %v550_v2, %v542_v1  ;;  %v4736_v11 = vpack.c.bf16 %v552_v5, %v544_v3  ;;  %v558_v13 = vld [vmem:[%s7842_s2 + $0x300] sm:$0xff] }
  0x1e   : > { %4665 = vmatpush1.bf16.msra.mxu0 %v4664_v50  ;;  %v567_v7 = vld [vmem:[%s7842_s2 + $0x348] sm:$0xff]  ;;  %v569_v9 = vld [vmem:[%s7842_s2 + $0x358] sm:$0xff]  ;;  %v566_v14 = vld [vmem:[%s7842_s2 + $0x340] sm:$0xff] }
  0x1f   : > { %4729 = vmatpush1.bf16.msra.mxu1 %v4728_v51  ;;  %4667 = vmatprep.subr.bf16.mxu0 %v4666_v52  ;;  %v4674_v12 = vpack.c.bf16 %v567_v7, %v559_v6  ;;  %v560_v15 = vld [vmem:[%s7842_s2 + $0x310] sm:$0xff]  ;;  %v4738_v16 = vpack.c.bf16 %v569_v9, %v561_v8  ;;  %v575_v18 = vld [vmem:[%s7842_s2 + $0x388] sm:$0xff]  ;;  %v577_v20 = vld [vmem:[%s7842_s2 + $0x398] sm:$0xff]  ;;  %v4676_v22 = vpack.c.bf16 %v566_v14, %v558_v13 }
  0x20   : > { %4731 = vmatprep.subr.bf16.mxu1 %v4730_v56  ;;  %v568_v17 = vld [vmem:[%s7842_s2 + $0x350] sm:$0xff]  ;;  %v583_v19 = vld [vmem:[%s7842_s2 + $0x3c8] sm:$0xff]  ;;  %v585_v21 = vld [vmem:[%s7842_s2 + $0x3d8] sm:$0xff] }
  0x21   : > { %v4740_v23 = vpack.c.bf16 %v568_v17, %v560_v15  ;;  %v4678_v24 = vpack.c.bf16 %v583_v19, %v575_v18  ;;  %v574_v25 = vld [vmem:[%s7842_s2 + $0x380] sm:$0xff]  ;;  %v576_v27 = vld [vmem:[%s7842_s2 + $0x390] sm:$0xff]  ;;  %v4742_v28 = vpack.c.bf16 %v585_v21, %v577_v20  ;;  %v591_v30 = vld [vmem:[%s7842_s2 + $0x408] sm:$0xff] }
  0x22   : > { %4669 = vmatpush1.bf16.msra.mxu0 %v4668_v62  ;;  %v582_v26 = vld [vmem:[%s7842_s2 + $0x3c0] sm:$0xff]  ;;  %v584_v29 = vld [vmem:[%s7842_s2 + $0x3d0] sm:$0xff]  ;;  %v599_v31 = vld [vmem:[%s7842_s2 + $0x448] sm:$0xff] }
  0x23   : > { %4733 = vmatpush1.bf16.msra.mxu1 %v4732_v63  ;;  %4671 = vmatprep.subr.bf16.mxu0 %v4670_v0  ;;  %v593_v32 = vld [vmem:[%s7842_s2 + $0x418] sm:$0xff]  ;;  %v4680_v34 = vpack.c.bf16 %v582_v26, %v574_v25  ;;  %v4744_v35 = vpack.c.bf16 %v584_v29, %v576_v27  ;;  %v4682_v36 = vpack.c.bf16 %v599_v31, %v591_v30  ;;  %v590_v37 = vld [vmem:[%s7842_s2 + $0x400] sm:$0xff]  ;;  %v592_v39 = vld [vmem:[%s7842_s2 + $0x410] sm:$0xff] }
  0x24   : > { %4735 = vmatprep.subr.bf16.mxu1 %v4734_v4  ;;  %v601_v33 = vld [vmem:[%s7842_s2 + $0x458] sm:$0xff]  ;;  %v598_v38 = vld [vmem:[%s7842_s2 + $0x440] sm:$0xff]  ;;  %v600_v41 = vld [vmem:[%s7842_s2 + $0x450] sm:$0xff] }
  0x25   : > { %v4746_v40 = vpack.c.bf16 %v601_v33, %v593_v32  ;;  %v607_v42 = vld [vmem:[%s7842_s2 + $0x488] sm:$0xff]  ;;  %v609_v44 = vld [vmem:[%s7842_s2 + $0x498] sm:$0xff]  ;;  %v4684_v46 = vpack.c.bf16 %v598_v38, %v590_v37  ;;  %v4748_v47 = vpack.c.bf16 %v600_v41, %v592_v39  ;;  %v606_v49 = vld [vmem:[%s7842_s2 + $0x480] sm:$0xff] }
  0x26   : > { %4673 = vmatpush1.bf16.msra.mxu0 %v4672_v10  ;;  %v615_v43 = vld [vmem:[%s7842_s2 + $0x4c8] sm:$0xff]  ;;  %v617_v45 = vld [vmem:[%s7842_s2 + $0x4d8] sm:$0xff]  ;;  %v614_v50 = vld [vmem:[%s7842_s2 + $0x4c0] sm:$0xff] }
  0x27   : > { %4737 = vmatpush1.bf16.msra.mxu1 %v4736_v11  ;;  %4675 = vmatprep.subr.bf16.mxu0 %v4674_v12  ;;  %v4686_v48 = vpack.c.bf16 %v615_v43, %v607_v42  ;;  %v608_v51 = vld [vmem:[%s7842_s2 + $0x490] sm:$0xff]  ;;  %v4750_v52 = vpack.c.bf16 %v617_v45, %v609_v44  ;;  %v623_v54 = vld [vmem:[%s7842_s2 + $0x508] sm:$0xff]  ;;  %v625_v56 = vld [vmem:[%s7842_s2 + $0x518] sm:$0xff]  ;;  %v4688_v58 = vpack.c.bf16 %v614_v50, %v606_v49 }
  0x28   : > { %4739 = vmatprep.subr.bf16.mxu1 %v4738_v16  ;;  %v616_v53 = vld [vmem:[%s7842_s2 + $0x4d0] sm:$0xff]  ;;  %v631_v55 = vld [vmem:[%s7842_s2 + $0x548] sm:$0xff]  ;;  %v633_v57 = vld [vmem:[%s7842_s2 + $0x558] sm:$0xff] }
  0x29   : > { %v4752_v59 = vpack.c.bf16 %v616_v53, %v608_v51  ;;  %v4690_v60 = vpack.c.bf16 %v631_v55, %v623_v54  ;;  %v622_v61 = vld [vmem:[%s7842_s2 + $0x500] sm:$0xff]  ;;  %v624_v63 = vld [vmem:[%s7842_s2 + $0x510] sm:$0xff]  ;;  %v4754_v0 = vpack.c.bf16 %v633_v57, %v625_v56  ;;  %v639_v2 = vld [vmem:[%s7842_s2 + $0x588] sm:$0xff] }
  0x2a   : > { %4677 = vmatpush1.bf16.msra.mxu0 %v4676_v22  ;;  %v630_v62 = vld [vmem:[%s7842_s2 + $0x540] sm:$0xff]  ;;  %v632_v1 = vld [vmem:[%s7842_s2 + $0x550] sm:$0xff]  ;;  %v647_v3 = vld [vmem:[%s7842_s2 + $0x5c8] sm:$0xff] }
  0x2b   : > { %4741 = vmatpush1.bf16.msra.mxu1 %v4740_v23  ;;  %4679 = vmatprep.subr.bf16.mxu0 %v4678_v24  ;;  %v641_v4 = vld [vmem:[%s7842_s2 + $0x598] sm:$0xff]  ;;  %v4692_v6 = vpack.c.bf16 %v630_v62, %v622_v61  ;;  %v638_v7 = vld [vmem:[%s7842_s2 + $0x580] sm:$0xff]  ;;  %v4756_v8 = vpack.c.bf16 %v632_v1, %v624_v63  ;;  %v4694_v9 = vpack.c.bf16 %v647_v3, %v639_v2  ;;  %v640_v11 = vld [vmem:[%s7842_s2 + $0x590] sm:$0xff] }
  0x2c   : > { %4743 = vmatprep.subr.bf16.mxu1 %v4742_v28  ;;  %v649_v5 = vld [vmem:[%s7842_s2 + $0x5d8] sm:$0xff]  ;;  %v646_v10 = vld [vmem:[%s7842_s2 + $0x5c0] sm:$0xff]  ;;  %v648_v12 = vld [vmem:[%s7842_s2 + $0x5d0] sm:$0xff] }
  0x2d   : > { %v4758_v13 = vpack.c.bf16 %v649_v5, %v641_v4  ;;  %v655_v14 = vld [vmem:[%s7842_s2 + $0x608] sm:$0xff]  ;;  %v5465_v16 = vld [vmem:[%s455_s28] sm:$0xff]  ;;  %v657_v17 = vld [vmem:[%s7842_s2 + $0x618] sm:$0xff]  ;;  %v4696_v20 = vpack.c.bf16 %v646_v10, %v638_v7  ;;  %v4760_v21 = vpack.c.bf16 %v648_v12, %v640_v11  ;;  %s5959_s28 = scalar_lea.vmem %s7840_s0, %s7871_s19 }
  0x2e   : > { %4681 = vmatpush1.bf16.msra.mxu0 %v4680_v34  ;;  %v663_v15 = vld [vmem:[%s7842_s2 + $0x648] sm:$0xff]  ;;  %v665_v18 = vld [vmem:[%s7842_s2 + $0x658] sm:$0xff]  ;;  %v5475_v19 = vcombine.high %v5465_v16, %v5465_v16  ;;  %v654_v23 = vld [vmem:[%s7842_s2 + $0x600] sm:$0xff] }
  0x2f   : > { %4745 = vmatpush1.bf16.msra.mxu1 %v4744_v35  ;;  %4683 = vmatprep.subr.bf16.mxu0 %v4682_v36  ;;  %v4698_v22 = vpack.c.bf16 %v663_v15, %v655_v14  ;;  %v662_v24 = vld [vmem:[%s7842_s2 + $0x640] sm:$0xff]  ;;  %v656_v25 = vld [vmem:[%s7842_s2 + $0x610] sm:$0xff]  ;;  %v4762_v26 = vpack.c.bf16 %v665_v18, %v657_v17  ;;  %v671_v28 = vld [vmem:[%s7842_s2 + $0x688] sm:$0xff] }
  0x30   : > { %4747 = vmatprep.subr.bf16.mxu1 %v4746_v40  ;;  %v664_v27 = vld [vmem:[%s7842_s2 + $0x650] sm:$0xff]  ;;  %v679_v29 = vld [vmem:[%s7842_s2 + $0x6c8] sm:$0xff]  ;;  %785 = vmatprep.mubr.f32.mxu0 %v5475_v19  ;;  %v673_v30 = vld [vmem:[%s7842_s2 + $0x698] sm:$0xff]  ;;  %v4700_v32 = vpack.c.bf16 %v662_v24, %v654_v23 }
  0x31   : > { %v681_v31 = vld [vmem:[%s7842_s2 + $0x6d8] sm:$0xff]  ;;  %856 = vmatprep.mubr.f32.mxu1 %v5475_v19  ;;  %v4764_v33 = vpack.c.bf16 %v664_v27, %v656_v25  ;;  %v4702_v34 = vpack.c.bf16 %v679_v29, %v671_v28  ;;  %v670_v35 = vld [vmem:[%s7842_s2 + $0x680] sm:$0xff]  ;;  %v672_v37 = vld [vmem:[%s7842_s2 + $0x690] sm:$0xff] }
  0x32   : > { %4685 = vmatpush1.bf16.msra.mxu0 %v4684_v46  ;;  %v678_v36 = vld [vmem:[%s7842_s2 + $0x6c0] sm:$0xff]  ;;  %v4766_v38 = vpack.c.bf16 %v681_v31, %v673_v30  ;;  %v680_v39 = vld [vmem:[%s7842_s2 + $0x6d0] sm:$0xff]  ;;  %v687_v40 = vld [vmem:[%s7842_s2 + $0x708] sm:$0xff] }
  0x33   : > { %4749 = vmatpush1.bf16.msra.mxu1 %v4748_v47  ;;  %4687 = vmatprep.subr.bf16.mxu0 %v4686_v48  ;;  %v695_v41 = vld [vmem:[%s7842_s2 + $0x748] sm:$0xff]  ;;  %v689_v42 = vld [vmem:[%s7842_s2 + $0x718] sm:$0xff]  ;;  %v4704_v44 = vpack.c.bf16 %v678_v36, %v670_v35  ;;  %v4768_v45 = vpack.c.bf16 %v680_v39, %v672_v37  ;;  %v686_v47 = vld [vmem:[%s7842_s2 + $0x700] sm:$0xff] }
  0x34   : > { %4751 = vmatprep.subr.bf16.mxu1 %v4750_v52  ;;  %v697_v43 = vld [vmem:[%s7842_s2 + $0x758] sm:$0xff]  ;;  %v4706_v46 = vpack.c.bf16 %v695_v41, %v687_v40  ;;  %v694_v48 = vld [vmem:[%s7842_s2 + $0x740] sm:$0xff]  ;;  %v688_v49 = vld [vmem:[%s7842_s2 + $0x710] sm:$0xff] }
  0x35   : > { %v4770_v50 = vpack.c.bf16 %v697_v43, %v689_v42  ;;  %v696_v51 = vld [vmem:[%s7842_s2 + $0x750] sm:$0xff]  ;;  %v703_v52 = vld [vmem:[%s7842_s2 + $0x788] sm:$0xff]  ;;  %v705_v54 = vld [vmem:[%s7842_s2 + $0x798] sm:$0xff]  ;;  %v4708_v56 = vpack.c.bf16 %v694_v48, %v686_v47 }
  0x36   : > { %4689 = vmatpush1.bf16.msra.mxu0 %v4688_v58  ;;  %v711_v53 = vld [vmem:[%s7842_s2 + $0x7c8] sm:$0xff]  ;;  %v713_v55 = vld [vmem:[%s7842_s2 + $0x7d8] sm:$0xff]  ;;  %v4772_v57 = vpack.c.bf16 %v696_v51, %v688_v49  ;;  %v704_v61 = vld [vmem:[%s7842_s2 + $0x790] sm:$0xff] }
  0x37   : > { %4753 = vmatpush1.bf16.msra.mxu1 %v4752_v59  ;;  %4691 = vmatprep.subr.bf16.mxu0 %v4690_v60  ;;  %v4710_v58 = vpack.c.bf16 %v711_v53, %v703_v52  ;;  %v702_v59 = vld [vmem:[%s7842_s2 + $0x780] sm:$0xff]  ;;  %v4774_v62 = vpack.c.bf16 %v713_v55, %v705_v54  ;;  %v712_v63 = vld [vmem:[%s7842_s2 + $0x7d0] sm:$0xff]  ;;  %v475_v1 = vld [vmem:[%s7842_s2 + $0x68] sm:$0xff] }
  0x38   : > { %4755 = vmatprep.subr.bf16.mxu1 %v4754_v0  ;;  %v710_v60 = vld [vmem:[%s7842_s2 + $0x7c0] sm:$0xff]  ;;  %v467_v0 = vld [vmem:[%s7842_s2 + $0x28] sm:$0xff]  ;;  %v469_v2 = vld [vmem:[%s7842_s2 + $0x38] sm:$0xff]  ;;  %v4776_v5 = vpack.c.bf16 %v712_v63, %v704_v61 }
  0x39   : > { %v477_v3 = vld [vmem:[%s7842_s2 + $0x78] sm:$0xff]  ;;  %v4712_v4 = vpack.c.bf16 %v710_v60, %v702_v59  ;;  %v466_v7 = vld [vmem:[%s7842_s2 + $0x20] sm:$0xff]  ;;  %v491_v10 = vld [vmem:[%s7842_s2 + $0xe8] sm:$0xff] }
  0x3a   : > { %4693 = vmatpush1.bf16.msra.mxu0 %v4692_v6  ;;  %v4778_v6 = vpack.c.bf16 %v475_v1, %v467_v0  ;;  %v4842_v11 = vpack.c.bf16 %v477_v3, %v469_v2  ;;  %v468_v12 = vld [vmem:[%s7842_s2 + $0x30] sm:$0xff]  ;;  %v485_v14 = vld [vmem:[%s7842_s2 + $0xb8] sm:$0xff]  ;;  %v507_v24 = vld [vmem:[%s7842_s2 + $0x168] sm:$0xff] }
  0x3b   : > { %4757 = vmatpush1.bf16.msra.mxu1 %v4756_v8  ;;  %4695 = vmatprep.subr.bf16.mxu0 %v4694_v9  ;;  %v474_v8 = vld [vmem:[%s7842_s2 + $0x60] sm:$0xff]  ;;  %v483_v9 = vld [vmem:[%s7842_s2 + $0xa8] sm:$0xff]  ;;  %v493_v15 = vld [vmem:[%s7842_s2 + $0xf8] sm:$0xff] }
  0x3c   : > { %4759 = vmatprep.subr.bf16.mxu1 %v4758_v13  ;;  %v476_v13 = vld [vmem:[%s7842_s2 + $0x70] sm:$0xff]  ;;  %v4780_v17 = vpack.c.bf16 %v474_v8, %v466_v7  ;;  %v4782_v18 = vpack.c.bf16 %v491_v10, %v483_v9  ;;  %v4846_v25 = vpack.c.bf16 %v493_v15, %v485_v14  ;;  %v501_v28 = vld [vmem:[%s7842_s2 + $0x138] sm:$0xff]  ;;  %v523_v36 = vld [vmem:[%s7842_s2 + $0x1e8] sm:$0xff] }
  0x3d   : > { %v4844_v23 = vpack.c.bf16 %v476_v13, %v468_v12  ;;  %v492_v27 = vld [vmem:[%s7842_s2 + $0xf0] sm:$0xff]  ;;  %v509_v29 = vld [vmem:[%s7842_s2 + $0x178] sm:$0xff]  ;;  %v530_v55 = vld [vmem:[%s7842_s2 + $0x220] sm:$0xff] }
  0x3e   : > { %4697 = vmatpush1.bf16.msra.mxu0 %v4696_v20  ;;  %v482_v20 = vld [vmem:[%s7842_s2 + $0xa0] sm:$0xff]  ;;  %v4850_v37 = vpack.c.bf16 %v509_v29, %v501_v28  ;;  %v508_v39 = vld [vmem:[%s7842_s2 + $0x170] sm:$0xff]  ;;  %v517_v40 = vld [vmem:[%s7842_s2 + $0x1b8] sm:$0xff] }
  0x3f   : > { %4761 = vmatpush1.bf16.msra.mxu1 %v4760_v21  ;;  %4699 = vmatprep.subr.bf16.mxu0 %v4698_v22  ;;  %v490_v21 = vld [vmem:[%s7842_s2 + $0xe0] sm:$0xff]  ;;  %v499_v22 = vld [vmem:[%s7842_s2 + $0x128] sm:$0xff]  ;;  %v525_v41 = vld [vmem:[%s7842_s2 + $0x1f8] sm:$0xff] }
  0x40   : > { %4763 = vmatprep.subr.bf16.mxu1 %v4762_v26  ;;  %v484_v26 = vld [vmem:[%s7842_s2 + $0xb0] sm:$0xff]  ;;  %v4784_v30 = vpack.c.bf16 %v490_v21, %v482_v20  ;;  %v4786_v31 = vpack.c.bf16 %v507_v24, %v499_v22  ;;  %v4854_v48 = vpack.c.bf16 %v525_v41, %v517_v40  ;;  %v533_v51 = vld [vmem:[%s7842_s2 + $0x238] sm:$0xff]  ;;  %v555_v59 = vld [vmem:[%s7842_s2 + $0x2e8] sm:$0xff] }
  0x41   : > { %v4848_v35 = vpack.c.bf16 %v492_v27, %v484_v26  ;;  %v516_v49 = vld [vmem:[%s7842_s2 + $0x1b0] sm:$0xff]  ;;  %v541_v52 = vld [vmem:[%s7842_s2 + $0x278] sm:$0xff]  ;;  %v546_v3 = vld [vmem:[%s7842_s2 + $0x2a0] sm:$0xff] }
  0x42   : > { %4701 = vmatpush1.bf16.msra.mxu0 %v4700_v32  ;;  %v498_v32 = vld [vmem:[%s7842_s2 + $0x120] sm:$0xff]  ;;  %v4858_v60 = vpack.c.bf16 %v541_v52, %v533_v51  ;;  %v532_v61 = vld [vmem:[%s7842_s2 + $0x230] sm:$0xff]  ;;  %v549_v63 = vld [vmem:[%s7842_s2 + $0x2b8] sm:$0xff] }
  0x43   : > { %4765 = vmatpush1.bf16.msra.mxu1 %v4764_v33  ;;  %4703 = vmatprep.subr.bf16.mxu0 %v4702_v34  ;;  %v506_v33 = vld [vmem:[%s7842_s2 + $0x160] sm:$0xff]  ;;  %v515_v34 = vld [vmem:[%s7842_s2 + $0x1a8] sm:$0xff]  ;;  %v557_v0 = vld [vmem:[%s7842_s2 + $0x2f8] sm:$0xff] }
  0x44   : > { %4767 = vmatprep.subr.bf16.mxu1 %v4766_v38  ;;  %v500_v38 = vld [vmem:[%s7842_s2 + $0x130] sm:$0xff]  ;;  %v4788_v42 = vpack.c.bf16 %v506_v33, %v498_v32  ;;  %v4790_v43 = vpack.c.bf16 %v523_v36, %v515_v34  ;;  %v571_v7 = vld [vmem:[%s7842_s2 + $0x368] sm:$0xff]  ;;  %v4862_v8 = vpack.c.bf16 %v557_v0, %v549_v63  ;;  %v573_v12 = vld [vmem:[%s7842_s2 + $0x378] sm:$0xff] }
  0x45   : > { %v4852_v47 = vpack.c.bf16 %v508_v39, %v500_v38  ;;  %v548_v9 = vld [vmem:[%s7842_s2 + $0x2b0] sm:$0xff]  ;;  %v562_v15 = vld [vmem:[%s7842_s2 + $0x320] sm:$0xff]  ;;  %v587_v21 = vld [vmem:[%s7842_s2 + $0x3e8] sm:$0xff] }
  0x46   : > { %4705 = vmatpush1.bf16.msra.mxu0 %v4704_v44  ;;  %v514_v44 = vld [vmem:[%s7842_s2 + $0x1a0] sm:$0xff]  ;;  %v556_v10 = vld [vmem:[%s7842_s2 + $0x2f0] sm:$0xff]  ;;  %v589_v26 = vld [vmem:[%s7842_s2 + $0x3f8] sm:$0xff] }
  0x47   : > { %4769 = vmatpush1.bf16.msra.mxu1 %v4768_v45  ;;  %4707 = vmatprep.subr.bf16.mxu0 %v4706_v46  ;;  %v522_v45 = vld [vmem:[%s7842_s2 + $0x1e0] sm:$0xff]  ;;  %v531_v46 = vld [vmem:[%s7842_s2 + $0x228] sm:$0xff]  ;;  %v4864_v20 = vpack.c.bf16 %v556_v10, %v548_v9  ;;  %v572_v24 = vld [vmem:[%s7842_s2 + $0x370] sm:$0xff] }
  0x48   : > { %4771 = vmatprep.subr.bf16.mxu1 %v4770_v50  ;;  %v524_v50 = vld [vmem:[%s7842_s2 + $0x1f0] sm:$0xff]  ;;  %v4792_v53 = vpack.c.bf16 %v522_v45, %v514_v44  ;;  %v578_v29 = vld [vmem:[%s7842_s2 + $0x3a0] sm:$0xff]  ;;  %v603_v33 = vld [vmem:[%s7842_s2 + $0x468] sm:$0xff] }
  0x49   : > { %v588_v36 = vld [vmem:[%s7842_s2 + $0x3f0] sm:$0xff]  ;;  %v605_v38 = vld [vmem:[%s7842_s2 + $0x478] sm:$0xff]  ;;  %v594_v41 = vld [vmem:[%s7842_s2 + $0x420] sm:$0xff] }
  0x4a   : > { %4709 = vmatpush1.bf16.msra.mxu0 %v4708_v56  ;;  %v538_v56 = vld [vmem:[%s7842_s2 + $0x260] sm:$0xff]  ;;  %v619_v45 = vld [vmem:[%s7842_s2 + $0x4e8] sm:$0xff]  ;;  %v653_v9 = vld [vmem:[%s7842_s2 + $0x5f8] sm:$0xff] }
  0x4b   : > { %4773 = vmatpush1.bf16.msra.mxu1 %v4772_v57  ;;  %4711 = vmatprep.subr.bf16.mxu0 %v4710_v58  ;;  %v547_v57 = vld [vmem:[%s7842_s2 + $0x2a8] sm:$0xff]  ;;  %v4856_v58 = vpack.c.bf16 %v524_v50, %v516_v49  ;;  %v4796_v1 = vpack.c.bf16 %v538_v56, %v530_v55  ;;  %v621_v49 = vld [vmem:[%s7842_s2 + $0x4f8] sm:$0xff]  ;;  %v610_v52 = vld [vmem:[%s7842_s2 + $0x4a0] sm:$0xff] }
  0x4c   : > { %4775 = vmatprep.subr.bf16.mxu1 %v4774_v62  ;;  %v540_v62 = vld [vmem:[%s7842_s2 + $0x270] sm:$0xff]  ;;  %v4798_v2 = vpack.c.bf16 %v555_v59, %v547_v57  ;;  %v635_v56 = vld [vmem:[%s7842_s2 + $0x568] sm:$0xff]  ;;  %v626_v0 = vld [vmem:[%s7842_s2 + $0x520] sm:$0xff] }
  0x4d   : > { %v620_v59 = vld [vmem:[%s7842_s2 + $0x4f0] sm:$0xff] }
  0x4e   : > { %4713 = vmatpush1.bf16.msra.mxu0 %v4712_v4  ;;  %v554_v4 = vld [vmem:[%s7842_s2 + $0x2e0] sm:$0xff] }
  0x4f   : > { %4777 = vmatpush1.bf16.msra.mxu1 %v4776_v5  ;;  %4779 = vmatprep.subr.bf16.mxu0 %v4778_v6  ;;  %v563_v5 = vld [vmem:[%s7842_s2 + $0x328] sm:$0xff]  ;;  %v4860_v6 = vpack.c.bf16 %v540_v62, %v532_v61  ;;  %v4800_v13 = vpack.c.bf16 %v554_v4, %v546_v3  ;;  %v637_v61 = vld [vmem:[%s7842_s2 + $0x578] sm:$0xff] }
  0x50   : > { %4843 = vmatprep.subr.bf16.mxu1 %v4842_v11  ;;  %v565_v11 = vld [vmem:[%s7842_s2 + $0x338] sm:$0xff]  ;;  %v4802_v14 = vpack.c.bf16 %v571_v7, %v563_v5  ;;  %v651_v4 = vld [vmem:[%s7842_s2 + $0x5e8] sm:$0xff]  ;;  %v636_v7 = vld [vmem:[%s7842_s2 + $0x570] sm:$0xff] }
  0x51   : > { %786 = vmatmul.mubr.f32.vlgmr.msra.gmra.mrb[0].mxu0 %v5465_v16  ;;  %v4866_v22 = vpack.c.bf16 %v573_v12, %v565_v11  ;;  %v642_v12 = vld [vmem:[%s7842_s2 + $0x5a0] sm:$0xff] }
  0x52   : > { %857 = vmatmul.mubr.f32.vlgmr.msra.gmra.mrb[0].mxu1 %v5465_v16  ;;  %4781 = vmatpush1.bf16.msra.mxu0 %v4780_v17  ;;  %v570_v17 = vld [vmem:[%s7842_s2 + $0x360] sm:$0xff] }
  0x53   : > { %4783 = vmatprep.subr.bf16.mxu0 %v4782_v18  ;;  %4845 = vmatpush1.bf16.msra.mxu1 %v4844_v23  ;;  %v579_v18 = vld [vmem:[%s7842_s2 + $0x3a8] sm:$0xff]  ;;  %v564_v23 = vld [vmem:[%s7842_s2 + $0x330] sm:$0xff]  ;;  %v4804_v27 = vpack.c.bf16 %v570_v17, %v562_v15 }
  0x54   : > { %4847 = vmatprep.subr.bf16.mxu1 %v4846_v25  ;;  %927 = vmatprep.mubr.f32.mxu0 %v5475_v19  ;;  %v581_v25 = vld [vmem:[%s7842_s2 + $0x3b8] sm:$0xff]  ;;  %v4806_v28 = vpack.c.bf16 %v587_v21, %v579_v18  ;;  %v4868_v32 = vpack.c.bf16 %v572_v24, %v564_v23  ;;  %v667_v17 = vld [vmem:[%s7842_s2 + $0x668] sm:$0xff]  ;;  %v652_v21 = vld [vmem:[%s7842_s2 + $0x5f0] sm:$0xff] }
  0x55   : > { %998 = vmatprep.mubr.f32.mxu1 %v5475_v19  ;;  %v539_v19 = vld [vmem:[%s7842_s2 + $0x268] sm:$0xff]  ;;  %v4870_v34 = vpack.c.bf16 %v589_v26, %v581_v25  ;;  %v669_v23 = vld [vmem:[%s7842_s2 + $0x678] sm:$0xff]  ;;  %v658_v26 = vld [vmem:[%s7842_s2 + $0x620] sm:$0xff] }
  0x56   : > { %4785 = vmatpush1.bf16.msra.mxu0 %v4784_v30  ;;  %v4794_v54 = vpack.c.bf16 %v539_v19, %v531_v46  ;;  %v586_v30 = vld [vmem:[%s7842_s2 + $0x3e0] sm:$0xff]  ;;  %v604_v19 = vld [vmem:[%s7842_s2 + $0x470] sm:$0xff] }
  0x57   : > { %4787 = vmatprep.subr.bf16.mxu0 %v4786_v31  ;;  %4849 = vmatpush1.bf16.msra.mxu1 %v4848_v35  ;;  %v595_v31 = vld [vmem:[%s7842_s2 + $0x428] sm:$0xff]  ;;  %v580_v35 = vld [vmem:[%s7842_s2 + $0x3b0] sm:$0xff]  ;;  %v4808_v39 = vpack.c.bf16 %v586_v30, %v578_v29 }
  0x58   : > { %4851 = vmatprep.subr.bf16.mxu1 %v4850_v37  ;;  %v597_v37 = vld [vmem:[%s7842_s2 + $0x438] sm:$0xff]  ;;  %v4810_v40 = vpack.c.bf16 %v603_v33, %v595_v31  ;;  %v4872_v44 = vpack.c.bf16 %v588_v36, %v580_v35  ;;  %v683_v30 = vld [vmem:[%s7842_s2 + $0x6e8] sm:$0xff]  ;;  %v668_v33 = vld [vmem:[%s7842_s2 + $0x670] sm:$0xff] }
  0x59   : > { %v4874_v46 = vpack.c.bf16 %v605_v38, %v597_v37  ;;  %v685_v35 = vld [vmem:[%s7842_s2 + $0x6f8] sm:$0xff]  ;;  %v674_v38 = vld [vmem:[%s7842_s2 + $0x6a0] sm:$0xff] }
  0x5a   : > { %4789 = vmatpush1.bf16.msra.mxu0 %v4788_v42  ;;  %v602_v42 = vld [vmem:[%s7842_s2 + $0x460] sm:$0xff] }
  0x5b   : > { %4791 = vmatprep.subr.bf16.mxu0 %v4790_v43  ;;  %4853 = vmatpush1.bf16.msra.mxu1 %v4852_v47  ;;  %v611_v43 = vld [vmem:[%s7842_s2 + $0x4a8] sm:$0xff]  ;;  %v596_v47 = vld [vmem:[%s7842_s2 + $0x430] sm:$0xff]  ;;  %v4812_v50 = vpack.c.bf16 %v602_v42, %v594_v41 }
  0x5c   : > { %4855 = vmatprep.subr.bf16.mxu1 %v4854_v48  ;;  %v613_v48 = vld [vmem:[%s7842_s2 + $0x4b8] sm:$0xff]  ;;  %v4814_v51 = vpack.c.bf16 %v619_v45, %v611_v43  ;;  %v4876_v55 = vpack.c.bf16 %v604_v19, %v596_v47  ;;  %v699_v42 = vld [vmem:[%s7842_s2 + $0x768] sm:$0xff]  ;;  %v684_v45 = vld [vmem:[%s7842_s2 + $0x6f0] sm:$0xff] }
  0x5d   : > { %v4878_v57 = vpack.c.bf16 %v621_v49, %v613_v48  ;;  %v701_v47 = vld [vmem:[%s7842_s2 + $0x778] sm:$0xff]  ;;  %v690_v49 = vld [vmem:[%s7842_s2 + $0x720] sm:$0xff] }
  0x5e   : > { %4793 = vmatpush1.bf16.msra.mxu0 %v4792_v53  ;;  %v618_v53 = vld [vmem:[%s7842_s2 + $0x4e0] sm:$0xff] }
  0x5f   : > { %4795 = vmatprep.subr.bf16.mxu0 %v4794_v54  ;;  %4857 = vmatpush1.bf16.msra.mxu1 %v4856_v58  ;;  %v627_v54 = vld [vmem:[%s7842_s2 + $0x528] sm:$0xff]  ;;  %v612_v58 = vld [vmem:[%s7842_s2 + $0x4b0] sm:$0xff]  ;;  %v4816_v62 = vpack.c.bf16 %v618_v53, %v610_v52 }
  0x60   : > { %4859 = vmatprep.subr.bf16.mxu1 %v4858_v60  ;;  %v629_v60 = vld [vmem:[%s7842_s2 + $0x538] sm:$0xff]  ;;  %v4818_v63 = vpack.c.bf16 %v635_v56, %v627_v54  ;;  %v4880_v3 = vpack.c.bf16 %v620_v59, %v612_v58  ;;  %v715_v53 = vld [vmem:[%s7842_s2 + $0x7e8] sm:$0xff]  ;;  %v700_v56 = vld [vmem:[%s7842_s2 + $0x770] sm:$0xff] }
  0x61   : > { %v4882_v5 = vpack.c.bf16 %v637_v61, %v629_v60  ;;  %v717_v58 = vld [vmem:[%s7842_s2 + $0x7f8] sm:$0xff]  ;;  %v706_v61 = vld [vmem:[%s7842_s2 + $0x7a0] sm:$0xff] }
  0x62   : > { %4797 = vmatpush1.bf16.msra.mxu0 %v4796_v1  ;;  %v634_v1 = vld [vmem:[%s7842_s2 + $0x560] sm:$0xff] }
  0x63   : > { %4799 = vmatprep.subr.bf16.mxu0 %v4798_v2  ;;  %4861 = vmatpush1.bf16.msra.mxu1 %v4860_v6  ;;  %v643_v2 = vld [vmem:[%s7842_s2 + $0x5a8] sm:$0xff]  ;;  %v628_v6 = vld [vmem:[%s7842_s2 + $0x530] sm:$0xff]  ;;  %v4820_v10 = vpack.c.bf16 %v634_v1, %v626_v0 }
  0x64   : > { %4863 = vmatprep.subr.bf16.mxu1 %v4862_v8  ;;  %v645_v8 = vld [vmem:[%s7842_s2 + $0x5b8] sm:$0xff]  ;;  %v4822_v11 = vpack.c.bf16 %v651_v4, %v643_v2  ;;  %v4884_v15 = vpack.c.bf16 %v636_v7, %v628_v6  ;;  %v708_v1 = vld [vmem:[%s7842_s2 + $0x7b0] sm:$0xff]  ;;  %v1006_v6 = vld [vmem:[%s5959_s28 + $0x8] sm:$0xff] }
  0x65   : > { %v4886_v18 = vpack.c.bf16 %v653_v9, %v645_v8  ;;  %v716_v2 = vld [vmem:[%s7842_s2 + $0x7f0] sm:$0xff] }
  0x66   : > { %4801 = vmatpush1.bf16.msra.mxu0 %v4800_v13  ;;  %v650_v13 = vld [vmem:[%s7842_s2 + $0x5e0] sm:$0xff]  ;;  %v4904_v4 = vpack.c.bf16 %v716_v2, %v708_v1 }
  0x67   : > { %4803 = vmatprep.subr.bf16.mxu0 %v4802_v14  ;;  %4865 = vmatpush1.bf16.msra.mxu1 %v4864_v20  ;;  %v659_v14 = vld [vmem:[%s7842_s2 + $0x628] sm:$0xff]  ;;  %v644_v20 = vld [vmem:[%s7842_s2 + $0x5b0] sm:$0xff]  ;;  %v4824_v24 = vpack.c.bf16 %v650_v13, %v642_v12 }
  0x68   : > { %4867 = vmatprep.subr.bf16.mxu1 %v4866_v22  ;;  %v661_v22 = vld [vmem:[%s7842_s2 + $0x638] sm:$0xff]  ;;  %v4826_v25 = vpack.c.bf16 %v667_v17, %v659_v14  ;;  %v4888_v29 = vpack.c.bf16 %v652_v21, %v644_v20 }
  0x69   : > { %v4890_v31 = vpack.c.bf16 %v669_v23, %v661_v22  ;;  %v1007_v22 = vld [vmem:[%s5959_s28 + $0x10] sm:$0xff]  ;;  %v1008_v23 = vld [vmem:[%s5959_s28 + $0x18] sm:$0xff] }
  0x6a   : > { %4805 = vmatpush1.bf16.msra.mxu0 %v4804_v27  ;;  %v666_v27 = vld [vmem:[%s7842_s2 + $0x660] sm:$0xff] }
  0x6b   : > { %4807 = vmatprep.subr.bf16.mxu0 %v4806_v28  ;;  %4869 = vmatpush1.bf16.msra.mxu1 %v4868_v32  ;;  %v675_v28 = vld [vmem:[%s7842_s2 + $0x6a8] sm:$0xff]  ;;  %v660_v32 = vld [vmem:[%s7842_s2 + $0x630] sm:$0xff]  ;;  %v4828_v36 = vpack.c.bf16 %v666_v27, %v658_v26 }
  0x6c   : > { %4871 = vmatprep.subr.bf16.mxu1 %v4870_v34  ;;  %v677_v34 = vld [vmem:[%s7842_s2 + $0x6b8] sm:$0xff]  ;;  %v4830_v37 = vpack.c.bf16 %v683_v30, %v675_v28  ;;  %v4892_v41 = vpack.c.bf16 %v668_v33, %v660_v32 }
  0x6d   : > { %v4894_v43 = vpack.c.bf16 %v685_v35, %v677_v34 }
  0x6e   : > { %4809 = vmatpush1.bf16.msra.mxu0 %v4808_v39  ;;  %v682_v39 = vld [vmem:[%s7842_s2 + $0x6e0] sm:$0xff] }
  0x6f   : > { %4811 = vmatprep.subr.bf16.mxu0 %v4810_v40  ;;  %4873 = vmatpush1.bf16.msra.mxu1 %v4872_v44  ;;  %v691_v40 = vld [vmem:[%s7842_s2 + $0x728] sm:$0xff]  ;;  %v676_v44 = vld [vmem:[%s7842_s2 + $0x6b0] sm:$0xff]  ;;  %v4832_v19 = vpack.c.bf16 %v682_v39, %v674_v38  ;;  %v7854_v38 = vmov 0.0  }
  0x70   : > { %4875 = vmatprep.subr.bf16.mxu1 %v4874_v46  ;;  %v693_v46 = vld [vmem:[%s7842_s2 + $0x738] sm:$0xff]  ;;  %v4834_v48 = vpack.c.bf16 %v699_v42, %v691_v40  ;;  %v4896_v52 = vpack.c.bf16 %v684_v45, %v676_v44 }
  0x71   : > { %v4898_v54 = vpack.c.bf16 %v701_v47, %v693_v46  ;;  %v1084_v44 = vld [vmem:[%s7843_s3] ss:$8 sm:$0xf] }
  0x72   : > { %4813 = vmatpush1.bf16.msra.mxu0 %v4812_v50  ;;  %v698_v50 = vld [vmem:[%s7842_s2 + $0x760] sm:$0xff] }
  0x73   : > { %4815 = vmatprep.subr.bf16.mxu0 %v4814_v51  ;;  %4877 = vmatpush1.bf16.msra.mxu1 %v4876_v55  ;;  %v707_v51 = vld [vmem:[%s7842_s2 + $0x7a8] sm:$0xff]  ;;  %v692_v55 = vld [vmem:[%s7842_s2 + $0x730] sm:$0xff]  ;;  %v4836_v59 = vpack.c.bf16 %v698_v50, %v690_v49 }
  0x74   : > { %4879 = vmatprep.subr.bf16.mxu1 %v4878_v57  ;;  %v709_v57 = vld [vmem:[%s7842_s2 + $0x7b8] sm:$0xff]  ;;  %v4838_v60 = vpack.c.bf16 %v715_v53, %v707_v51 }
  0x75   : > { %v4902_v0 = vpack.c.bf16 %v717_v58, %v709_v57  ;;  %v1085_v47 = vld [vmem:[%s7843_s3] ss:$8 sm:$0xf0] }
  0x76   : > { %4817 = vmatpush1.bf16.msra.mxu0 %v4816_v62  ;;  %v714_v62 = vld [vmem:[%s7842_s2 + $0x7e0] sm:$0xff]  ;;  %v6113_v50 = vor.u32 %v1085_v47, %v1084_v44 }
  0x77   : > { %4819 = vmatprep.subr.bf16.mxu0 %v4818_v63  ;;  %4881 = vmatpush1.bf16.msra.mxu1 %v4880_v3  ;;  %v4900_v63 = vpack.c.bf16 %v700_v56, %v692_v55  ;;  %v4840_v3 = vpack.c.bf16 %v714_v62, %v706_v61  ;;  %v1056_v55 = vld [vmem:[%s7846_s6] sm:$0xf] }
  0x78   : > { %4883 = vmatprep.subr.bf16.mxu1 %v4882_v5  ;;  %v1005_v5 = vld [vmem:[%s5959_s28] sm:$0xff] }
  0x79   : > { %v1013_v8 = vcombine.high %v1005_v5, %v1005_v5  ;;  %v1055_v61 = vld [vmem:[%s7845_s5] sm:$0xf] }
  0x7a   : > { %4821 = vmatpush1.bf16.msra.mxu0 %v4820_v10 }
  0x7b   : > { %4823 = vmatprep.subr.bf16.mxu0 %v4822_v11  ;;  %4885 = vmatpush1.bf16.msra.mxu1 %v4884_v15  ;;  %v1014_v11 = vcombine.high %v1006_v6, %v1006_v6 }
  0x7c   : > { %4887 = vmatprep.subr.bf16.mxu1 %v4886_v18 }
  0x7e   : > { %4825 = vmatpush1.bf16.msra.mxu0 %v4824_v24 }
  0x7f   : > { %4827 = vmatprep.subr.bf16.mxu0 %v4826_v25  ;;  %4889 = vmatpush1.bf16.msra.mxu1 %v4888_v29  ;;  %v1015_v25 = vcombine.high %v1007_v22, %v1007_v22  ;;  %v1016_v29 = vcombine.high %v1008_v23, %v1008_v23 }
  0x80   : > { %4891 = vmatprep.subr.bf16.mxu1 %v4890_v31 }
  0x82   : > { %4829 = vmatpush1.bf16.msra.mxu0 %v4828_v36 }
  0x83   : > { %4831 = vmatprep.subr.bf16.mxu0 %v4830_v37  ;;  %4893 = vmatpush1.bf16.msra.mxu1 %v4892_v41  ;;  %v1073_v41 = vlaneseq }
  0x84   : > { %4895 = vmatprep.subr.bf16.mxu1 %v4894_v43 }
  0x85   : > { %v6100_v45 = vshrl.u32 %v1073_v41, 7  ;;  %v6109_v49 = vand.u32 127, %v1073_v41 }
  0x86   : > { %4833 = vmatpush1.bf16.msra.mxu0 %v4832_v19 }
  0x87   : > { %4835 = vmatprep.subr.bf16.mxu0 %v4834_v48  ;;  %4897 = vmatpush1.bf16.msra.mxu1 %v4896_v52  ;;  %v5076_v48 = vmov 0   ;;  %v6116_v51 = vsub.s32 3, %v6100_v45  ;;  %v4575_v52 = vld [vmem:[%s7843_s3 + $0x1] ss:$8 sm:$0xf]  ;;  %vm1075_vm1 = vcmp.lt.s32.totalorder %v6109_v49, 33 }
  0x88   : > { %4899 = vmatprep.subr.bf16.mxu1 %v4898_v54  ;;  %5052 = vset.pattern.permute.xlu0 %v5076_v48  ;;  %v4576_v54 = vld [vmem:[%s7843_s3 + $0x1] ss:$8 sm:$0xf0]  ;;  %v6136_v58 = vsub.s32 1, %v6100_v45  ;;  %vm1160_vm2 = vcmp.lt.s32.totalorder %v6109_v49, 32  ;;  %vm1246_vm3 = vcmp.lt.s32.totalorder %v6109_v49, 31 }
  0x89   : > { %5053 = vset.pattern.permute.xlu1 %v5076_v48  ;;  %7876 = vst [vmem:[#allocation4_spill] sm:$0xff] %v6116_v51  ;;  %v1103_v57 = vrot.slane %v6113_v50, %v6116_v51  ;;  %vm1332_vm4 = vcmp.lt.s32.totalorder %v6109_v49, 1  ;;  %vm1512_vm5 = vcmp.lt.s32.totalorder %v6109_v49, 97  ;;  %vm1426_vm6 = vcmp.lt.s32.totalorder %v6109_v49, 127 }
  0x8a   : > { %4837 = vmatpush1.bf16.msra.mxu0 %v4836_v59  ;;  %7878 = vst [vmem:[#allocation6_spill] sm:$0xff] %v6136_v58  ;;  %v6139_v59 = vsub.s32 2, %v6100_v45  ;;  %vm1598_vm7 = vcmp.lt.s32.totalorder %v6109_v49, 96  ;;  %vm1684_vm8 = vcmp.lt.s32.totalorder %v6109_v49, 95 }
  0x8b   : > { %4839 = vmatprep.subr.bf16.mxu0 %v4838_v60  ;;  %4901 = vmatpush1.bf16.msra.mxu1 %v4900_v63  ;;  %v6141_v60 = vor.u32 %v4576_v54, %v4575_v52  ;;  %v4583_v54 = vld [vmem:[%s7843_s3 + $0x6] ss:$8 sm:$0xf] }
  0x8c   : > { %4903 = vmatprep.subr.bf16.mxu1 %v4902_v0  ;;  %7879 = vst [vmem:[#allocation7_spill] sm:$0xff] %v6139_v59 }
  0x8d   : > { %v1181_v2 = vrot.slane %v6141_v60, %v6136_v58 }
  0x8e   : > { %4841 = vmatpush1.bf16.msra.mxu0 %v4840_v3  ;;  %v1185_v3 = vrot.slane %v6141_v60, %v6139_v59 }
  0x8f   : > { %4905 = vmatpush1.bf16.msra.mxu1 %v4904_v4 }
  0x91   : > { %928 = vmatmul.mubr.f32.vlgmr.msra.gmra.mrb[2].mxu0 %v5465_v16 }
  0x92   : > { %999 = vmatmul.mubr.f32.vlgmr.msra.gmra.mrb[2].mxu1 %v5465_v16  ;;  %1894 = vmatprep.mubr.f32.mxu0 %v7854_v38 }
  0x93   : > { %1965 = vmatprep.mubr.f32.mxu1 %v7854_v38 }
 0x124   : > { %v787_v7 = vpop.f32.mrb[0].mxu0 }
 0x125   : > { %v1029_v9 = vrot.slane %v787_v7, 4  ;;  %v858_v10 = vpop.f32.mrb[0].mxu1  ;;  %v789_v12 = vpop.f32.mrb[1].mxu0 }
 0x126   : > { %v1031_v13 = vrot.slane %v858_v10, 4  ;;  %v1030_v16 = vrot.slane %v789_v12, 4  ;;  %v860_v14 = vpop.f32.mrb[1].mxu1  ;;  %v1189_v12 = vrot.slane %v6141_v60, %v6116_v51 }
 0x127   : > { %v5964_v15 = vsel %vm1045_vm0, %v1005_v5, %v1029_v9  ;;  %v1032_v17 = vrot.slane %v860_v14, 4  ;;  %v4577_v5 = vld [vmem:[%s7843_s3 + $0x2] ss:$8 sm:$0xf] }
 0x128   : > { %1402 = vst [vmem:[#allocation2 + $0x100] sm:$0xff] %v5964_v15  ;;  %v5968_v18 = vsel %vm1045_vm0, %v1006_v6, %v1031_v13  ;;  %v5971_v20 = vsel %vm1045_vm0, %v1013_v8, %v1030_v16  ;;  %1057 = vrot.lane.b32.xlu0 %v5964_v15, %s5067_s22  ;;  %v4578_v6 = vld [vmem:[%s7843_s3 + $0x2] ss:$8 sm:$0xf0] }
 0x129   : > { %1404 = vst [vmem:[#allocation2 + $0x110] sm:$0xff] %v5968_v18  ;;  %1403 = vst [vmem:[#allocation2 + $0x108] sm:$0xff] %v5971_v20  ;;  %v5978_v21 = vsel %vm1045_vm0, %v1014_v11, %v1032_v17  ;;  %1061 = vrot.lane.b32.xlu1 %v5968_v18, %s5067_s22  ;;  %v6176_v13 = vor.u32 %v4578_v6, %v4577_v5 }
 0x12a   : > { %1405 = vst [vmem:[#allocation2 + $0x118] sm:$0xff] %v5978_v21 }
 0x12c   : > { %1144 = vrot.lane.b32.xlu0 %v5964_v15, %s5068_s23 }
 0x12d   : > { %1414 = vrot.lane.b32.xlu1 %v5968_v18, %s5069_s24 }
 0x130   : > { %1148 = vrot.lane.b32.xlu0 %v5968_v18, %s5068_s23 }
 0x131   : > { %1496 = vrot.lane.b32.xlu1 %v5964_v15, %s7872_s27 }
 0x134   : > { %1230 = vrot.lane.b32.xlu0 %v5964_v15, %s5071_s29 }
 0x135   : > { %1668 = vrot.lane.b32.xlu1 %v5964_v15, %s5072_s15 }
 0x138   : > { %1234 = vrot.lane.b32.xlu0 %v5968_v18, %s5071_s29 }
 0x139   : > { %1063 = vrot.lane.b32.xlu1 %v5978_v21, %s5067_s22 }
 0x13c   : > { %1316 = vrot.lane.b32.xlu0 %v5964_v15, %s5073_s30 }
 0x13d   : > { %1146 = vrot.lane.b32.xlu1 %v5971_v20, %s5068_s23 }
 0x140   : > { %1320 = vrot.lane.b32.xlu0 %v5968_v18, %s5073_s30 }
 0x141   : > { %1150 = vrot.lane.b32.xlu1 %v5978_v21, %s5068_s23 }
 0x144   : > { %1410 = vrot.lane.b32.xlu0 %v5964_v15, %s5069_s24 }
 0x145   : > { %1232 = vrot.lane.b32.xlu1 %v5971_v20, %s5071_s29 }
 0x148   : > { %1500 = vrot.lane.b32.xlu0 %v5968_v18, %s7872_s27 }
 0x149   : > { %1236 = vrot.lane.b32.xlu1 %v5978_v21, %s5071_s29 }
 0x14c   : > { %1586 = vrot.lane.b32.xlu0 %v5968_v18, %s5074_s14 }
 0x14d   : > { %1318 = vrot.lane.b32.xlu1 %v5971_v20, %s5073_s30 }
 0x150   : > { %1582 = vrot.lane.b32.xlu0 %v5964_v15, %s5074_s14 }
 0x151   : > { %1322 = vrot.lane.b32.xlu1 %v5978_v21, %s5073_s30 }
 0x154   : > { %1672 = vrot.lane.b32.xlu0 %v5968_v18, %s5072_s15 }
 0x155   : > { %1498 = vrot.lane.b32.xlu1 %v5971_v20, %s7872_s27 }
 0x158   : > { %1059 = vrot.lane.b32.xlu0 %v5971_v20, %s5067_s22 }
 0x159   : > { %1502 = vrot.lane.b32.xlu1 %v5978_v21, %s7872_s27 }
 0x15c   : > { %1412 = vrot.lane.b32.xlu0 %v5971_v20, %s5069_s24 }
 0x15d   : > { %1584 = vrot.lane.b32.xlu1 %v5971_v20, %s5074_s14 }
 0x160   : > { %1416 = vrot.lane.b32.xlu0 %v5978_v21, %s5069_s24 }
 0x161   : > { %1588 = vrot.lane.b32.xlu1 %v5978_v21, %s5074_s14 }
 0x164   : > { %v929_v24 = vpop.f32.mrb[2].mxu0 }
 0x165   : > { %v1033_v26 = vrot.slane %v929_v24, 4  ;;  %1670 = vrot.lane.b32.xlu1 %v5971_v20, %s5072_s15  ;;  %v931_v27 = vpop.f32.mrb[3].mxu0  ;;  %v1000_v28 = vpop.f32.mrb[2].mxu1  ;;  %v1271_v24 = vrot.slane %v6176_v13, %v6139_v59 }
 0x166   : > { %v1034_v30 = vrot.slane %v931_v27, 4  ;;  %v1035_v31 = vrot.slane %v1000_v28, 4  ;;  %v1002_v32 = vpop.f32.mrb[3].mxu1  ;;  %v4580_v27 = vld [vmem:[%s7843_s3 + $0x3] ss:$8 sm:$0xf0] }
 0x167   : > { %v1050_v33 = vsel %vm1045_vm0, %v1007_v22, %v1033_v26  ;;  %v1036_v34 = vrot.slane %v1002_v32, 4  ;;  %v4579_v26 = vld [vmem:[%s7843_s3 + $0x3] ss:$8 sm:$0xf] }
 0x168   : > { %1406 = vst [vmem:[#allocation2 + $0x120] sm:$0xff] %v1050_v33  ;;  %v1051_v35 = vsel %vm1045_vm0, %v1015_v25, %v1034_v30  ;;  %1504 = vrot.lane.b32.xlu0 %v1050_v33, %s7872_s27  ;;  %v1052_v36 = vsel %vm1045_vm0, %v1008_v23, %v1035_v31  ;;  %v1267_v23 = vrot.slane %v6176_v13, %v6136_v58 }
 0x169   : > { %1407 = vst [vmem:[#allocation2 + $0x128] sm:$0xff] %v1051_v35  ;;  %1674 = vrot.lane.b32.xlu1 %v5978_v21, %s5072_s15  ;;  %1408 = vst [vmem:[#allocation2 + $0x130] sm:$0xff] %v1052_v36  ;;  %v6050_v37 = vsel %vm1045_vm0, %v1016_v29, %v1036_v34  ;;  %v1275_v34 = vrot.slane %v6176_v13, %v6116_v51 }
 0x16a   : > { %7875 = vst [vmem:[#allocation3_spill] sm:$0xff] %v6050_v37  ;;  %1409 = vst [vmem:[#allocation2 + $0x138] sm:$0xff] %v6050_v37 }
 0x16c   : > { %1590 = vrot.lane.b32.xlu0 %v1050_v33, %s5074_s14 }
 0x16d   : > { %1418 = vrot.lane.b32.xlu1 %v1050_v33, %s5069_s24 }
 0x170   : > { %1152 = vrot.lane.b32.xlu0 %v1050_v33, %s5068_s23 }
 0x171   : > { %1065 = vrot.lane.b32.xlu1 %v1050_v33, %s5067_s22 }
 0x174   : > { %1156 = vrot.lane.b32.xlu0 %v1052_v36, %s5068_s23 }
 0x175   : > { %1069 = vrot.lane.b32.xlu1 %v1052_v36, %s5067_s22 }
 0x178   : > { %1676 = vrot.lane.b32.xlu0 %v1050_v33, %s5072_s15 }
 0x179   : > { %1324 = vrot.lane.b32.xlu1 %v1050_v33, %s5073_s30 }
 0x17c   : > { %1238 = vrot.lane.b32.xlu0 %v1050_v33, %s5071_s29 }
 0x17d   : > { %1328 = vrot.lane.b32.xlu1 %v1052_v36, %s5073_s30 }
 0x180   : > { %1242 = vrot.lane.b32.xlu0 %v1052_v36, %s5071_s29 }
 0x181   : > { %1158 = vrot.lane.b32.xlu1 %v6050_v37, %s5068_s23 }
 0x184   : > { %1071 = vrot.lane.b32.xlu0 %v6050_v37, %s5067_s22 }
 0x185   : > { %1330 = vrot.lane.b32.xlu1 %v6050_v37, %s5073_s30 }
 0x188   : > { %1244 = vrot.lane.b32.xlu0 %v6050_v37, %s5071_s29 }
 0x189   : > { %1422 = vrot.lane.b32.xlu1 %v1052_v36, %s5069_s24 }
 0x18c   : > { %1508 = vrot.lane.b32.xlu0 %v1052_v36, %s7872_s27 }
 0x18d   : > { %1594 = vrot.lane.b32.xlu1 %v1052_v36, %s5074_s14 }
 0x190   : > { %1067 = vrot.lane.b32.xlu0 %v1051_v35, %s5067_s22 }
 0x191   : > { %1154 = vrot.lane.b32.xlu1 %v1051_v35, %s5068_s23 }
 0x194   : > { %1326 = vrot.lane.b32.xlu0 %v1051_v35, %s5073_s30 }
 0x195   : > { %1240 = vrot.lane.b32.xlu1 %v1051_v35, %s5071_s29 }
 0x198   : > { %1420 = vrot.lane.b32.xlu0 %v1051_v35, %s5069_s24 }
 0x199   : > { %1506 = vrot.lane.b32.xlu1 %v1051_v35, %s7872_s27 }
 0x19a   : > { %v6083_v39 = vpop.permute.xlu0 %1057 }
 0x19b   : > { %v6085_v40 = vpop.permute.xlu1 %1061 }
 0x19c   : > { %1424 = vrot.lane.b32.xlu0 %v6050_v37, %s5069_s24 }
 0x19d   : > { %1510 = vrot.lane.b32.xlu1 %v6050_v37, %s7872_s27 }
 0x19e   : > { %v6091_v42 = vpop.permute.xlu0 %1144 }
 0x19f   : > { %v6093_v43 = vpop.permute.xlu1 %1414 }
 0x1a0   : > { %1592 = vrot.lane.b32.xlu0 %v1051_v35, %s5074_s14 }
 0x1a1   : > { %1678 = vrot.lane.b32.xlu1 %v1051_v35, %s5072_s15  ;;  %v6209_v35 = vor.u32 %v4580_v27, %v4579_v26  ;;  %v4586_v26 = vld [vmem:[%s7843_s3 + $0x7] ss:$8 sm:$0xf0] }
 0x1a2   : > { %v1149_v46 = vpop.permute.xlu0 %1148 }
 0x1a3   : > { %v6105_v19 = vpop.permute.xlu1 %1496  ;;  %v1353_v47 = vrot.slane %v6209_v35, %v6136_v58  ;;  %v1357_v48 = vrot.slane %v6209_v35, %v6139_v59 }
 0x1a4   : > { %1596 = vrot.lane.b32.xlu0 %v6050_v37, %s5074_s14 }
 0x1a5   : > { %1682 = vrot.lane.b32.xlu1 %v6050_v37, %s5072_s15 }
 0x1a6   : > { %v6121_v53 = vpop.permute.xlu0 %1230 }
 0x1a7   : > { %v6129_v56 = vpop.permute.xlu1 %1668 }
 0x1a8   : > { %7877 = vst [vmem:[#allocation5_spill] sm:$0xff] %v6129_v56  ;;  %1680 = vrot.lane.b32.xlu0 %v1052_v36, %s5072_s15 }
 0x1a9   : > { %2129 = vperm.xlu1 %5053, %v1056_v55   ;;  %v4584_v55 = vld [vmem:[%s7843_s3 + $0x6] ss:$8 sm:$0xf0] }
 0x1aa   : > { %v1235_v62 = vpop.permute.xlu0 %1234  ;;  %v6248_v5 = vor.u32 %v4584_v55, %v4583_v54 }
 0x1ab   : > { %v6146_v63 = vpop.permute.xlu1 %1063 }
 0x1ac   : > { %v1080_v0 = vsel %vm1075_vm1, %v6085_v40, %v6146_v63  ;;  %2116 = vperm.xlu0 %5052, %v1055_v61  }
 0x1ad   : > { %v1131_v1 = vmul.f32 %v1103_v57, %v1080_v0  ;;  %v6240_v0 = vsub.s32 0, %v6100_v45 }
 0x1ae   : > { %v6157_v4 = vpop.permute.xlu0 %1316 }
 0x1af   : > { %1139 = vst [vmem:[#allocation2 + $0x18] sm:$0xff] %v1131_v1  ;;  %v1147_v7 = vpop.permute.xlu1 %1146  ;;  %7880 = vst [vmem:[#allocation8_spill] sm:$0xff] %v6240_v0 }
 0x1b0   : > { %v1166_v8 = vsel %vm1160_vm2, %v1147_v7, %v1149_v46  ;;  %v1167_v9 = vsel %vm1160_vm2, %v6091_v42, %v1147_v7 }
 0x1b1   : > { %v6170_v10 = vmul.f32 %v1181_v2, %v1167_v9  ;;  %v6172_v11 = vmul.f32 %v1185_v3, %v1166_v8  ;;  %v1361_v3 = vrot.slane %v6209_v35, %v6116_v51  ;;  %v4581_v9 = vld [vmem:[%s7843_s3 + $0x5] ss:$8 sm:$0xf] }
 0x1b2   : > { %v1321_v16 = vpop.permute.xlu0 %1320 }
 0x1b3   : > { %1223 = vst [vmem:[#allocation2 + $0x48] sm:$0xff] %v6170_v10  ;;  %1224 = vst [vmem:[#allocation2 + $0x50] sm:$0xff] %v6172_v11  ;;  %v6180_v14 = vpop.permute.xlu1 %1150 }
 0x1b4   : > { %v1165_v17 = vsel %vm1160_vm2, %v1149_v46, %v6180_v14 }
 0x1b5   : > { %v1217_v22 = vmul.f32 %v1189_v12, %v1165_v17  ;;  %v4582_v12 = vld [vmem:[%s7843_s3 + $0x5] ss:$8 sm:$0xf0] }
 0x1b6   : > { %v6190_v25 = vpop.permute.xlu0 %1410 }
 0x1b7   : > { %1225 = vst [vmem:[#allocation2 + $0x58] sm:$0xff] %v1217_v22  ;;  %v1233_v28 = vpop.permute.xlu1 %1232  ;;  %v4922_v29 = vpack.c.bf16 %v1217_v22, %v1131_v1  ;;  %v1529_v22 = vrot.slane %v6248_v5, %v6240_v0 }
 0x1b8   : > { %v1252_v30 = vsel %vm1246_vm3, %v1233_v28, %v1235_v62  ;;  %v1253_v31 = vsel %vm1246_vm3, %v6121_v53, %v1233_v28  ;;  %v6278_v28 = vor.u32 %v4582_v12, %v4581_v9 }
 0x1b9   : > { %v6203_v32 = vmul.f32 %v1267_v23, %v1253_v31  ;;  %v6205_v33 = vmul.f32 %v1271_v24, %v1252_v30  ;;  %4923 = vmatprep.subr.bf16.mxu1 %v4922_v29  ;;  %v1533_v23 = vrot.slane %v6248_v5, %v6136_v58  ;;  %v1095_v31 = vrot.slane %v6113_v50, %v6136_v58 }
 0x1ba   : > { %v1501_v36 = vpop.permute.xlu0 %1500 }
 0x1bb   : > { %1309 = vst [vmem:[#allocation2 + $0x88] sm:$0xff] %v6203_v32  ;;  %1310 = vst [vmem:[#allocation2 + $0x90] sm:$0xff] %v6205_v33  ;;  %v6213_v41 = vpop.permute.xlu1 %1236 }
 0x1bc   : > { %v1251_v44 = vsel %vm1246_vm3, %v1235_v62, %v6213_v41 }
 0x1bd   : > { %v6218_v46 = vmul.f32 %v1275_v34, %v1251_v44  ;;  %v1099_v34 = vrot.slane %v6113_v50, %v6139_v59 }
 0x1be   : > { %v6225_v52 = vpop.permute.xlu0 %1586 }
 0x1bf   : > { %1311 = vst [vmem:[#allocation2 + $0x98] sm:$0xff] %v6218_v46  ;;  %v1319_v57 = vpop.permute.xlu1 %1318 }
 0x1c0   : > { %v1338_v61 = vsel %vm1332_vm4, %v1319_v57, %v1321_v16  ;;  %v1339_v62 = vsel %vm1332_vm4, %v6157_v4, %v1319_v57 }
 0x1c1   : > { %v6242_v1 = vmul.f32 %v1353_v47, %v1339_v62  ;;  %v6244_v2 = vmul.f32 %v1357_v48, %v1338_v61  ;;  %v1537_v48 = vrot.slane %v6248_v5, %v6139_v59 }
 0x1c2   : > { %v6250_v6 = vpop.permute.xlu0 %1582 }
 0x1c3   : > { %7881 = vst [vmem:[#allocation9_spill] sm:$0xff] %v6250_v6  ;;  %1395 = vst [vmem:[#allocation2 + $0xc8] sm:$0xff] %v6242_v1  ;;  %v6254_v7 = vpop.permute.xlu1 %1322 }
 0x1c4   : > { %1396 = vst [vmem:[#allocation2 + $0xd0] sm:$0xff] %v6244_v2  ;;  %v1337_v8 = vsel %vm1332_vm4, %v1321_v16, %v6254_v7  ;;  %v4585_v16 = vld [vmem:[%s7843_s3 + $0x7] ss:$8 sm:$0xf] }
 0x1c5   : > { %v1389_v17 = vmul.f32 %v1361_v3, %v1337_v8  ;;  %v6295_v54 = vor.u32 %v4586_v26, %v4585_v16  ;;  %v1443_v3 = vrot.slane %v6278_v28, %v6240_v0 }
 0x1c6   : > { %v6270_v24 = vpop.permute.xlu0 %1672 }
 0x1c7   : > { %1397 = vst [vmem:[#allocation2 + $0xd8] sm:$0xff] %v1389_v17  ;;  %v1499_v27 = vpop.permute.xlu1 %1498  ;;  %v1619_v16 = vrot.slane %v6295_v54, %v6136_v58 }
 0x1c8   : > { %v1518_v29 = vsel %vm1512_vm5, %v1499_v27, %v1501_v36  ;;  %v1519_v30 = vsel %vm1512_vm5, %v6105_v19, %v1499_v27  ;;  %v4588_v27 = vld [vmem:[%s7843_s3 + $0x40] ss:$8 sm:$0xf0] }
 0x1c9   : > { %v6289_v44 = vmul.f32 %v1529_v22, %v1519_v30  ;;  %v6291_v47 = vmul.f32 %v1533_v23, %v1518_v29  ;;  %v1447_v22 = vrot.slane %v6278_v28, %v6136_v58 }
 0x1ca   : > { %v1060_v55 = vpop.permute.xlu0 %1059 }
 0x1cb   : > { %v1503_v57 = vpop.permute.xlu1 %1502  ;;  %v1081_v61 = vsel %vm1075_vm1, %v1060_v55, %v6085_v40  ;;  %v1082_v62 = vsel %vm1075_vm1, %v6083_v39, %v1060_v55  ;;  %v1615_v40 = vrot.slane %v6295_v54, %v6240_v0  ;;  %v1451_v55 = vrot.slane %v6278_v28, %v6139_v59 }
 0x1cc   : > { %v1517_v8 = vsel %vm1512_vm5, %v1501_v36, %v1503_v57  ;;  %v1129_v9 = vmul.f32 %v1095_v31, %v1082_v62  ;;  %v1130_v12 = vmul.f32 %v1099_v34, %v1081_v61  ;;  %v4587_v36 = vld [vmem:[%s7843_s3 + $0x40] ss:$8 sm:$0xf]  ;;  %v4926_v61 = vpack.c.bf16 %v1389_v17, %v6218_v46 }
 0x1cd   : > { %v6310_v23 = vmul.f32 %v1537_v48, %v1517_v8  ;;  %v1623_v46 = vrot.slane %v6295_v54, %v6139_v59  ;;  %v6350_v17 = vor.u32 %v4588_v27, %v4587_v36 }
 0x1ce   : > { %1137 = vst [vmem:[#allocation2 + $0x8] sm:$0xff] %v1129_v9  ;;  %1138 = vst [vmem:[#allocation2 + $0x10] sm:$0xff] %v1130_v12  ;;  %v1413_v26 = vpop.permute.xlu0 %1412  ;;  %v4906_v29 = vpack.c.bf16 %v6170_v10, %v1129_v9  ;;  %v4924_v30 = vpack.c.bf16 %v6172_v11, %v1130_v12 }
 0x1cf   : > { %v1585_v31 = vpop.permute.xlu1 %1584  ;;  %v1432_v34 = vsel %vm1426_vm6, %v1413_v26, %v6093_v43  ;;  %v1433_v48 = vsel %vm1426_vm6, %v6190_v25, %v1413_v26  ;;  %v1701_v36 = vrot.slane %v6350_v17, %v6240_v0  ;;  %v1705_v27 = vrot.slane %v6350_v17, %v6136_v58 }
 0x1d0   : > { %v1604_v10 = vsel %vm1598_vm7, %v1585_v31, %v6225_v52  ;;  %v1605_v11 = vsel %vm1598_vm7, %v6250_v6, %v1585_v31  ;;  %v6340_v62 = vmul.f32 %v1443_v3, %v1433_v48  ;;  %v6342_v8 = vmul.f32 %v1447_v22, %v1432_v34  ;;  %4907 = vmatprep.subr.bf16.mxu0 %v4906_v29 }
 0x1d1   : > { %v6344_v9 = vmul.f32 %v1615_v40, %v1605_v11  ;;  %v6346_v12 = vmul.f32 %v1619_v16, %v1604_v10  ;;  %4925 = vmatpush1.bf16.msra.mxu1 %v4924_v30  ;;  %v4928_v22 = vpack.c.bf16 %v6244_v2, %v6205_v33  ;;  %v1709_v34 = vrot.slane %v6350_v17, %v6139_v59 }
 0x1d2   : > { %v1417_v26 = vpop.permute.xlu0 %1416  ;;  %4927 = vmatprep.subr.bf16.mxu1 %v4926_v61  ;;  %v6385_v10 = vsub.s32 4, %v6100_v45 }
 0x1d3   : > { %v1589_v38 = vpop.permute.xlu1 %1588  ;;  %v1431_v3 = vsel %vm1426_vm6, %v6093_v43, %v1417_v26 }
 0x1d4   : > { %v1603_v40 = vsel %vm1598_vm7, %v6225_v52, %v1589_v38  ;;  %v1482_v16 = vmul.f32 %v1451_v55, %v1431_v3  ;;  %v1541_v52 = vrot.slane %v6248_v5, %v6116_v51  ;;  %v1627_v3 = vrot.slane %v6295_v54, %v6116_v51 }
 0x1d5   : > { %v1654_v29 = vmul.f32 %v1623_v46, %v1603_v40  ;;  %4929 = vmatpush1.bf16.msra.mxu1 %v4928_v22  ;;  %v1455_v40 = vrot.slane %v6278_v28, %v6116_v51 }
 0x1d7   : > { %v1671_v30 = vpop.permute.xlu1 %1670 }
 0x1d8   : > { %v1690_v43 = vsel %vm1684_vm8, %v1671_v30, %v6270_v24  ;;  %v1691_v33 = vsel %vm1684_vm8, %v6129_v56, %v1671_v30 }
 0x1d9   : > { %v6373_v2 = vmul.f32 %v1701_v36, %v1691_v33  ;;  %v6375_v31 = vmul.f32 %v1705_v27, %v1690_v43  ;;  %v1193_v43 = vrot.slane %v6141_v60, %v6385_v10 }
 0x1da   : > { %v6379_v48 = vpop.permute.xlu0 %1504 }
 0x1db   : > { %v1675_v55 = vpop.permute.xlu1 %1674  ;;  %v1516_v61 = vsel %vm1512_vm5, %v1503_v57, %v6379_v48 }
 0x1dc   : > { %v1689_v11 = vsel %vm1684_vm8, %v6270_v24, %v1675_v55  ;;  %v1569_v46 = vmul.f32 %v1541_v52, %v1516_v61  ;;  %v1107_v52 = vrot.slane %v6113_v50, %v6385_v10 }
 0x1dd   : > { %v1740_v22 = vmul.f32 %v1709_v34, %v1689_v11 }
 0x1de   : > { %v6394_v36 = vpop.permute.xlu0 %1590 }
 0x1df   : > { %7882 = vst [vmem:[#allocation10_spill] sm:$0xff] %v6394_v36  ;;  %v6396_v27 = vpop.permute.xlu1 %1418  ;;  %v1602_v57 = vsel %vm1598_vm7, %v1589_v38, %v6394_v36 }
 0x1e0   : > { %v1430_v24 = vsel %vm1426_vm6, %v1417_v26, %v6396_v27  ;;  %v1655_v30 = vmul.f32 %v1627_v3, %v1602_v57 }
 0x1e1   : > { %v1483_v33 = vmul.f32 %v1455_v40, %v1430_v24  ;;  %v4932_v40 = vpack.c.bf16 %v1482_v16, %v5968_v18  ;;  %v1365_v18 = vrot.slane %v6209_v35, %v6385_v10 }
 0x1e2   : > { %v6408_v34 = vpop.permute.xlu0 %1152  ;;  %v4934_v24 = vpack.c.bf16 %v1655_v30, %v1569_v46 }
 0x1e3   : > { %v6410_v61 = vpop.permute.xlu1 %1065  ;;  %v1164_v38 = vsel %vm1160_vm2, %v6180_v14, %v6408_v34  ;;  %v4930_v11 = vpack.c.bf16 %v1483_v33, %v5978_v21  ;;  %v4936_v14 = vpack.c.bf16 %v1654_v29, %v6310_v23  ;;  %v1279_v23 = vrot.slane %v6176_v13, %v6385_v10 }
 0x1e4   : > { %v1079_v26 = vsel %vm1075_vm1, %v6146_v63, %v6410_v61  ;;  %v6421_v3 = vmul.f32 %v1193_v43, %v1164_v38  ;;  %v1713_v63 = vrot.slane %v6350_v17, %v6116_v51  ;;  %v6451_v29 = vsub.s32 7, %v6100_v45  ;;  %v6458_v38 = vld [vmem:[%s7844_s4] sm:$0xf] }
 0x1e5   : > { %v6424_v57 = vmul.f32 %v1107_v52, %v1079_v26  ;;  %4931 = vmatprep.subr.bf16.mxu1 %v4930_v11 }
 0x1e6   : > { %1226 = vst [vmem:[#allocation2 + $0x60] sm:$0xff] %v6421_v3  ;;  %v6427_v58 = vpop.permute.xlu0 %1156  ;;  %4933 = vmatpush1.bf16.msra.mxu1 %v4932_v40  ;;  %v1177_v40 = vrot.slane %v6141_v60, %v6240_v0  ;;  %v1377_v59 = vrot.slane %v6209_v35, %v6451_v29 }
 0x1e7   : > { %1140 = vst [vmem:[#allocation2 + $0x20] sm:$0xff] %v6424_v57  ;;  %v6430_v21 = vpop.permute.xlu1 %1069  ;;  %4935 = vmatprep.subr.bf16.mxu1 %v4934_v24  ;;  %v1205_v24 = vrot.slane %v6141_v60, %v6451_v29 }
 0x1ea   : > { %v6437_v16 = vpop.permute.xlu0 %1676  ;;  %4937 = vmatpush1.bf16.msra.mxu1 %v4936_v14 }
 0x1eb   : > { %7883 = vst [vmem:[#allocation11_spill] sm:$0xff] %v6437_v16  ;;  %v6439_v46 = vpop.permute.xlu1 %1324  ;;  %v1688_v30 = vsel %vm1684_vm8, %v1675_v55, %v6437_v16 }
 0x1ec   : > { %v1336_v43 = vsel %vm1332_vm4, %v6254_v7, %v6439_v46  ;;  %v1741_v33 = vmul.f32 %v1713_v63, %v1688_v30  ;;  %v7886_v63 = vmov 0.0   ;;  %v1091_v30 = vrot.slane %v6113_v50, %v6240_v0 }
 0x1ed   : > { %v6453_v52 = vmul.f32 %v1365_v18, %v1336_v43  ;;  %v1119_v43 = vrot.slane %v6113_v50, %v6451_v29 }
 0x1ee   : > { %v6460_v55 = vpop.permute.xlu0 %1238  ;;  %1917 = vmatprep.subr.mxu1 %v1741_v33 }
 0x1ef   : > { %7884 = vst [vmem:[#allocation12_spill] sm:$0xff] %v6453_v52  ;;  %1398 = vst [vmem:[#allocation2 + $0xe0] sm:$0xff] %v6453_v52  ;;  %v6463_v7 = vpop.permute.xlu1 %1328  ;;  %v1250_v11 = vsel %vm1246_vm3, %v6213_v41, %v6460_v55  ;;  %1918 = vmatpush1.msra.mxu1 %v1740_v22 }
 0x1f0   : > { %v6469_v26 = vmul.f32 %v1279_v23, %v1250_v11  ;;  %4590 = vmatmul.mubr.msk.f32.vlgmr.msra.gmra.mrb[4].mxu1 %vm1826_vm9, %v6458_v38  ;;  %v1349_v11 = vrot.slane %v6209_v35, %v6240_v0 }
 0x1f1   : > { %2107 = vmatprep.mubr.f32.mxu1 %v7886_v63 }
 0x1f2   : > { %7885 = vst [vmem:[#allocation13_spill] sm:$0xff] %v6469_v26  ;;  %1312 = vst [vmem:[#allocation2 + $0xa0] sm:$0xff] %v6469_v26  ;;  %v6479_v14 = vpop.permute.xlu0 %1242 }
 0x1f3   : > { %v1159_v18 = vpop.permute.xlu1 %1158 }
 0x1f4   : > { %v1161_v41 = vsel %vm1160_vm2, %v6427_v58, %v1159_v18  ;;  %v1168_v22 = vsel %vm1160_vm2, %v1159_v18, %v6091_v42 }
 0x1f5   : > { %v1214_v33 = vmul.f32 %v1177_v40, %v1168_v22  ;;  %v1221_v23 = vmul.f32 %v1205_v24, %v1161_v41  ;;  %v1263_v40 = vrot.slane %v6176_v13, %v6240_v0  ;;  %v1291_v24 = vrot.slane %v6176_v13, %v6451_v29 }
 0x1f6   : > { %v1072_v51 = vpop.permute.xlu0 %1071 }
 0x1f7   : > { %1222 = vst [vmem:[#allocation2 + $0x40] sm:$0xff] %v1214_v33  ;;  %1229 = vst [vmem:[#allocation2 + $0x78] sm:$0xff] %v1221_v23  ;;  %v1331_v56 = vpop.permute.xlu1 %1330  ;;  %v1076_v42 = vsel %vm1075_vm1, %v6430_v21, %v1072_v51  ;;  %v1083_v18 = vsel %vm1075_vm1, %v1072_v51, %v6083_v39 }
 0x1f8   : > { %v1333_v41 = vsel %vm1332_vm4, %v6463_v7, %v1331_v56  ;;  %v1340_v22 = vsel %vm1332_vm4, %v1331_v56, %v6157_v4  ;;  %v1128_v6 = vmul.f32 %v1091_v30, %v1083_v18  ;;  %v1135_v16 = vmul.f32 %v1119_v43, %v1076_v42 }
 0x1f9   : > { %v1386_v36 = vmul.f32 %v1349_v11, %v1340_v22  ;;  %v6511_v37 = vmul.f32 %v1377_v59, %v1333_v41  ;;  %v4910_v59 = vpack.c.bf16 %v6242_v1, %v6203_v32  ;;  %v6525_v4 = vsub.s32 5, %v6100_v45 }
 0x1fa   : > { %1136 = vst [vmem:[#allocation2] sm:$0xff] %v1128_v6  ;;  %1143 = vst [vmem:[#allocation2 + $0x38] sm:$0xff] %v1135_v16  ;;  %v1245_v39 = vpop.permute.xlu0 %1244  ;;  %v4908_v51 = vpack.c.bf16 %v1214_v33, %v1128_v6  ;;  %v4954_v0 = vpack.c.bf16 %v1221_v23, %v1135_v16  ;;  %v6528_v6 = vsub.s32 6, %v6100_v45  ;;  %v4914_v32 = vpack.c.bf16 %v6342_v8, %v5971_v20 }
 0x1fb   : > { %1394 = vst [vmem:[#allocation2 + $0xc0] sm:$0xff] %v1386_v36  ;;  %1401 = vst [vmem:[#allocation2 + $0xf8] sm:$0xff] %v6511_v37  ;;  %v6514_v52 = vpop.permute.xlu1 %1422  ;;  %v1247_v26 = vsel %vm1246_vm3, %v6479_v14, %v1245_v39  ;;  %v1254_v56 = vsel %vm1246_vm3, %v1245_v39, %v6121_v53  ;;  %v1111_v45 = vrot.slane %v6113_v50, %v6525_v4 }
 0x1fc   : > { %v1300_v16 = vmul.f32 %v1263_v40, %v1254_v56  ;;  %v6530_v30 = vmul.f32 %v1291_v24, %v1247_v26  ;;  %4909 = vmatpush1.bf16.msra.mxu0 %v4908_v51  ;;  %4955 = vmatprep.subr.bf16.mxu1 %v4954_v0  ;;  %v1115_v1 = vrot.slane %v6113_v50, %v6528_v6 }
 0x1fd   : > { %4911 = vmatprep.subr.bf16.mxu0 %v4910_v59  ;;  %v1197_v0 = vrot.slane %v6141_v60, %v6525_v4  ;;  %v1201_v26 = vrot.slane %v6141_v60, %v6528_v6  ;;  %v1369_v23 = vrot.slane %v6209_v35, %v6525_v4  ;;  %v4916_v20 = vpack.c.bf16 %v6340_v62, %v5964_v15 }
 0x1fe   : > { %1308 = vst [vmem:[#allocation2 + $0x80] sm:$0xff] %v1300_v16  ;;  %1315 = vst [vmem:[#allocation2 + $0xb8] sm:$0xff] %v6530_v30  ;;  %v6533_v43 = vpop.permute.xlu0 %1508  ;;  %v4912_v53 = vpack.c.bf16 %v1386_v36, %v1300_v16  ;;  %v1373_v60 = vrot.slane %v6209_v35, %v6528_v6  ;;  %v4918_v42 = vpack.c.bf16 %v6346_v12, %v6291_v47 }
 0x1ff   : > { %v6535_v33 = vpop.permute.xlu1 %1594  ;;  %v1287_v35 = vrot.slane %v6176_v13, %v6528_v6  ;;  %v1459_v12 = vrot.slane %v6278_v28, %v6385_v10  ;;  %v4920_v41 = vpack.c.bf16 %v6344_v9, %v6289_v44  ;;  %v4958_v56 = vpack.c.bf16 %v6511_v37, %v6530_v30 }
 0x200   : > { %4913 = vmatpush1.bf16.msra.mxu0 %v4912_v53  ;;  %v1467_v30 = vrot.slane %v6278_v28, %v6528_v6 }
 0x201   : > { %4915 = vmatprep.subr.bf16.mxu0 %v4914_v32  ;;  %v1471_v32 = vrot.slane %v6278_v28, %v6451_v29 }
 0x202   : > { %v1068_v36 = vpop.permute.xlu0 %1067 }
 0x203   : > { %v1155_v8 = vpop.permute.xlu1 %1154  ;;  %v1077_v50 = vsel %vm1075_vm1, %v1068_v36, %v6430_v21  ;;  %v1078_v11 = vsel %vm1075_vm1, %v6410_v61, %v1068_v36  ;;  %v1283_v61 = vrot.slane %v6176_v13, %v6525_v4 }
 0x204   : > { %v1162_v18 = vsel %vm1160_vm2, %v1155_v8, %v6427_v58  ;;  %v1163_v15 = vsel %vm1160_vm2, %v6408_v34, %v1155_v8  ;;  %v1133_v62 = vmul.f32 %v1111_v45, %v1078_v11  ;;  %v1134_v21 = vmul.f32 %v1115_v1, %v1077_v50  ;;  %4917 = vmatpush1.bf16.msra.mxu0 %v4916_v20 }
 0x205   : > { %v1219_v40 = vmul.f32 %v1197_v0, %v1163_v15  ;;  %v1220_v24 = vmul.f32 %v1201_v26, %v1162_v18  ;;  %4919 = vmatprep.subr.bf16.mxu0 %v4918_v42  ;;  %v1545_v58 = vrot.slane %v6248_v5, %v6385_v10  ;;  %v1463_v34 = vrot.slane %v6278_v28, %v6525_v4 }
 0x206   : > { %1141 = vst [vmem:[#allocation2 + $0x28] sm:$0xff] %v1133_v62  ;;  %1142 = vst [vmem:[#allocation2 + $0x30] sm:$0xff] %v1134_v21  ;;  %v1327_v47 = vpop.permute.xlu0 %1326  ;;  %v1631_v42 = vrot.slane %v6295_v54, %v6385_v10 }
 0x207   : > { %1227 = vst [vmem:[#allocation2 + $0x68] sm:$0xff] %v1219_v40  ;;  %1228 = vst [vmem:[#allocation2 + $0x70] sm:$0xff] %v1220_v24  ;;  %v1241_v22 = vpop.permute.xlu1 %1240  ;;  %v1334_v13 = vsel %vm1332_vm4, %v1327_v47, %v6463_v7  ;;  %v1335_v39 = vsel %vm1332_vm4, %v6439_v46, %v1327_v47  ;;  %v4956_v51 = vpack.c.bf16 %v1220_v24, %v1134_v21  ;;  %v7888_v24 = vld [vmem:[#allocation12_spill] sm:$0xff]  ;;  %v1792_v47 = vld [vmem:[#allocation2 + $0x130] sm:$0xff] }
 0x208   : > { %v1248_v59 = vsel %vm1246_vm3, %v1241_v22, %v6479_v14  ;;  %v1249_v44 = vsel %vm1246_vm3, %v6460_v55, %v1241_v22  ;;  %v1391_v9 = vmul.f32 %v1369_v23, %v1335_v39  ;;  %v1392_v16 = vmul.f32 %v1373_v60, %v1334_v13  ;;  %4921 = vmatpush1.bf16.msra.mxu0 %v4920_v41  ;;  %v7890_v13 = vld [vmem:[#allocation10_spill] sm:$0xff] }
 0x209   : > { %v1305_v7 = vmul.f32 %v1283_v61, %v1249_v44  ;;  %v1306_v53 = vmul.f32 %v1287_v35, %v1248_v59  ;;  %v1549_v46 = vrot.slane %v6248_v5, %v6525_v4  ;;  %4957 = vmatpush1.bf16.msra.mxu1 %v4956_v51  ;;  %1846 = vmatprep.subr.mxu0 %v6375_v31  ;;  %v1791_v35 = vld [vmem:[#allocation2 + $0x128] sm:$0xff]  ;;  %v7891_v59 = vld [vmem:[#allocation11_spill] sm:$0xff] }
 0x20a   : > { %1399 = vst [vmem:[#allocation2 + $0xe8] sm:$0xff] %v1391_v9  ;;  %1400 = vst [vmem:[#allocation2 + $0xf0] sm:$0xff] %v1392_v16  ;;  %v1421_v37 = vpop.permute.xlu0 %1420  ;;  %v1553_v14 = vrot.slane %v6248_v5, %v6528_v6  ;;  %v1557_v55 = vrot.slane %v6248_v5, %v6451_v29  ;;  %4959 = vmatprep.subr.bf16.mxu1 %v4958_v56  ;;  %v4938_v5 = vpack.c.bf16 %v1219_v40, %v1133_v62  ;;  %v7887_v40 = vld [vmem:[#allocation13_spill] sm:$0xff] }
 0x20b   : > { %1313 = vst [vmem:[#allocation2 + $0xa8] sm:$0xff] %v1305_v7  ;;  %1314 = vst [vmem:[#allocation2 + $0xb0] sm:$0xff] %v1306_v53  ;;  %v1507_v45 = vpop.permute.xlu1 %1506  ;;  %v1428_v31 = vsel %vm1426_vm6, %v1421_v37, %v6514_v52  ;;  %v1429_v1 = vsel %vm1426_vm6, %v6396_v27, %v1421_v37  ;;  %v4960_v0 = vpack.c.bf16 %v1392_v16, %v1306_v53 }
 0x20c   : > { %v1514_v26 = vsel %vm1512_vm5, %v1507_v45, %v6533_v43  ;;  %v1515_v28 = vsel %vm1512_vm5, %v6379_v48, %v1507_v45  ;;  %v1484_v36 = vmul.f32 %v1459_v12, %v1429_v1  ;;  %v1485_v23 = vmul.f32 %v1463_v34, %v1428_v31  ;;  %1847 = vmatpush1.msra.mxu0 %v6373_v2  ;;  %v7893_v1 = vld [vmem:[#allocation5_spill] sm:$0xff] }
 0x20d   : > { %v6617_v20 = vmul.f32 %v1545_v58, %v1515_v28  ;;  %v1571_v8 = vmul.f32 %v1549_v46, %v1514_v26  ;;  %4961 = vmatpush1.bf16.msra.mxu1 %v4960_v0  ;;  %4589 = vmatmul.mubr.msk.f32.vlgmr.msra.gmra.mrb[4].mxu0 %vm1826_vm9, %v6458_v38  ;;  %v4940_v27 = vpack.c.bf16 %v6421_v3, %v6424_v57 }
 0x20e   : > { %v1425_v50 = vpop.permute.xlu0 %1424  ;;  %4939 = vmatprep.subr.bf16.mxu0 %v4938_v5  ;;  %v4942_v11 = vpack.c.bf16 %v1391_v9, %v1305_v7  ;;  %2036 = vmatprep.mubr.f32.mxu0 %v7886_v63  ;;  %v1635_v3 = vrot.slane %v6295_v54, %v6525_v4  ;;  %v1717_v21 = vrot.slane %v6350_v17, %v6385_v10  ;;  %v1790_v7 = vld [vmem:[#allocation2 + $0x120] sm:$0xff] }
 0x20f   : > { %v1511_v48 = vpop.permute.xlu1 %1510  ;;  %v1427_v2 = vsel %vm1426_vm6, %v6514_v52, %v1425_v50  ;;  %v1434_v60 = vsel %vm1426_vm6, %v1425_v50, %v6190_v25  ;;  %4941 = vmatpush1.bf16.msra.mxu0 %v4940_v27  ;;  %v4944_v61 = vpack.c.bf16 %v7888_v24, %v7887_v40  ;;  %v4946_v12 = vpack.c.bf16 %v1485_v23, %v1791_v35 }
 0x210   : > { %v1513_v57 = vsel %vm1512_vm5, %v6533_v43, %v1511_v48  ;;  %v1520_v18 = vsel %vm1512_vm5, %v1511_v48, %v6105_v19  ;;  %v1486_v52 = vmul.f32 %v1467_v30, %v1427_v2  ;;  %v1487_v15 = vmul.f32 %v1471_v32, %v1434_v60  ;;  %4943 = vmatprep.subr.bf16.mxu0 %v4942_v11  ;;  %v7889_v43 = vld [vmem:[#allocation3_spill] sm:$0xff]  ;;  %v7892_v32 = vld [vmem:[#allocation9_spill] sm:$0xff] }
 0x211   : > { %v1572_v62 = vmul.f32 %v1553_v14, %v1513_v57  ;;  %v1573_v25 = vmul.f32 %v1557_v55, %v1520_v18  ;;  %v1639_v51 = vrot.slane %v6295_v54, %v6528_v6  ;;  %v1643_v56 = vrot.slane %v6295_v54, %v6451_v29 }
 0x212   : > { %v1593_v58 = vpop.permute.xlu0 %1592  ;;  %v4962_v34 = vpack.c.bf16 %v1487_v15, %v7889_v43  ;;  %v4964_v41 = vpack.c.bf16 %v1486_v52, %v1792_v47  ;;  %v1729_v46 = vrot.slane %v6350_v17, %v6451_v29  ;;  %v4948_v37 = vpack.c.bf16 %v1484_v36, %v1790_v7 }
 0x213   : > { %v1679_v22 = vpop.permute.xlu1 %1678  ;;  %v1600_v19 = vsel %vm1598_vm7, %v1593_v58, %v6535_v33  ;;  %v1601_v39 = vsel %vm1598_vm7, %v7890_v13, %v1593_v58  ;;  %4945 = vmatpush1.bf16.msra.mxu0 %v4944_v61  ;;  %v1721_v31 = vrot.slane %v6350_v17, %v6525_v4  ;;  %v1725_v28 = vrot.slane %v6350_v17, %v6528_v6 }
 0x214   : > { %v1687_v44 = vsel %vm1684_vm8, %v7891_v59, %v1679_v22  ;;  %v1656_v9 = vmul.f32 %v1631_v42, %v1601_v39  ;;  %v1657_v16 = vmul.f32 %v1635_v3, %v1600_v19  ;;  %4947 = vmatprep.subr.bf16.mxu0 %v4946_v12  ;;  %4963 = vmatprep.subr.bf16.mxu1 %v4962_v34 }
 0x215   : > { %v1742_v53 = vmul.f32 %v1717_v21, %v1687_v44  ;;  %4965 = vmatpush1.bf16.msra.mxu1 %v4964_v41 }
 0x216   : > { %v1597_v14 = vpop.permute.xlu0 %1596  ;;  %v4950_v55 = vpack.c.bf16 %v1657_v16, %v1571_v8 }
 0x217   : > { %v1683_v30 = vpop.permute.xlu1 %1682  ;;  %v1599_v54 = vsel %vm1598_vm7, %v6535_v33, %v1597_v14  ;;  %v1606_v45 = vsel %vm1598_vm7, %v1597_v14, %v7892_v32  ;;  %4949 = vmatpush1.bf16.msra.mxu0 %v4948_v37  ;;  %v4952_v33 = vpack.c.bf16 %v1656_v9, %v6617_v20 }
 0x218   : > { %v1692_v0 = vsel %vm1684_vm8, %v1683_v30, %v7893_v1  ;;  %v1658_v5 = vmul.f32 %v1639_v51, %v1599_v54  ;;  %v1659_v26 = vmul.f32 %v1643_v56, %v1606_v45  ;;  %4951 = vmatprep.subr.bf16.mxu0 %v4950_v55  ;;  %v4598_v54 = vld [vmem:[%s7843_s3 + $0x3] ss:$8 sm:$0xf0] }
 0x219   : > { %v1745_v36 = vmul.f32 %v1729_v46, %v1692_v0  ;;  %v4594_v46 = vld [vmem:[%s7843_s3 + $0x1] ss:$8 sm:$0xf0] }
 0x21a   : > { %v1681_v23 = vpop.permute.xlu0 %1680  ;;  %v4966_v8 = vpack.c.bf16 %v1659_v26, %v1573_v25  ;;  %v4968_v27 = vpack.c.bf16 %v1658_v5, %v1572_v62  ;;  %v2175_v5 = vld [vmem:[%s7843_s3] ss:$8 sm:$0xf] }
 0x21b   : > { %v1685_v50 = vsel %vm1684_vm8, %v1681_v23, %v1683_v30  ;;  %v1686_v11 = vsel %vm1684_vm8, %v1679_v22, %v1681_v23  ;;  %4953 = vmatpush1.bf16.msra.mxu0 %v4952_v33  ;;  %v4597_v30 = vld [vmem:[%s7843_s3 + $0x3] ss:$8 sm:$0xf]  ;;  %v2176_v26 = vld [vmem:[%s7843_s3] ss:$8 sm:$0xf0] }
 0x21c   : > { %v1743_v48 = vmul.f32 %v1721_v31, %v1686_v11  ;;  %v1744_v2 = vmul.f32 %v1725_v28, %v1685_v50  ;;  %4967 = vmatprep.subr.bf16.mxu1 %v4966_v8  ;;  %v7894_v31 = vld [vmem:[#allocation4_spill] sm:$0xff]  ;;  %v6790_v0 = vor.u32 %v4598_v54, %v4597_v30  ;;  %v6813_v50 = vor.u32 %v2176_v26, %v2175_v5 }
 0x21d   : > { %4969 = vmatpush1.bf16.msra.mxu1 %v4968_v27  ;;  %v2149_v27 = vld [vmem:[%s7848_s8] sm:$0xf] }
 0x21e   : > { %1988 = vmatprep.subr.mxu0 %v1743_v48  ;;  %2059 = vmatprep.subr.mxu1 %v1745_v36  ;;  %v2470_v8 = vrot.slane %v6790_v0, %v7894_v31  ;;  %v4595_v11 = vld [vmem:[%s7843_s3 + $0x2] ss:$8 sm:$0xf] }
 0x21f   : > { %1989 = vmatpush1.msra.mxu0 %v1742_v53  ;;  %v4593_v53 = vld [vmem:[%s7843_s3 + $0x1] ss:$8 sm:$0xf]  ;;  %v4596_v48 = vld [vmem:[%s7843_s3 + $0x2] ss:$8 sm:$0xf0] }
 0x220   : > { %4591 = vmatmul.mubr.msk.f32.vlgmr.msra.gmra.mrb[6].mxu0 %vm1826_vm9, %v6458_v38  ;;  %v6772_v55 = vor.u32 %v4594_v46, %v4593_v53 }
 0x221   : > { %2060 = vmatpush1.msra.mxu1 %v1744_v2  ;;  %3059 = vmatprep.mubr.f32.mxu0 %v7886_v63 }
 0x222   : > { %4592 = vmatmul.mubr.msk.f32.vlgmr.msra.gmra.mrb[6].mxu1 %vm1826_vm9, %v6458_v38  ;;  %v2278_v1 = vrot.slane %v6772_v55, %v7894_v31 }
 0x223   : > { %3130 = vmatprep.mubr.f32.mxu1 %v7886_v63 }
 0x228   : > { %v2130_v60 = vpop.permute.xlu1 %2129 }
 0x22b   : > { %v2117_v17 = vpop.permute.xlu0 %2116 }
 0x2c3   : > { %v1967_v20 = vpop.f32.mrb[4].mxu1 }
 0x2c4   : > { %v2121_v42 = vmul.f32 %v2117_v17, %v1967_v20  ;;  %v1969_v3 = vpop.f32.mrb[5].mxu1 }
 0x2c5   : > { %v2122_v57 = vmul.f32 %v2117_v17, %v1969_v3 }
 0x2c6   : > { %v2134_v18 = vadd.f32 %v2130_v60, %v2121_v42 }
 0x2c7   : > { %v2135_v52 = vadd.f32 %v2130_v60, %v2122_v57  ;;  %v2194_v57 = vrot.slane %v6813_v50, %v7894_v31 }
 0x2c8   : > { %v2142_v15 = vmax.f32 %v2134_v18, 0.0  ;;  %v6836_v18 = vor.u32 %v4596_v48, %v4595_v11 }
 0x2c9   : > { %v2143_v62 = vmax.f32 %v2135_v52, 0.0  ;;  %v4605_v52 = vld [vmem:[%s7843_s3 + $0x40] ss:$8 sm:$0xf] }
 0x2ca   : > { %2537 = vst [vmem:[#allocation2 + $0x90] sm:$0xf] %v2142_v15  ;;  %2739 = vrot.lane.b32.xlu0 %v2142_v15, %s5074_s14  ;;  %2239 = vrot.lane.b32.xlu1 %v2142_v15, %s5068_s23 }
 0x2cb   : > { %2538 = vst [vmem:[#allocation2 + $0x98] sm:$0xf] %v2143_v62 }
 0x2ce   : > { %2847 = vrot.lane.b32.xlu0 %v2142_v15, %s5072_s15  ;;  %2431 = vrot.lane.b32.xlu1 %v2142_v15, %s5073_s30 }
 0x2d2   : > { %2241 = vrot.lane.b32.xlu0 %v2143_v62, %s5068_s23  ;;  %2155 = vrot.lane.b32.xlu1 %v2142_v15, %s5067_s22 }
 0x2d6   : > { %2433 = vrot.lane.b32.xlu0 %v2143_v62, %s5073_s30  ;;  %2347 = vrot.lane.b32.xlu1 %v2142_v15, %s5071_s29 }
 0x2da   : > { %2157 = vrot.lane.b32.xlu0 %v2143_v62, %s5067_s22  ;;  %2547 = vrot.lane.b32.xlu1 %v2142_v15, %s5069_s24 }
 0x2de   : > { %2349 = vrot.lane.b32.xlu0 %v2143_v62, %s5071_s29  ;;  %2655 = vrot.lane.b32.xlu1 %v2142_v15, %s7872_s27  ;;  %v4606_v15 = vld [vmem:[%s7843_s3 + $0x40] ss:$8 sm:$0xf0] }
 0x2e0   : > { %v1896_v38 = vpop.f32.mrb[4].mxu0 }
 0x2e1   : > { %v2119_v25 = vmul.f32 %v2117_v17, %v1896_v38  ;;  %v1898_v21 = vpop.f32.mrb[5].mxu0  ;;  %v4600_v38 = vld [vmem:[%s7843_s3 + $0x5] ss:$8 sm:$0xf0] }
 0x2e2   : > { %v2120_v40 = vmul.f32 %v2117_v17, %v1898_v21  ;;  %2849 = vrot.lane.b32.xlu0 %v2143_v62, %s5072_s15  ;;  %2549 = vrot.lane.b32.xlu1 %v2143_v62, %s5069_s24 }
 0x2e3   : > { %v2132_v24 = vadd.f32 %v2130_v60, %v2119_v25 }
 0x2e4   : > { %v2133_v61 = vadd.f32 %v2130_v60, %v2120_v40 }
 0x2e5   : > { %v6698_v35 = vmax.f32 %v2132_v24, 0.0 }
 0x2e6   : > { %v2141_v47 = vmax.f32 %v2133_v61, 0.0  ;;  %2741 = vrot.lane.b32.xlu1 %v2143_v62, %s5074_s14 }
 0x2e7   : > { %2535 = vst [vmem:[#allocation2 + $0x80] sm:$0xf] %v6698_v35  ;;  %2427 = vrot.lane.b32.xlu0 %v6698_v35, %s5073_s30 }
 0x2e8   : > { %2536 = vst [vmem:[#allocation2 + $0x88] sm:$0xf] %v2141_v47 }
 0x2ea   : > { %2657 = vrot.lane.b32.xlu1 %v2143_v62, %s7872_s27  ;;  %v4599_v62 = vld [vmem:[%s7843_s3 + $0x5] ss:$8 sm:$0xf] }
 0x2eb   : > { %2343 = vrot.lane.b32.xlu0 %v6698_v35, %s5071_s29 }
 0x2ee   : > { %2235 = vrot.lane.b32.xlu1 %v6698_v35, %s5068_s23 }
 0x2ef   : > { %2543 = vrot.lane.b32.xlu0 %v6698_v35, %s5069_s24 }
 0x2f2   : > { %2151 = vrot.lane.b32.xlu1 %v6698_v35, %s5067_s22 }
 0x2f3   : > { %2429 = vrot.lane.b32.xlu0 %v2141_v47, %s5073_s30  ;;  %v2038_v58 = vpop.f32.mrb[6].mxu0 }
 0x2f4   : > { %v2123_v12 = vmul.f32 %v2117_v17, %v2038_v58  ;;  %v2040_v43 = vpop.f32.mrb[7].mxu0  ;;  %v6862_v58 = vor.u32 %v4600_v38, %v4599_v62  ;;  %v7896_v38 = vld [vmem:[#allocation6_spill] sm:$0xff] }
 0x2f5   : > { %v2124_v34 = vmul.f32 %v2117_v17, %v2040_v43  ;;  %v2109_v41 = vpop.f32.mrb[6].mxu1  ;;  %v4604_v43 = vld [vmem:[%s7843_s3 + $0x7] ss:$8 sm:$0xf0] }
 0x2f6   : > { %v2136_v22 = vadd.f32 %v2130_v60, %v2123_v12  ;;  %v2125_v19 = vmul.f32 %v2117_v17, %v2109_v41  ;;  %v2111_v13 = vpop.f32.mrb[7].mxu1  ;;  %2735 = vrot.lane.b32.xlu1 %v6698_v35, %s5074_s14  ;;  %v4603_v12 = vld [vmem:[%s7843_s3 + $0x7] ss:$8 sm:$0xf] }
 0x2f7   : > { %v2137_v39 = vadd.f32 %v2130_v60, %v2124_v34  ;;  %v2126_v51 = vmul.f32 %v2117_v17, %v2111_v13  ;;  %2345 = vrot.lane.b32.xlu0 %v2141_v47, %s5071_s29  ;;  %v7895_v13 = vld [vmem:[#allocation7_spill] sm:$0xff] }
 0x2f8   : > { %v2144_v56 = vmax.f32 %v2136_v22, 0.0  ;;  %v2138_v59 = vadd.f32 %v2130_v60, %v2125_v19 }
 0x2f9   : > { %v6717_v44 = vmax.f32 %v2137_v39, 0.0  ;;  %v2139_v9 = vadd.f32 %v2130_v60, %v2126_v51  ;;  %v2150_v60 = vld [vmem:[%s7849_s9] sm:$0xf]  ;;  %v2582_v51 = vrot.slane %v6862_v58, %v7895_v13 }
 0x2fa   : > { %2539 = vst [vmem:[#allocation2 + $0xa0] sm:$0xf] %v2144_v56  ;;  %v2146_v16 = vmax.f32 %v2138_v59, 0.0  ;;  %2651 = vrot.lane.b32.xlu1 %v6698_v35, %s7872_s27  ;;  %v4601_v59 = vld [vmem:[%s7843_s3 + $0x6] ss:$8 sm:$0xf] }
 0x2fb   : > { %2540 = vst [vmem:[#allocation2 + $0xa8] sm:$0xf] %v6717_v44  ;;  %v2147_v7 = vmax.f32 %v2139_v9, 0.0  ;;  %2545 = vrot.lane.b32.xlu0 %v2141_v47, %s5069_s24 }
 0x2fc   : > { %2541 = vst [vmem:[#allocation2 + $0xb0] sm:$0xf] %v2146_v16 }
 0x2fd   : > { %2542 = vst [vmem:[#allocation2 + $0xb8] sm:$0xf] %v2147_v7 }
 0x2fe   : > { %2237 = vrot.lane.b32.xlu1 %v2141_v47, %s5068_s23 }
 0x2ff   : > { %2653 = vrot.lane.b32.xlu0 %v2141_v47, %s7872_s27 }
 0x302   : > { %2153 = vrot.lane.b32.xlu1 %v2141_v47, %s5067_s22 }
 0x303   : > { %2845 = vrot.lane.b32.xlu0 %v2141_v47, %s5072_s15 }
 0x306   : > { %2737 = vrot.lane.b32.xlu1 %v2141_v47, %s5074_s14  ;;  %v6860_v47 = vor.u32 %v4606_v15, %v4605_v52 }
 0x307   : > { %2247 = vrot.lane.b32.xlu0 %v2146_v16, %s5068_s23 }
 0x308   : > { %v2882_v39 = vrot.slane %v6860_v47, %v7895_v13 }
 0x30a   : > { %2439 = vrot.lane.b32.xlu1 %v2146_v16, %s5073_s30 }
 0x30b   : > { %2163 = vrot.lane.b32.xlu0 %v2146_v16, %s5067_s22 }
 0x30e   : > { %2355 = vrot.lane.b32.xlu1 %v2146_v16, %s5071_s29 }
 0x30f   : > { %2747 = vrot.lane.b32.xlu0 %v2146_v16, %s5074_s14 }
 0x312   : > { %2555 = vrot.lane.b32.xlu1 %v2146_v16, %s5069_s24 }
 0x313   : > { %2441 = vrot.lane.b32.xlu0 %v2147_v7, %s5073_s30 }
 0x316   : > { %2663 = vrot.lane.b32.xlu1 %v2146_v16, %s7872_s27 }
 0x317   : > { %2357 = vrot.lane.b32.xlu0 %v2147_v7, %s5071_s29 }
 0x31a   : > { %2249 = vrot.lane.b32.xlu1 %v2147_v7, %s5068_s23 }
 0x31b   : > { %2749 = vrot.lane.b32.xlu0 %v2147_v7, %s5074_s14 }
 0x31e   : > { %2165 = vrot.lane.b32.xlu1 %v2147_v7, %s5067_s22 }
 0x31f   : > { %2551 = vrot.lane.b32.xlu0 %v2144_v56, %s5069_s24 }
 0x322   : > { %2557 = vrot.lane.b32.xlu1 %v2147_v7, %s5069_s24 }
 0x323   : > { %2743 = vrot.lane.b32.xlu0 %v2144_v56, %s5074_s14 }
 0x326   : > { %2665 = vrot.lane.b32.xlu1 %v2147_v7, %s7872_s27 }
 0x327   : > { %2659 = vrot.lane.b32.xlu0 %v2144_v56, %s7872_s27 }
 0x32a   : > { %2851 = vrot.lane.b32.xlu1 %v2144_v56, %s5072_s15 }
 0x32b   : > { %2435 = vrot.lane.b32.xlu0 %v2144_v56, %s5073_s30 }
 0x32e   : > { %2243 = vrot.lane.b32.xlu1 %v2144_v56, %s5068_s23 }
 0x32f   : > { %2351 = vrot.lane.b32.xlu0 %v2144_v56, %s5071_s29 }
 0x332   : > { %2159 = vrot.lane.b32.xlu1 %v2144_v56, %s5067_s22  ;;  %v6882_v56 = vor.u32 %v4604_v43, %v4603_v12 }
 0x333   : > { %2437 = vrot.lane.b32.xlu0 %v6717_v44, %s5073_s30 }
 0x334   : > { %v2774_v54 = vrot.slane %v6882_v56, %v7895_v13 }
 0x336   : > { %2245 = vrot.lane.b32.xlu1 %v6717_v44, %s5068_s23 }
 0x337   : > { %2161 = vrot.lane.b32.xlu0 %v6717_v44, %s5067_s22 }
 0x33a   : > { %2353 = vrot.lane.b32.xlu1 %v6717_v44, %s5071_s29 }
 0x33b   : > { %2843 = vrot.lane.b32.xlu0 %v6698_v35, %s5072_s15  ;;  %v2386_v35 = vrot.slane %v6836_v18, %v7894_v31 }
 0x33c   : > { %v6766_v37 = vpop.permute.xlu0 %2739  ;;  %v6768_v14 = vpop.permute.xlu1 %2239 }
 0x33e   : > { %2553 = vrot.lane.b32.xlu1 %v6717_v44, %s5069_s24 }
 0x33f   : > { %2745 = vrot.lane.b32.xlu0 %v6717_v44, %s5074_s14 }
 0x340   : > { %v6782_v32 = vpop.permute.xlu0 %2847  ;;  %v6784_v45 = vpop.permute.xlu1 %2431 }
 0x342   : > { %2661 = vrot.lane.b32.xlu1 %v6717_v44, %s7872_s27 }
 0x343   : > { %2857 = vrot.lane.b32.xlu0 %v2147_v7, %s5072_s15 }
 0x344   : > { %v6799_v28 = vpop.permute.xlu0 %2241  ;;  %v6801_v36 = vpop.permute.xlu1 %2155 }
 0x345   : > { %v2255_v33 = vsel %vm1160_vm2, %v6768_v14, %v6799_v28 }
 0x346   : > { %v2306_v23 = vmul.f32 %v2278_v1, %v2255_v33  ;;  %2855 = vrot.lane.b32.xlu1 %v2146_v16, %s5072_s15 }
 0x347   : > { %2853 = vrot.lane.b32.xlu0 %v6717_v44, %s5072_s15  ;;  %v4602_v44 = vld [vmem:[%s7843_s3 + $0x6] ss:$8 sm:$0xf0] }
 0x348   : > { %v2322_v2 = vrot.slane %v2306_v23, 4  ;;  %v6823_v17 = vpop.permute.xlu0 %2433  ;;  %v6825_v20 = vpop.permute.xlu1 %2347  ;;  %v6904_v1 = vor.u32 %v4602_v44, %v4601_v59 }
 0x349   : > { %v2447_v42 = vsel %vm1332_vm4, %v6784_v45, %v6823_v17 }
 0x34a   : > { %2338 = vst [vmem:[#allocation2 + $0x18] sm:$0xf0] %v2322_v2  ;;  %v2498_v3 = vmul.f32 %v2470_v8, %v2447_v42  ;;  %3281 = vperm.xlu1 %5053, %v2149_v27   ;;  %v2690_v27 = vrot.slane %v6904_v1, %v7895_v13 }
 0x34b   : > { %3294 = vperm.xlu0 %5052, %v2150_v60  }
 0x34c   : > { %v2514_v25 = vrot.slane %v2498_v3, 4  ;;  %v6850_v21 = vpop.permute.xlu0 %2157  ;;  %v6852_v40 = vpop.permute.xlu1 %2547 }
 0x34d   : > { %v2171_v24 = vsel %vm1075_vm1, %v6801_v36, %v6850_v21 }
 0x34e   : > { %2530 = vst [vmem:[#allocation2 + $0x58] sm:$0xf0] %v2514_v25  ;;  %v2222_v61 = vmul.f32 %v2194_v57, %v2171_v24  ;;  %v2462_v25 = vrot.slane %v6790_v0, %v7896_v38  ;;  %v2466_v24 = vrot.slane %v6790_v0, %v7895_v13 }
 0x350   : > { %2230 = vst [vmem:[#allocation2 + $0x18] sm:$0xf] %v2222_v61  ;;  %v6870_v34 = vpop.permute.xlu0 %2349  ;;  %v6872_v41 = vpop.permute.xlu1 %2655 }
 0x351   : > { %v2363_v22 = vsel %vm1246_vm3, %v6825_v20, %v6870_v34 }
 0x352   : > { %v2414_v19 = vmul.f32 %v2386_v35, %v2363_v22 }
 0x354   : > { %2422 = vst [vmem:[#allocation2 + $0x58] sm:$0xf] %v2414_v19  ;;  %v6890_v9 = vpop.permute.xlu0 %2849  ;;  %v6892_v16 = vpop.permute.xlu1 %2549 }
 0x355   : > { %v2863_v7 = vsel %vm1684_vm8, %v6782_v32, %v6890_v9  ;;  %v2563_v53 = vsel %vm1426_vm6, %v6852_v40, %v6892_v16 }
 0x356   : > { %v2913_v46 = vmul.f32 %v2882_v39, %v2863_v7  ;;  %v2613_v30 = vmul.f32 %v2582_v51, %v2563_v53  ;;  %v2378_v39 = vrot.slane %v6836_v18, %v7896_v38  ;;  %v2382_v51 = vrot.slane %v6836_v18, %v7895_v13 }
 0x357   : > { %v2930_v11 = vld [vmem:[#allocation2 + $0x18] sm:$0xff] }
 0x358   : > { %2921 = vst [vmem:[#allocation2 + $0x110] sm:$0xf] %v2913_v46  ;;  %v2629_v5 = vrot.slane %v2613_v30, 4  ;;  %v6906_v26 = vpop.permute.xlu1 %2741 }
 0x359   : > { %v2755_v33 = vsel %vm1598_vm7, %v6766_v37, %v6906_v26  ;;  %v6912_v23 = vpop.permute.xlu0 %2427 }
 0x35a   : > { %2645 = vst [vmem:[#allocation2 + $0x90] sm:$0xf0] %v2629_v5  ;;  %v2805_v8 = vmul.f32 %v2774_v54, %v2755_v33  ;;  %v7897_v5 = vld [vmem:[#allocation8_spill] sm:$0xff] }
 0x35b   : > { %v2938_v48 = vld [vmem:[#allocation2 + $0x58] sm:$0xff]  ;;  %v2574_v33 = vrot.slane %v6862_v58, %v7897_v5 }
 0x35c   : > { %v2821_v2 = vrot.slane %v2805_v8, 4  ;;  %v6916_v60 = vpop.permute.xlu1 %2657  ;;  %v4978_v42 = vpack.c.bf16 %v2938_v48, %v2930_v11  ;;  %v2578_v8 = vrot.slane %v6862_v58, %v7896_v38 }
 0x35d   : > { %v2671_v3 = vsel %vm1512_vm5, %v6872_v41, %v6916_v60  ;;  %v6922_v57 = vpop.permute.xlu0 %2343 }
 0x35e   : > { %2837 = vst [vmem:[#allocation2 + $0xd0] sm:$0xf0] %v2821_v2  ;;  %v2721_v52 = vmul.f32 %v2690_v27, %v2671_v3  ;;  %4979 = vmatprep.subr.bf16.mxu1 %v4978_v42  ;;  %v2270_v2 = vrot.slane %v6772_v55, %v7896_v38  ;;  %v2274_v42 = vrot.slane %v6772_v55, %v7895_v13 }
 0x360   : > { %2729 = vst [vmem:[#allocation2 + $0xd0] sm:$0xf] %v2721_v52  ;;  %v6924_v15 = vpop.permute.xlu1 %2235 }
 0x361   : > { %v6926_v62 = vpop.permute.xlu0 %2543 }
 0x364   : > { %v6932_v61 = vpop.permute.xlu1 %2151 }
 0x365   : > { %v2430_v35 = vpop.permute.xlu0 %2429 }
 0x366   : > { %v2448_v12 = vsel %vm1332_vm4, %v2430_v35, %v6784_v45  ;;  %v2449_v43 = vsel %vm1332_vm4, %v6912_v23, %v2430_v35 }
 0x367   : > { %v2496_v22 = vmul.f32 %v2462_v25, %v2449_v43  ;;  %v2497_v19 = vmul.f32 %v2466_v24, %v2448_v12  ;;  %v2682_v25 = vrot.slane %v6904_v1, %v7897_v5  ;;  %v2686_v24 = vrot.slane %v6904_v1, %v7896_v38 }
 0x368   : > { %v6944_v59 = vpop.permute.xlu1 %2735  ;;  %v2190_v12 = vrot.slane %v6813_v50, %v7895_v13 }
 0x369   : > { %v2512_v44 = vrot.slane %v2496_v22, 4  ;;  %v2513_v7 = vrot.slane %v2497_v19, 4  ;;  %v2346_v53 = vpop.permute.xlu0 %2345 }
 0x36a   : > { %v2364_v45 = vsel %vm1246_vm3, %v2346_v53, %v6825_v20  ;;  %v2365_v46 = vsel %vm1246_vm3, %v6922_v57, %v2346_v53 }
 0x36b   : > { %2528 = vst [vmem:[#allocation2 + $0x48] sm:$0xf0] %v2512_v44  ;;  %2529 = vst [vmem:[#allocation2 + $0x50] sm:$0xf0] %v2513_v7  ;;  %v2412_v30 = vmul.f32 %v2378_v39, %v2365_v46  ;;  %v2413_v54 = vmul.f32 %v2382_v51, %v2364_v45 }
 0x36c   : > { %v6956_v27 = vpop.permute.xlu1 %2651 }
 0x36d   : > { %2420 = vst [vmem:[#allocation2 + $0x48] sm:$0xf] %v2412_v30  ;;  %2421 = vst [vmem:[#allocation2 + $0x50] sm:$0xf] %v2413_v54  ;;  %v2546_v11 = vpop.permute.xlu0 %2545 }
 0x36e   : > { %v2564_v20 = vsel %vm1426_vm6, %v2546_v11, %v6852_v40  ;;  %v2565_v48 = vsel %vm1426_vm6, %v6926_v62, %v2546_v11  ;;  %v2186_v40 = vrot.slane %v6813_v50, %v7896_v38 }
 0x36f   : > { %v2611_v3 = vmul.f32 %v2574_v33, %v2565_v48  ;;  %v2612_v52 = vmul.f32 %v2578_v8, %v2564_v20  ;;  %v2766_v48 = vrot.slane %v6882_v56, %v7897_v5 }
 0x370   : > { %v2238_v35 = vpop.permute.xlu1 %2237 }
 0x371   : > { %v2627_v43 = vrot.slane %v2611_v3, 4  ;;  %v2628_v22 = vrot.slane %v2612_v52, 4  ;;  %v2256_v19 = vsel %vm1160_vm2, %v2238_v35, %v6768_v14  ;;  %v2257_v39 = vsel %vm1160_vm2, %v6924_v15, %v2238_v35  ;;  %v2654_v51 = vpop.permute.xlu0 %2653 }
 0x372   : > { %v2304_v44 = vmul.f32 %v2270_v2, %v2257_v39  ;;  %v2305_v7 = vmul.f32 %v2274_v42, %v2256_v19  ;;  %v2672_v53 = vsel %vm1512_vm5, %v2654_v51, %v6872_v41  ;;  %v2673_v45 = vsel %vm1512_vm5, %v6956_v27, %v2654_v51 }
 0x373   : > { %2643 = vst [vmem:[#allocation2 + $0x80] sm:$0xf0] %v2627_v43  ;;  %2644 = vst [vmem:[#allocation2 + $0x88] sm:$0xf0] %v2628_v22  ;;  %v2719_v46 = vmul.f32 %v2682_v25, %v2673_v45  ;;  %v2720_v30 = vmul.f32 %v2686_v24, %v2672_v53  ;;  %v2878_v14 = vrot.slane %v6860_v47, %v7896_v38 }
 0x374   : > { %v2320_v54 = vrot.slane %v2304_v44, 4  ;;  %v2321_v33 = vrot.slane %v2305_v7, 4  ;;  %v2154_v8 = vpop.permute.xlu1 %2153  ;;  %v2936_v51 = vld [vmem:[#allocation2 + $0x48] sm:$0xff] }
 0x375   : > { %2727 = vst [vmem:[#allocation2 + $0xc0] sm:$0xf] %v2719_v46  ;;  %2728 = vst [vmem:[#allocation2 + $0xc8] sm:$0xf] %v2720_v30  ;;  %v2172_v41 = vsel %vm1075_vm1, %v2154_v8, %v6801_v36  ;;  %v2173_v11 = vsel %vm1075_vm1, %v6932_v61, %v2154_v8  ;;  %v6996_v20 = vpop.permute.xlu0 %2845  ;;  %v2770_v36 = vrot.slane %v6882_v56, %v7896_v38 }
 0x376   : > { %2336 = vst [vmem:[#allocation2 + $0x8] sm:$0xf0] %v2320_v54  ;;  %2337 = vst [vmem:[#allocation2 + $0x10] sm:$0xf0] %v2321_v33  ;;  %v2220_v2 = vmul.f32 %v2186_v40, %v2173_v11  ;;  %v2221_v42 = vmul.f32 %v2190_v12, %v2172_v41  ;;  %v2864_v3 = vsel %vm1684_vm8, %v6996_v20, %v6782_v32 }
 0x377   : > { %v2912_v52 = vmul.f32 %v2878_v14, %v2864_v3  ;;  %v2458_v14 = vrot.slane %v6790_v0, %v7897_v5  ;;  %v2486_v54 = vrot.slane %v6790_v0, %v6451_v29  ;;  %v2402_v3 = vrot.slane %v6836_v18, %v6451_v29 }
 0x378   : > { %2228 = vst [vmem:[#allocation2 + $0x8] sm:$0xf] %v2220_v2  ;;  %2229 = vst [vmem:[#allocation2 + $0x10] sm:$0xf] %v2221_v42  ;;  %v2738_v25 = vpop.permute.xlu1 %2737  ;;  %v2374_v42 = vrot.slane %v6836_v18, %v7897_v5 }
 0x379   : > { %2920 = vst [vmem:[#allocation2 + $0x108] sm:$0xf] %v2912_v52  ;;  %v2756_v24 = vsel %vm1598_vm7, %v2738_v25, %v6766_v37  ;;  %v2757_v35 = vsel %vm1598_vm7, %v6944_v59, %v2738_v25  ;;  %v7012_v40 = vpop.permute.xlu0 %2247  ;;  %v2937_v37 = vld [vmem:[#allocation2 + $0x50] sm:$0xff] }
 0x37a   : > { %v2803_v12 = vmul.f32 %v2766_v48, %v2757_v35  ;;  %v2804_v32 = vmul.f32 %v2770_v36, %v2756_v24 }
 0x37c   : > { %v2819_v43 = vrot.slane %v2803_v12, 4  ;;  %v2820_v22 = vrot.slane %v2804_v32, 4  ;;  %v7014_v19 = vpop.permute.xlu1 %2439  ;;  %v2266_v12 = vrot.slane %v6772_v55, %v7897_v5  ;;  %v2294_v32 = vrot.slane %v6772_v55, %v6451_v29 }
 0x37d   : > { %v7016_v39 = vpop.permute.xlu0 %2163 }
 0x37e   : > { %2835 = vst [vmem:[#allocation2 + $0xc0] sm:$0xf0] %v2819_v43  ;;  %2836 = vst [vmem:[#allocation2 + $0xc8] sm:$0xf0] %v2820_v22 }
 0x37f   : > { %v2928_v44 = vld [vmem:[#allocation2 + $0x8] sm:$0xff]  ;;  %v2929_v7 = vld [vmem:[#allocation2 + $0x10] sm:$0xff] }
 0x380   : > { %v7018_v53 = vpop.permute.xlu1 %2355  ;;  %v4970_v45 = vpack.c.bf16 %v2936_v51, %v2928_v44  ;;  %v4980_v46 = vpack.c.bf16 %v2937_v37, %v2929_v7  ;;  %v2790_v51 = vrot.slane %v6882_v56, %v6528_v6  ;;  %v2794_v44 = vrot.slane %v6882_v56, %v6451_v29 }
 0x381   : > { %v7020_v30 = vpop.permute.xlu0 %2747 }
 0x382   : > { %4971 = vmatprep.subr.bf16.mxu0 %v4970_v45  ;;  %4981 = vmatpush1.bf16.msra.mxu1 %v4980_v46  ;;  %v2182_v46 = vrot.slane %v6813_v50, %v7897_v5 }
 0x384   : > { %v7026_v33 = vpop.permute.xlu1 %2555 }
 0x385   : > { %v2442_v8 = vpop.permute.xlu0 %2441 }
 0x386   : > { %v2443_v41 = vsel %vm1332_vm4, %v7014_v19, %v2442_v8  ;;  %v2450_v11 = vsel %vm1332_vm4, %v2442_v8, %v6912_v23 }
 0x387   : > { %v2495_v48 = vmul.f32 %v2458_v14, %v2450_v11  ;;  %v2502_v2 = vmul.f32 %v2486_v54, %v2443_v41  ;;  %v2210_v14 = vrot.slane %v6813_v50, %v6451_v29 }
 0x388   : > { %v7038_v36 = vpop.permute.xlu1 %2663 }
 0x389   : > { %v2511_v52 = vrot.slane %v2495_v48, 4  ;;  %v2518_v25 = vrot.slane %v2502_v2, 4  ;;  %v2358_v24 = vpop.permute.xlu0 %2357 }
 0x38a   : > { %v2359_v35 = vsel %vm1246_vm3, %v7018_v53, %v2358_v24  ;;  %v2366_v23 = vsel %vm1246_vm3, %v2358_v24, %v6922_v57 }
 0x38b   : > { %2527 = vst [vmem:[#allocation2 + $0x40] sm:$0xf0] %v2511_v52  ;;  %2534 = vst [vmem:[#allocation2 + $0x78] sm:$0xf0] %v2518_v25  ;;  %v2411_v43 = vmul.f32 %v2374_v42, %v2366_v23  ;;  %v2418_v22 = vmul.f32 %v2402_v3, %v2359_v35  ;;  %v2598_v25 = vrot.slane %v6862_v58, %v6528_v6 }
 0x38c   : > { %v2250_v7 = vpop.permute.xlu1 %2249 }
 0x38d   : > { %2419 = vst [vmem:[#allocation2 + $0x40] sm:$0xf] %v2411_v43  ;;  %2426 = vst [vmem:[#allocation2 + $0x78] sm:$0xf] %v2418_v22  ;;  %v2251_v57 = vsel %vm1160_vm2, %v7012_v40, %v2250_v7  ;;  %v2258_v37 = vsel %vm1160_vm2, %v2250_v7, %v6924_v15  ;;  %v2750_v45 = vpop.permute.xlu0 %2749  ;;  %v2586_v15 = vrot.slane %v6862_v58, %v7894_v31 }
 0x38e   : > { %v2303_v54 = vmul.f32 %v2266_v12, %v2258_v37  ;;  %v2310_v8 = vmul.f32 %v2294_v32, %v2251_v57  ;;  %v2751_v41 = vsel %vm1598_vm7, %v7020_v30, %v2750_v45  ;;  %v2758_v11 = vsel %vm1598_vm7, %v2750_v45, %v6944_v59 }
 0x38f   : > { %v2809_v48 = vmul.f32 %v2790_v51, %v2751_v41  ;;  %v2810_v2 = vmul.f32 %v2794_v44, %v2758_v11  ;;  %v2602_v51 = vrot.slane %v6862_v58, %v6451_v29  ;;  %v2710_v41 = vrot.slane %v6904_v1, %v6451_v29 }
 0x390   : > { %v2319_v42 = vrot.slane %v2303_v54, 4  ;;  %v2326_v3 = vrot.slane %v2310_v8, 4  ;;  %v2166_v52 = vpop.permute.xlu1 %2165 }
 0x391   : > { %v2825_v24 = vrot.slane %v2809_v48, 4  ;;  %v2826_v35 = vrot.slane %v2810_v2, 4  ;;  %v2167_v23 = vsel %vm1075_vm1, %v7016_v39, %v2166_v52  ;;  %v2174_v59 = vsel %vm1075_vm1, %v2166_v52, %v6932_v61  ;;  %v7080_v12 = vpop.permute.xlu0 %2551 }
 0x392   : > { %2335 = vst [vmem:[#allocation2] sm:$0xf0] %v2319_v42  ;;  %2342 = vst [vmem:[#allocation2 + $0x38] sm:$0xf0] %v2326_v3  ;;  %v2219_v32 = vmul.f32 %v2182_v46, %v2174_v59  ;;  %v2226_v43 = vmul.f32 %v2210_v14, %v2167_v23  ;;  %v2562_v22 = vsel %vm1426_vm6, %v6892_v16, %v7080_v12  ;;  %v2952_v59 = vld [vmem:[#allocation2 + $0xc8] sm:$0xff] }
 0x393   : > { %2841 = vst [vmem:[#allocation2 + $0xf0] sm:$0xf0] %v2825_v24  ;;  %2842 = vst [vmem:[#allocation2 + $0xf8] sm:$0xf0] %v2826_v35  ;;  %v2614_v44 = vmul.f32 %v2586_v15, %v2562_v22  ;;  %v2778_v61 = vrot.slane %v6882_v56, %v7894_v31  ;;  %v2706_v46 = vrot.slane %v6904_v1, %v6528_v6 }
 0x394   : > { %2227 = vst [vmem:[#allocation2] sm:$0xf] %v2219_v32  ;;  %2234 = vst [vmem:[#allocation2 + $0x38] sm:$0xf] %v2226_v43  ;;  %v2558_v7 = vpop.permute.xlu1 %2557  ;;  %v2886_v23 = vrot.slane %v6860_v47, %v7894_v31  ;;  %v2935_v22 = vld [vmem:[#allocation2 + $0x40] sm:$0xff] }
 0x395   : > { %v2630_v57 = vrot.slane %v2614_v44, 4  ;;  %v2559_v37 = vsel %vm1426_vm6, %v7026_v33, %v2558_v7  ;;  %v2566_v16 = vsel %vm1426_vm6, %v2558_v7, %v6926_v62  ;;  %v7096_v45 = vpop.permute.xlu0 %2743  ;;  %v2694_v62 = vrot.slane %v6904_v1, %v7894_v31 }
 0x396   : > { %v2617_v14 = vmul.f32 %v2598_v25, %v2559_v37  ;;  %v2618_v54 = vmul.f32 %v2602_v51, %v2566_v16  ;;  %v2754_v8 = vsel %vm1598_vm7, %v6906_v26, %v7096_v45  ;;  %v2951_v37 = vld [vmem:[#allocation2 + $0xc0] sm:$0xff] }
 0x397   : > { %2646 = vst [vmem:[#allocation2 + $0x98] sm:$0xf0] %v2630_v57  ;;  %v2806_v11 = vmul.f32 %v2778_v61, %v2754_v8  ;;  %v2944_v61 = vld [vmem:[#allocation2 + $0x88] sm:$0xff]  ;;  %v2390_v8 = vrot.slane %v6836_v18, %v6385_v10 }
 0x398   : > { %v2633_v48 = vrot.slane %v2617_v14, 4  ;;  %v2634_v2 = vrot.slane %v2618_v54, 4  ;;  %v2666_v15 = vpop.permute.xlu1 %2665  ;;  %v4974_v57 = vpack.c.bf16 %v2952_v59, %v2944_v61  ;;  %v2282_v14 = vrot.slane %v6772_v55, %v6385_v10 }
 0x399   : > { %v2822_v42 = vrot.slane %v2806_v11, 4  ;;  %v2667_v3 = vsel %vm1512_vm5, %v7038_v36, %v2666_v15  ;;  %v2674_v26 = vsel %vm1512_vm5, %v2666_v15, %v6956_v27  ;;  %v7114_v52 = vpop.permute.xlu0 %2659  ;;  %v2474_v27 = vrot.slane %v6790_v0, %v6385_v10 }
 0x39a   : > { %2649 = vst [vmem:[#allocation2 + $0xb0] sm:$0xf0] %v2633_v48  ;;  %2650 = vst [vmem:[#allocation2 + $0xb8] sm:$0xf0] %v2634_v2  ;;  %v2725_v25 = vmul.f32 %v2706_v46, %v2667_v3  ;;  %v2726_v24 = vmul.f32 %v2710_v41, %v2674_v26  ;;  %v2670_v35 = vsel %vm1512_vm5, %v6916_v60, %v7114_v52  ;;  %v2943_v41 = vld [vmem:[#allocation2 + $0x80] sm:$0xff] }
 0x39b   : > { %2838 = vst [vmem:[#allocation2 + $0xd8] sm:$0xf0] %v2822_v42  ;;  %v2722_v32 = vmul.f32 %v2694_v62, %v2670_v35  ;;  %v2927_v43 = vld [vmem:[#allocation2] sm:$0xff]  ;;  %v4976_v11 = vpack.c.bf16 %v2951_v37, %v2943_v41  ;;  %v2960_v42 = vld [vmem:[#allocation2 + $0x108] sm:$0xf]  ;;  %v2198_v3 = vrot.slane %v6813_v50, %v6385_v10  ;;  %v2290_v61 = vrot.slane %v6772_v55, %v6528_v6 }
 0x39c   : > { %2733 = vst [vmem:[#allocation2 + $0xf0] sm:$0xf] %v2725_v25  ;;  %2734 = vst [vmem:[#allocation2 + $0xf8] sm:$0xf] %v2726_v24  ;;  %v7124_v51 = vpop.permute.xlu1 %2851  ;;  %v4972_v44 = vpack.c.bf16 %v2935_v22, %v2927_v43  ;;  %v2482_v25 = vrot.slane %v6790_v0, %v6528_v6  ;;  %v2953_v24 = vld [vmem:[#allocation2 + $0xd0] sm:$0xff] }
 0x39d   : > { %2730 = vst [vmem:[#allocation2 + $0xd8] sm:$0xf] %v2722_v32  ;;  %v2862_v60 = vsel %vm1684_vm8, %v6890_v9, %v7124_v51  ;;  %v2436_v7 = vpop.permute.xlu0 %2435  ;;  %v2945_v22 = vld [vmem:[#allocation2 + $0x90] sm:$0xff] }
 0x39e   : > { %v2914_v16 = vmul.f32 %v2886_v23, %v2862_v60  ;;  %v2446_v46 = vsel %vm1332_vm4, %v6823_v17, %v2436_v7  ;;  %4973 = vmatpush1.bf16.msra.mxu0 %v4972_v44  ;;  %v2946_v59 = vld [vmem:[#allocation2 + $0x98] sm:$0xff]  ;;  %v2286_v44 = vrot.slane %v6772_v55, %v6525_v4  ;;  %v4984_v37 = vpack.c.bf16 %v2953_v24, %v2945_v22 }
 0x39f   : > { %v2499_v54 = vmul.f32 %v2474_v27, %v2446_v46  ;;  %4975 = vmatprep.subr.bf16.mxu0 %v4974_v57  ;;  %v2206_v55 = vrot.slane %v6813_v50, %v6528_v6  ;;  %v2874_v24 = vrot.slane %v6860_v47, %v7897_v5 }
 0x3a0   : > { %2922 = vst [vmem:[#allocation2 + $0x118] sm:$0xf] %v2914_v16  ;;  %v2244_v9 = vpop.permute.xlu1 %2243 }
 0x3a1   : > { %v2515_v62 = vrot.slane %v2499_v54, 4  ;;  %v2254_v48 = vsel %vm1160_vm2, %v6799_v28, %v2244_v9  ;;  %v7140_v2 = vpop.permute.xlu0 %2351  ;;  %v2478_v28 = vrot.slane %v6790_v0, %v6525_v4 }
 0x3a2   : > { %v2307_v17 = vmul.f32 %v2282_v14, %v2254_v48  ;;  %v2362_v15 = vsel %vm1246_vm3, %v6870_v34, %v7140_v2  ;;  %4977 = vmatpush1.bf16.msra.mxu0 %v4976_v11  ;;  %v2202_v14 = vrot.slane %v6813_v50, %v6525_v4 }
 0x3a3   : > { %2531 = vst [vmem:[#allocation2 + $0x60] sm:$0xf0] %v2515_v62  ;;  %v2415_v26 = vmul.f32 %v2390_v8, %v2362_v15  ;;  %4607 = vmatprep.subr.msk.mxu0 %vm1045_vm0, %v2960_v42  ;;  %v2934_v8 = vld [vmem:[#allocation2 + $0x38] sm:$0xff] }
 0x3a4   : > { %v2323_v35 = vrot.slane %v2307_v17, 4  ;;  %v2160_v23 = vpop.permute.xlu1 %2159  ;;  %v2954_v34 = vld [vmem:[#allocation2 + $0xd8] sm:$0xff] }
 0x3a5   : > { %2423 = vst [vmem:[#allocation2 + $0x60] sm:$0xf] %v2415_v26  ;;  %v2170_v32 = vsel %vm1075_vm1, %v6850_v21, %v2160_v23  ;;  %v2438_v27 = vpop.permute.xlu0 %2437  ;;  %v4982_v43 = vpack.c.bf16 %v2954_v34, %v2946_v59 }
 0x3a6   : > { %2339 = vst [vmem:[#allocation2 + $0x20] sm:$0xf0] %v2323_v35  ;;  %v2223_v0 = vmul.f32 %v2198_v3, %v2170_v32  ;;  %v2444_v60 = vsel %vm1332_vm4, %v2438_v27, %v7014_v19  ;;  %v2445_v57 = vsel %vm1332_vm4, %v2436_v7, %v2438_v27  ;;  %v2394_v19 = vrot.slane %v6836_v18, %v6525_v4  ;;  %v7187_v3 = vld [vmem:[%s7847_s7] sm:$0xf] }
 0x3a7   : > { %v2500_v21 = vmul.f32 %v2478_v28, %v2445_v57  ;;  %v2501_v16 = vmul.f32 %v2482_v25, %v2444_v60  ;;  %4983 = vmatprep.subr.bf16.mxu1 %v4982_v43  ;;  %v2962_v46 = vld [vmem:[#allocation2 + $0x118] sm:$0xf]  ;;  %v2398_v7 = vrot.slane %v6836_v18, %v6528_v6  ;;  %v2961_v28 = vld [vmem:[#allocation2 + $0x110] sm:$0xf]  ;;  %v2590_v27 = vrot.slane %v6862_v58, %v6385_v10 }
 0x3a8   : > { %2231 = vst [vmem:[#allocation2 + $0x20] sm:$0xf] %v2223_v0  ;;  %4985 = vmatpush1.bf16.msra.mxu1 %v4984_v37  ;;  %v2246_v54 = vpop.permute.xlu1 %2245  ;;  %v2786_v0 = vrot.slane %v6882_v56, %v6525_v4  ;;  %v2698_v37 = vrot.slane %v6904_v1, %v6385_v10 }
 0x3a9   : > { %v2516_v41 = vrot.slane %v2500_v21, 4  ;;  %v2517_v11 = vrot.slane %v2501_v16, 4  ;;  %v2252_v62 = vsel %vm1160_vm2, %v2246_v54, %v7012_v40  ;;  %v2253_v50 = vsel %vm1160_vm2, %v2244_v9, %v2246_v54  ;;  %4610 = vmatprep.subr.msk.mxu1 %vm1045_vm0, %v2962_v46  ;;  %v2162_v48 = vpop.permute.xlu0 %2161  ;;  %v2942_v40 = vld [vmem:[#allocation2 + $0x78] sm:$0xff] }
 0x3aa   : > { %v2308_v17 = vmul.f32 %v2286_v44, %v2253_v50  ;;  %v2309_v15 = vmul.f32 %v2290_v61, %v2252_v62  ;;  %v2168_v18 = vsel %vm1075_vm1, %v2162_v48, %v7016_v39  ;;  %v2169_v42 = vsel %vm1075_vm1, %v2160_v23, %v2162_v48 }
 0x3ab   : > { %2532 = vst [vmem:[#allocation2 + $0x68] sm:$0xf0] %v2516_v41  ;;  %2533 = vst [vmem:[#allocation2 + $0x70] sm:$0xf0] %v2517_v11  ;;  %v2224_v9 = vmul.f32 %v2202_v14, %v2169_v42  ;;  %v2225_v26 = vmul.f32 %v2206_v55, %v2168_v18  ;;  %v4994_v25 = vpack.c.bf16 %v2942_v40, %v2934_v8  ;;  %v2958_v18 = vld [vmem:[#allocation2 + $0xf8] sm:$0xff] }
 0x3ac   : > { %v2324_v35 = vrot.slane %v2308_v17, 4  ;;  %v2325_v39 = vrot.slane %v2309_v15, 4  ;;  %4611 = vmatpush1.msk.msra.mxu1 %vm1045_vm0, %v2961_v28  ;;  %v2354_v23 = vpop.permute.xlu1 %2353  ;;  %v2594_v44 = vrot.slane %v6862_v58, %v6525_v4  ;;  %v2782_v61 = vrot.slane %v6882_v56, %v6385_v10 }
 0x3ad   : > { %2232 = vst [vmem:[#allocation2 + $0x28] sm:$0xf] %v2224_v9  ;;  %2233 = vst [vmem:[#allocation2 + $0x30] sm:$0xf] %v2225_v26  ;;  %v2360_v59 = vsel %vm1246_vm3, %v2354_v23, %v7018_v53  ;;  %v2361_v34 = vsel %vm1246_vm3, %v7140_v2, %v2354_v23  ;;  %4612 = vmatmul.mubr.msk.f32.vlgmr.msra.gmra.mrb[8].mxu1 %vm2967_vm10, %v7187_v3  ;;  %4995 = vmatprep.subr.bf16.mxu1 %v4994_v25  ;;  %v2844_v32 = vpop.permute.xlu0 %2843  ;;  %v2950_v23 = vld [vmem:[#allocation2 + $0xb8] sm:$0xff] }
 0x3ae   : > { %2340 = vst [vmem:[#allocation2 + $0x28] sm:$0xf0] %v2324_v35  ;;  %2341 = vst [vmem:[#allocation2 + $0x30] sm:$0xf0] %v2325_v39  ;;  %v2416_v43 = vmul.f32 %v2394_v19, %v2361_v34  ;;  %v2417_v22 = vmul.f32 %v2398_v7, %v2360_v59  ;;  %v2865_v53 = vsel %vm1684_vm8, %v2844_v32, %v6996_v20  ;;  %3272 = vmatprep.mubr.f32.mxu1 %v7886_v63  ;;  %v2939_v39 = vld [vmem:[#allocation2 + $0x60] sm:$0xff] }
 0x3af   : > { %v2911_v2 = vmul.f32 %v2874_v24, %v2865_v53  ;;  %v2702_v21 = vrot.slane %v6904_v1, %v6525_v4  ;;  %v2898_v48 = vrot.slane %v6860_v47, %v6528_v6  ;;  %v2931_v15 = vld [vmem:[#allocation2 + $0x20] sm:$0xff]  ;;  %v2894_v42 = vrot.slane %v6860_v47, %v6525_v4  ;;  %v2957_v53 = vld [vmem:[#allocation2 + $0xf0] sm:$0xff] }
 0x3b0   : > { %2424 = vst [vmem:[#allocation2 + $0x68] sm:$0xf] %v2416_v43  ;;  %2425 = vst [vmem:[#allocation2 + $0x70] sm:$0xf] %v2417_v22  ;;  %v2554_v60 = vpop.permute.xlu1 %2553 }
 0x3b1   : > { %2919 = vst [vmem:[#allocation2 + $0x100] sm:$0xf] %v2911_v2  ;;  %v2560_v20 = vsel %vm1426_vm6, %v2554_v60, %v7026_v33  ;;  %v2561_v58 = vsel %vm1426_vm6, %v7080_v12, %v2554_v60  ;;  %v2746_v57 = vpop.permute.xlu0 %2745  ;;  %v2902_v12 = vrot.slane %v6860_v47, %v6451_v29 }
 0x3b2   : > { %v2615_v56 = vmul.f32 %v2590_v27, %v2561_v58  ;;  %v2616_v16 = vmul.f32 %v2594_v44, %v2560_v20  ;;  %v2752_v46 = vsel %vm1598_vm7, %v2746_v57, %v7020_v30  ;;  %v2753_v33 = vsel %vm1598_vm7, %v7096_v45, %v2746_v57 }
 0x3b3   : > { %v2807_v14 = vmul.f32 %v2782_v61, %v2753_v33  ;;  %v2808_v55 = vmul.f32 %v2786_v0, %v2752_v46  ;;  %v2949_v61 = vld [vmem:[#allocation2 + $0xb0] sm:$0xff] }
 0x3b4   : > { %v2631_v54 = vrot.slane %v2615_v56, 4  ;;  %v2632_v19 = vrot.slane %v2616_v16, 4  ;;  %v2662_v7 = vpop.permute.xlu1 %2661  ;;  %v5000_v0 = vpack.c.bf16 %v2957_v53, %v2949_v61  ;;  %v4623_v53 = vld [vmem:[%s7843_s3 + $0x3] ss:$8 sm:$0xf] }
 0x3b5   : > { %v2823_v8 = vrot.slane %v2807_v14, 4  ;;  %v2824_v1 = vrot.slane %v2808_v55, 4  ;;  %v2668_v41 = vsel %vm1512_vm5, %v2662_v7, %v7038_v36  ;;  %v2669_v30 = vsel %vm1512_vm5, %v7114_v52, %v2662_v7  ;;  %v2858_v11 = vpop.permute.xlu0 %2857  ;;  %v2932_v17 = vld [vmem:[#allocation2 + $0x28] sm:$0xff]  ;;  %v2933_v9 = vld [vmem:[#allocation2 + $0x30] sm:$0xff] }
 0x3b6   : > { %2647 = vst [vmem:[#allocation2 + $0xa0] sm:$0xf0] %v2631_v54  ;;  %2648 = vst [vmem:[#allocation2 + $0xa8] sm:$0xf0] %v2632_v19  ;;  %v2723_v45 = vmul.f32 %v2698_v37, %v2669_v30  ;;  %v2724_v62 = vmul.f32 %v2702_v21, %v2668_v41  ;;  %v2866_v50 = vsel %vm1684_vm8, %v2858_v11, %v2844_v32 }
 0x3b7   : > { %2839 = vst [vmem:[#allocation2 + $0xe0] sm:$0xf0] %v2823_v8  ;;  %2840 = vst [vmem:[#allocation2 + $0xe8] sm:$0xf0] %v2824_v1  ;;  %v2918_v36 = vmul.f32 %v2902_v12, %v2866_v50  ;;  %v2890_v52 = vrot.slane %v6860_v47, %v6385_v10  ;;  %v2940_v40 = vld [vmem:[#allocation2 + $0x68] sm:$0xff]  ;;  %v2941_v26 = vld [vmem:[#allocation2 + $0x70] sm:$0xff]  ;;  %v4988_v32 = vpack.c.bf16 %v2939_v39, %v2931_v15 }
 0x3b8   : > { %2731 = vst [vmem:[#allocation2 + $0xe0] sm:$0xf] %v2723_v45  ;;  %2732 = vst [vmem:[#allocation2 + $0xe8] sm:$0xf] %v2724_v62  ;;  %v2856_v28 = vpop.permute.xlu1 %2855  ;;  %v2959_v25 = vld [vmem:[#allocation2 + $0x100] sm:$0xf]  ;;  %v4986_v24 = vpack.c.bf16 %v2940_v40, %v2932_v17  ;;  %v4996_v35 = vpack.c.bf16 %v2941_v26, %v2933_v9  ;;  %v4998_v47 = vpack.c.bf16 %v2958_v18, %v2950_v23 }
 0x3b9   : > { %2926 = vst [vmem:[#allocation2 + $0x138] sm:$0xf] %v2918_v36  ;;  %v2859_v59 = vsel %vm1684_vm8, %v2856_v28, %v2858_v11  ;;  %4608 = vmatpush1.msk.msra.mxu0 %vm1045_vm0, %v2959_v25  ;;  %v2854_v34 = vpop.permute.xlu0 %2853 }
 0x3ba   : > { %v2917_v27 = vmul.f32 %v2898_v48, %v2859_v59  ;;  %v2860_v43 = vsel %vm1684_vm8, %v2854_v34, %v2856_v28  ;;  %v2861_v22 = vsel %vm1684_vm8, %v7124_v51, %v2854_v34  ;;  %4609 = vmatmul.mubr.msk.f32.vlgmr.msra.gmra.mrb[8].mxu0 %vm2967_vm10, %v7187_v3  ;;  %4987 = vmatprep.subr.bf16.mxu0 %v4986_v24 }
 0x3bb   : > { %v2915_v44 = vmul.f32 %v2890_v52, %v2861_v22  ;;  %v2916_v2 = vmul.f32 %v2894_v42, %v2860_v43  ;;  %4997 = vmatpush1.bf16.msra.mxu1 %v4996_v35  ;;  %4989 = vmatpush1.bf16.msra.mxu0 %v4988_v32  ;;  %v4619_v32 = vld [vmem:[%s7843_s3 + $0x1] ss:$8 sm:$0xf] }
 0x3bc   : > { %2925 = vst [vmem:[#allocation2 + $0x130] sm:$0xf] %v2917_v27  ;;  %4999 = vmatprep.subr.bf16.mxu1 %v4998_v47  ;;  %3201 = vmatprep.mubr.f32.mxu0 %v7886_v63  ;;  %v4620_v47 = vld [vmem:[%s7843_s3 + $0x1] ss:$8 sm:$0xf0] }
 0x3bd   : > { %2923 = vst [vmem:[#allocation2 + $0x120] sm:$0xf] %v2915_v44  ;;  %2924 = vst [vmem:[#allocation2 + $0x128] sm:$0xf] %v2916_v2  ;;  %v2948_v60 = vld [vmem:[#allocation2 + $0xa8] sm:$0xff]  ;;  %v2947_v20 = vld [vmem:[#allocation2 + $0xa0] sm:$0xff]  ;;  %v7375_v22 = vor.u32 %v4620_v47, %v4619_v32 }
 0x3be   : > { %v4624_v44 = vld [vmem:[%s7843_s3 + $0x3] ss:$8 sm:$0xf0] }
 0x3bf   : > { %5001 = vmatpush1.bf16.msra.mxu1 %v5000_v0  ;;  %v2956_v51 = vld [vmem:[#allocation2 + $0xe8] sm:$0xff]  ;;  %v2955_v58 = vld [vmem:[#allocation2 + $0xe0] sm:$0xff]  ;;  %v3435_v0 = vrot.slane %v7375_v22, %v7896_v38 }
 0x3c0   : > { %v2966_v57 = vld [vmem:[#allocation2 + $0x138] sm:$0xf]  ;;  %v4990_v37 = vpack.c.bf16 %v2956_v51, %v2948_v60  ;;  %v4992_v21 = vpack.c.bf16 %v2955_v58, %v2947_v20  ;;  %v7393_v60 = vor.u32 %v4624_v44, %v4623_v53 }
 0x3c1   : > { %4616 = vmatprep.subr.msk.mxu1 %vm1045_vm0, %v2966_v57  ;;  %v3340_v51 = vld [vmem:[%s7843_s3] ss:$8 sm:$0xf] }
 0x3c2   : > { %4991 = vmatprep.subr.bf16.mxu0 %v4990_v37  ;;  %v3341_v20 = vld [vmem:[%s7843_s3] ss:$8 sm:$0xf0] }
 0x3c3   : > { %4993 = vmatpush1.bf16.msra.mxu0 %v4992_v21  ;;  %v2965_v56 = vld [vmem:[#allocation2 + $0x130] sm:$0xf] }
 0x3c4   : > { %4617 = vmatpush1.msk.msra.mxu1 %vm1045_vm0, %v2965_v56  ;;  %v2964_v16 = vld [vmem:[#allocation2 + $0x128] sm:$0xf]  ;;  %v2963_v46 = vld [vmem:[#allocation2 + $0x120] sm:$0xf]  ;;  %v3627_v56 = vrot.slane %v7393_v60, %v7896_v38 }
 0x3c5   : > { %4613 = vmatprep.subr.msk.mxu0 %vm1045_vm0, %v2964_v16  ;;  %4618 = vmatmul.mubr.msk.f32.vlgmr.msra.gmra.mrb[10].mxu1 %vm2967_vm10, %v7187_v3  ;;  %v3315_v16 = vld [vmem:[%s7852_s12] sm:$0xf] }
 0x3c6   : > { %4294 = vmatprep.mubr.f32.mxu1 %v7886_v63 }
 0x3c7   : > { %4614 = vmatpush1.msk.msra.mxu0 %vm1045_vm0, %v2963_v46  ;;  %v3314_v46 = vld [vmem:[%s7851_s11] sm:$0xf] }
 0x3c8   : > { %4615 = vmatmul.mubr.msk.f32.vlgmr.msra.gmra.mrb[10].mxu0 %vm2967_vm10, %v7187_v3 }
 0x3c9   : > { %4223 = vmatprep.mubr.f32.mxu0 %v7886_v63  ;;  %v3282_v33 = vpop.permute.xlu1 %3281 }
 0x3ca   : > { %v3295_v54 = vpop.permute.xlu0 %3294 }
 0x480   : > { %v3132_v14 = vpop.f32.mrb[8].mxu1 }
 0x481   : > { %v3286_v55 = vmul.f32 %v3282_v33, %v3132_v14  ;;  %v3134_v12 = vpop.f32.mrb[9].mxu1  ;;  %v4621_v14 = vld [vmem:[%s7843_s3 + $0x2] ss:$8 sm:$0xf] }
 0x482   : > { %v3287_v19 = vmul.f32 %v3282_v33, %v3134_v12 }
 0x483   : > { %v3299_v7 = vadd.f32 %v3295_v54, %v3286_v55  ;;  %v4622_v55 = vld [vmem:[%s7843_s3 + $0x2] ss:$8 sm:$0xf0] }
 0x484   : > { %v3300_v8 = vadd.f32 %v3295_v54, %v3287_v19 }
 0x485   : > { %v3307_v1 = vmax.f32 %v3299_v7, 0.0 }
 0x486   : > { %v7265_v41 = vmax.f32 %v3300_v8, 0.0 }
 0x487   : > { %3702 = vst [vmem:[#allocation2 + $0x90] sm:$0xf] %v3307_v1 }
 0x488   : > { %3703 = vst [vmem:[#allocation2 + $0x98] sm:$0xf] %v7265_v41 }
 0x48d   : > { %v3061_v30 = vpop.f32.mrb[8].mxu0 }
 0x48e   : > { %v3284_v11 = vmul.f32 %v3282_v33, %v3061_v30  ;;  %v3063_v45 = vpop.f32.mrb[9].mxu0  ;;  %v4631_v30 = vld [vmem:[%s7843_s3 + $0x40] ss:$8 sm:$0xf] }
 0x48f   : > { %v3285_v3 = vmul.f32 %v3282_v33, %v3063_v45  ;;  %v4625_v45 = vld [vmem:[%s7843_s3 + $0x5] ss:$8 sm:$0xf] }
 0x490   : > { %v3297_v62 = vadd.f32 %v3295_v54, %v3284_v11  ;;  %v4632_v11 = vld [vmem:[%s7843_s3 + $0x40] ss:$8 sm:$0xf0] }
 0x491   : > { %v3298_v50 = vadd.f32 %v3295_v54, %v3285_v3  ;;  %v4626_v3 = vld [vmem:[%s7843_s3 + $0x5] ss:$8 sm:$0xf0] }
 0x492   : > { %v3305_v48 = vmax.f32 %v3297_v62, 0.0 }
 0x493   : > { %v3306_v17 = vmax.f32 %v3298_v50, 0.0 }
 0x494   : > { %3700 = vst [vmem:[#allocation2 + $0x80] sm:$0xf] %v3305_v48  ;;  %3900 = vrot.lane.b32.xlu0 %v3305_v48, %s5074_s14  ;;  %3400 = vrot.lane.b32.xlu1 %v3305_v48, %s5068_s23 }
 0x495   : > { %3701 = vst [vmem:[#allocation2 + $0x88] sm:$0xf] %v3306_v17 }
 0x498   : > { %v3274_v15 = vpop.f32.mrb[10].mxu1  ;;  %4008 = vrot.lane.b32.xlu0 %v3305_v48, %s5072_s15  ;;  %3592 = vrot.lane.b32.xlu1 %v3305_v48, %s5073_s30 }
 0x499   : > { %v3290_v18 = vmul.f32 %v3282_v33, %v3274_v15  ;;  %v3276_v36 = vpop.f32.mrb[11].mxu1 }
 0x49a   : > { %v3291_v52 = vmul.f32 %v3282_v33, %v3276_v36  ;;  %v7463_v36 = vor.u32 %v4632_v11, %v4631_v30 }
 0x49b   : > { %v3303_v42 = vadd.f32 %v3295_v54, %v3290_v18  ;;  %v3203_v40 = vpop.f32.mrb[10].mxu0 }
 0x49c   : > { %v3304_v9 = vadd.f32 %v3295_v54, %v3291_v52  ;;  %v3288_v26 = vmul.f32 %v3282_v33, %v3203_v40  ;;  %3402 = vrot.lane.b32.xlu0 %v3306_v17, %s5068_s23  ;;  %3316 = vrot.lane.b32.xlu1 %v3305_v48, %s5067_s22  ;;  %v3205_v28 = vpop.f32.mrb[11].mxu0  ;;  %v7465_v52 = vor.u32 %v4626_v3, %v4625_v45  ;;  %v4630_v40 = vld [vmem:[%s7843_s3 + $0x7] ss:$8 sm:$0xf0] }
 0x49d   : > { %v7274_v25 = vmax.f32 %v3303_v42, 0.0  ;;  %v3289_v24 = vmul.f32 %v3282_v33, %v3205_v28  ;;  %v7421_v33 = vor.u32 %v3341_v20, %v3340_v51  ;;  %v4629_v42 = vld [vmem:[%s7843_s3 + $0x7] ss:$8 sm:$0xf] }
 0x49e   : > { %v7276_v35 = vmax.f32 %v3304_v9, 0.0  ;;  %v3301_v39 = vadd.f32 %v3295_v54, %v3288_v26  ;;  %v3743_v44 = vrot.slane %v7465_v52, %v7896_v38 }
 0x49f   : > { %3706 = vst [vmem:[#allocation2 + $0xb0] sm:$0xf] %v7274_v25  ;;  %v3302_v23 = vadd.f32 %v3295_v54, %v3289_v24  ;;  %v4039_v24 = vrot.slane %v7463_v36, %v7897_v5 }
 0x4a0   : > { %3707 = vst [vmem:[#allocation2 + $0xb8] sm:$0xf] %v7276_v35  ;;  %v3309_v59 = vmax.f32 %v3301_v39, 0.0  ;;  %3594 = vrot.lane.b32.xlu0 %v3306_v17, %s5073_s30  ;;  %3508 = vrot.lane.b32.xlu1 %v3305_v48, %s5071_s29  ;;  %v7485_v39 = vor.u32 %v4630_v40, %v4629_v42 }
 0x4a1   : > { %v7282_v34 = vmax.f32 %v3302_v23, 0.0  ;;  %v4627_v23 = vld [vmem:[%s7843_s3 + $0x6] ss:$8 sm:$0xf] }
 0x4a2   : > { %3704 = vst [vmem:[#allocation2 + $0xa0] sm:$0xf] %v3309_v59  ;;  %v3931_v20 = vrot.slane %v7485_v39, %v7897_v5 }
 0x4a3   : > { %3705 = vst [vmem:[#allocation2 + $0xa8] sm:$0xf] %v7282_v34 }
 0x4a4   : > { %3318 = vrot.lane.b32.xlu0 %v3306_v17, %s5067_s22  ;;  %3708 = vrot.lane.b32.xlu1 %v3305_v48, %s5069_s24 }
 0x4a8   : > { %3510 = vrot.lane.b32.xlu0 %v3306_v17, %s5071_s29  ;;  %3816 = vrot.lane.b32.xlu1 %v3305_v48, %s7898_s21 }
 0x4ac   : > { %4010 = vrot.lane.b32.xlu0 %v3306_v17, %s5072_s15  ;;  %3710 = vrot.lane.b32.xlu1 %v3306_v17, %s5069_s24 }
 0x4b0   : > { %3712 = vrot.lane.b32.xlu0 %v3307_v1, %s5069_s24  ;;  %3902 = vrot.lane.b32.xlu1 %v3306_v17, %s5074_s14 }
 0x4b4   : > { %3904 = vrot.lane.b32.xlu0 %v3307_v1, %s5074_s14  ;;  %3818 = vrot.lane.b32.xlu1 %v3306_v17, %s7898_s21 }
 0x4b8   : > { %3820 = vrot.lane.b32.xlu0 %v3307_v1, %s7898_s21  ;;  %3404 = vrot.lane.b32.xlu1 %v3307_v1, %s5068_s23 }
 0x4bc   : > { %3406 = vrot.lane.b32.xlu0 %v7265_v41, %s5068_s23  ;;  %3596 = vrot.lane.b32.xlu1 %v3307_v1, %s5073_s30 }
 0x4c0   : > { %3598 = vrot.lane.b32.xlu0 %v7265_v41, %s5073_s30  ;;  %3320 = vrot.lane.b32.xlu1 %v3307_v1, %s5067_s22 }
 0x4c4   : > { %3322 = vrot.lane.b32.xlu0 %v7265_v41, %s5067_s22  ;;  %3512 = vrot.lane.b32.xlu1 %v3307_v1, %s5071_s29 }
 0x4c8   : > { %3514 = vrot.lane.b32.xlu0 %v7265_v41, %s5071_s29  ;;  %4012 = vrot.lane.b32.xlu1 %v3307_v1, %s5072_s15  ;;  %v3351_v1 = vrot.slane %v7421_v33, %v7896_v38 }
 0x4cc   : > { %4014 = vrot.lane.b32.xlu0 %v7265_v41, %s5072_s15  ;;  %3714 = vrot.lane.b32.xlu1 %v7265_v41, %s5069_s24 }
 0x4d0   : > { %3906 = vrot.lane.b32.xlu1 %v7265_v41, %s5074_s14  ;;  %3716 = vrot.lane.b32.xlu0 %v3309_v59, %s5069_s24 }
 0x4d4   : > { %3822 = vrot.lane.b32.xlu1 %v7265_v41, %s7898_s21  ;;  %3908 = vrot.lane.b32.xlu0 %v3309_v59, %s5074_s14  ;;  %v7439_v41 = vor.u32 %v4622_v55, %v4621_v14 }
 0x4d6   : > { %v3543_v18 = vrot.slane %v7439_v41, %v7896_v38 }
 0x4d8   : > { %3600 = vrot.lane.b32.xlu1 %v3309_v59, %s5073_s30  ;;  %3824 = vrot.lane.b32.xlu0 %v3309_v59, %s7898_s21 }
 0x4dc   : > { %3516 = vrot.lane.b32.xlu1 %v3309_v59, %s5071_s29  ;;  %3408 = vrot.lane.b32.xlu0 %v3309_v59, %s5068_s23 }
 0x4e0   : > { %4016 = vrot.lane.b32.xlu1 %v3309_v59, %s5072_s15  ;;  %3324 = vrot.lane.b32.xlu0 %v3309_v59, %s5067_s22  ;;  %v4628_v59 = vld [vmem:[%s7843_s3 + $0x6] ss:$8 sm:$0xf0] }
 0x4e4   : > { %3602 = vrot.lane.b32.xlu0 %v7282_v34, %s5073_s30  ;;  %3410 = vrot.lane.b32.xlu1 %v7282_v34, %s5068_s23 }
 0x4e8   : > { %3518 = vrot.lane.b32.xlu0 %v7282_v34, %s5071_s29  ;;  %3326 = vrot.lane.b32.xlu1 %v7282_v34, %s5067_s22 }
 0x4ec   : > { %3412 = vrot.lane.b32.xlu0 %v7274_v25, %s5068_s23  ;;  %3718 = vrot.lane.b32.xlu1 %v7282_v34, %s5069_s24 }
 0x4f0   : > { %3328 = vrot.lane.b32.xlu0 %v7274_v25, %s5067_s22  ;;  %3604 = vrot.lane.b32.xlu1 %v7274_v25, %s5073_s30 }
 0x4f4   : > { %3720 = vrot.lane.b32.xlu0 %v7274_v25, %s5069_s24  ;;  %3520 = vrot.lane.b32.xlu1 %v7274_v25, %s5071_s29 }
 0x4f8   : > { %3606 = vrot.lane.b32.xlu0 %v7276_v35, %s5073_s30  ;;  %3414 = vrot.lane.b32.xlu1 %v7276_v35, %s5068_s23 }
 0x4fc   : > { %3522 = vrot.lane.b32.xlu0 %v7276_v35, %s5071_s29  ;;  %3330 = vrot.lane.b32.xlu1 %v7276_v35, %s5067_s22 }
 0x500   : > { %3910 = vrot.lane.b32.xlu0 %v7282_v34, %s5074_s14  ;;  %3912 = vrot.lane.b32.xlu1 %v7274_v25, %s5074_s14 }
 0x504   : > { %3828 = vrot.lane.b32.xlu0 %v7274_v25, %s7898_s21  ;;  %3826 = vrot.lane.b32.xlu1 %v7282_v34, %s7898_s21 }
 0x506   : > { %v7367_v27 = vpop.permute.xlu0 %3900  ;;  %v7369_v43 = vpop.permute.xlu1 %3400 }
 0x508   : > { %3914 = vrot.lane.b32.xlu0 %v7276_v35, %s5074_s14  ;;  %3722 = vrot.lane.b32.xlu1 %v7276_v35, %s5069_s24  ;;  %s7899_s24 = sshll.u32 %s7901_s26, 5 }
 0x509   : > { %s7831_s19 = scalar_lea.vmem %s7853_s13, %s7899_s24 }
 0x50a   : > { %v7383_v2 = vpop.permute.xlu0 %4008  ;;  %v7385_v61 = vpop.permute.xlu1 %3592 }
 0x50c   : > { %4018 = vrot.lane.b32.xlu0 %v7282_v34, %s5072_s15  ;;  %3830 = vrot.lane.b32.xlu1 %v7276_v35, %s7898_s21 }
 0x50e   : > { %v7401_v58 = vpop.permute.xlu0 %3402  ;;  %v7403_v57 = vpop.permute.xlu1 %3316 }
 0x50f   : > { %v3422_v37 = vsel %vm1160_vm2, %v7369_v43, %v7401_v58 }
 0x510   : > { %v3469_v21 = vmul.f32 %v3435_v0, %v3422_v37  ;;  %4022 = vrot.lane.b32.xlu0 %v7276_v35, %s5072_s15  ;;  %4020 = vrot.lane.b32.xlu1 %v7274_v25, %s5072_s15  ;;  %v3739_v35 = vrot.slane %v7465_v52, %v7897_v5  ;;  %v7506_v37 = vor.u32 %v4628_v59, %v4627_v23 }
 0x512   : > { %v3485_v12 = vrot.slane %v3469_v21, 4  ;;  %v7429_v54 = vpop.permute.xlu0 %3594  ;;  %v7431_v19 = vpop.permute.xlu1 %3508 }
 0x513   : > { %v3614_v7 = vsel %vm1332_vm4, %v7385_v61, %v7429_v54 }
 0x514   : > { %3501 = vst [vmem:[#allocation2 + $0x8] sm:$0xf0] %v3485_v12  ;;  %v3661_v8 = vmul.f32 %v3627_v56, %v3614_v7  ;;  %4458 = vperm.xlu0 %5052, %v3315_v16   ;;  %4445 = vperm.xlu1 %5053, %v3314_v46   ;;  %v3935_v7 = vrot.slane %v7485_v39, %v7896_v38 }
 0x516   : > { %v3677_v62 = vrot.slane %v3661_v8, 4  ;;  %v7453_v50 = vpop.permute.xlu0 %3318  ;;  %v7455_v48 = vpop.permute.xlu1 %3708  ;;  %v3847_v8 = vrot.slane %v7506_v37, %v7897_v5 }
 0x517   : > { %v3338_v17 = vsel %vm1075_vm1, %v7403_v57, %v7453_v50 }
 0x518   : > { %3693 = vst [vmem:[#allocation2 + $0x48] sm:$0xf0] %v3677_v62  ;;  %v3385_v15 = vmul.f32 %v3351_v1, %v3338_v17 }
 0x51a   : > { %3393 = vst [vmem:[#allocation2 + $0x8] sm:$0xf] %v3385_v15  ;;  %v7473_v9 = vpop.permute.xlu0 %3510  ;;  %v7475_v26 = vpop.permute.xlu1 %3816 }
 0x51b   : > { %v3530_v28 = vsel %vm1246_vm3, %v7431_v19, %v7473_v9 }
 0x51c   : > { %v3577_v25 = vmul.f32 %v3543_v18, %v3530_v28  ;;  %v3851_v28 = vrot.slane %v7506_v37, %v7896_v38 }
 0x51e   : > { %3585 = vst [vmem:[#allocation2 + $0x48] sm:$0xf] %v3577_v25  ;;  %v7493_v34 = vpop.permute.xlu0 %4010  ;;  %v3711_v32 = vpop.permute.xlu1 %3710  ;;  %v3439_v25 = vrot.slane %v7375_v22, %v7895_v13 }
 0x51f   : > { %v4030_v47 = vsel %vm1684_vm8, %v7383_v2, %v7493_v34  ;;  %v3730_v53 = vsel %vm1426_vm6, %v7455_v48, %v3711_v32 }
 0x520   : > { %v4076_v0 = vmul.f32 %v4039_v24, %v4030_v47  ;;  %v3776_v51 = vmul.f32 %v3739_v35, %v3730_v53 }
 0x521   : > { %v4093_v1 = vld [vmem:[#allocation2 + $0x8] sm:$0xff] }
 0x522   : > { %4084 = vst [vmem:[#allocation2 + $0x100] sm:$0xf] %v4076_v0  ;;  %v3792_v21 = vrot.slane %v3776_v51, 4  ;;  %v7508_v56 = vpop.permute.xlu0 %3712  ;;  %v3903_v16 = vpop.permute.xlu1 %3902  ;;  %v3631_v0 = vrot.slane %v7393_v60, %v7895_v13 }
 0x523   : > { %v3729_v46 = vsel %vm1426_vm6, %v3711_v32, %v7508_v56  ;;  %v3922_v14 = vsel %vm1598_vm7, %v7367_v27, %v3903_v16 }
 0x524   : > { %3808 = vst [vmem:[#allocation2 + $0x80] sm:$0xf0] %v3792_v21  ;;  %v3777_v55 = vmul.f32 %v3743_v44, %v3729_v46  ;;  %v3968_v12 = vmul.f32 %v3931_v20, %v3922_v14  ;;  %v3443_v44 = vrot.slane %v7375_v22, %v7894_v31 }
 0x525   : > { %v4101_v30 = vld [vmem:[#allocation2 + $0x48] sm:$0xff] }
 0x526   : > { %v3793_v11 = vrot.slane %v3777_v55, 4  ;;  %v3984_v45 = vrot.slane %v3968_v12, 4  ;;  %v7520_v3 = vpop.permute.xlu0 %3904  ;;  %v3819_v62 = vpop.permute.xlu1 %3818  ;;  %v5002_v17 = vpack.c.bf16 %v4101_v30, %v4093_v1  ;;  %v3635_v55 = vrot.slane %v7393_v60, %v7894_v31 }
 0x527   : > { %v3921_v15 = vsel %vm1598_vm7, %v3903_v16, %v7520_v3  ;;  %v3838_v18 = vsel %vm1512_vm5, %v7475_v26, %v3819_v62  ;;  %v3355_v12 = vrot.slane %v7421_v33, %v7895_v13 }
 0x528   : > { %3809 = vst [vmem:[#allocation2 + $0x88] sm:$0xf0] %v3793_v11  ;;  %4000 = vst [vmem:[#allocation2 + $0xc0] sm:$0xf0] %v3984_v45  ;;  %v3969_v42 = vmul.f32 %v3935_v7, %v3921_v15  ;;  %v3884_v40 = vmul.f32 %v3847_v8, %v3838_v18  ;;  %5003 = vmatprep.subr.bf16.mxu0 %v5002_v17  ;;  %v3359_v17 = vrot.slane %v7421_v33, %v7894_v31 }
 0x529   : > { %v3547_v15 = vrot.slane %v7439_v41, %v7895_v13 }
 0x52a   : > { %v3985_v24 = vrot.slane %v3969_v42, 4  ;;  %3892 = vst [vmem:[#allocation2 + $0xc0] sm:$0xf] %v3884_v40  ;;  %v7532_v35 = vpop.permute.xlu0 %3820  ;;  %v3405_v23 = vpop.permute.xlu1 %3404 }
 0x52b   : > { %v3837_v59 = vsel %vm1512_vm5, %v3819_v62, %v7532_v35  ;;  %v3421_v32 = vsel %vm1160_vm2, %v7401_v58, %v3405_v23 }
 0x52c   : > { %4001 = vst [vmem:[#allocation2 + $0xc8] sm:$0xf0] %v3985_v24  ;;  %v3885_v47 = vmul.f32 %v3851_v28, %v3837_v59  ;;  %v3470_v53 = vmul.f32 %v3439_v25, %v3421_v32  ;;  %v4043_v59 = vrot.slane %v7463_v36, %v7896_v38  ;;  %v3747_v38 = vrot.slane %v7465_v52, %v7895_v13 }
 0x52e   : > { %3893 = vst [vmem:[#allocation2 + $0xc8] sm:$0xf] %v3885_v47  ;;  %v3486_v51 = vrot.slane %v3470_v53, 4  ;;  %v7544_v20 = vpop.permute.xlu0 %3406  ;;  %v3597_v21 = vpop.permute.xlu1 %3596 }
 0x52f   : > { %v3420_v16 = vsel %vm1160_vm2, %v3405_v23, %v7544_v20  ;;  %v3613_v58 = vsel %vm1332_vm4, %v7429_v54, %v3597_v21  ;;  %v3551_v23 = vrot.slane %v7439_v41, %v7894_v31 }
 0x530   : > { %3502 = vst [vmem:[#allocation2 + $0x10] sm:$0xf0] %v3486_v51  ;;  %v3471_v46 = vmul.f32 %v3443_v44, %v3420_v16  ;;  %v3662_v14 = vmul.f32 %v3631_v0, %v3613_v58  ;;  %v4047_v51 = vrot.slane %v7463_v36, %v7895_v13 }
 0x532   : > { %v3487_v7 = vrot.slane %v3471_v46, 4  ;;  %v3678_v8 = vrot.slane %v3662_v14, 4  ;;  %v7556_v1 = vpop.permute.xlu0 %3598  ;;  %v3321_v30 = vpop.permute.xlu1 %3320 }
 0x533   : > { %v3612_v11 = vsel %vm1332_vm4, %v3597_v21, %v7556_v1  ;;  %v3337_v54 = vsel %vm1075_vm1, %v7453_v50, %v3321_v30 }
 0x534   : > { %3503 = vst [vmem:[#allocation2 + $0x18] sm:$0xf0] %v3487_v7  ;;  %3694 = vst [vmem:[#allocation2 + $0x50] sm:$0xf0] %v3678_v8  ;;  %v3663_v45 = vmul.f32 %v3635_v55, %v3612_v11  ;;  %v3386_v62 = vmul.f32 %v3355_v12, %v3337_v54  ;;  %v3939_v55 = vrot.slane %v7485_v39, %v7895_v13 }
 0x535   : > { %v3751_v12 = vrot.slane %v7465_v52, %v7894_v31 }
 0x536   : > { %v3679_v18 = vrot.slane %v3663_v45, 4  ;;  %3394 = vst [vmem:[#allocation2 + $0x10] sm:$0xf] %v3386_v62  ;;  %v7568_v42 = vpop.permute.xlu0 %3322  ;;  %v3513_v40 = vpop.permute.xlu1 %3512  ;;  %v3855_v62 = vrot.slane %v7506_v37, %v7895_v13 }
 0x537   : > { %v3336_v28 = vsel %vm1075_vm1, %v3321_v30, %v7568_v42  ;;  %v3529_v50 = vsel %vm1246_vm3, %v7473_v9, %v3513_v40 }
 0x538   : > { %3695 = vst [vmem:[#allocation2 + $0x58] sm:$0xf0] %v3679_v18  ;;  %v3387_v25 = vmul.f32 %v3359_v17, %v3336_v28  ;;  %v3578_v24 = vmul.f32 %v3547_v15, %v3529_v50  ;;  %v3943_v17 = vrot.slane %v7485_v39, %v7894_v31 }
 0x53a   : > { %3395 = vst [vmem:[#allocation2 + $0x18] sm:$0xf] %v3387_v25  ;;  %3586 = vst [vmem:[#allocation2 + $0x50] sm:$0xf] %v3578_v24  ;;  %v7580_v32 = vpop.permute.xlu0 %3514  ;;  %v4013_v47 = vpop.permute.xlu1 %4012 }
 0x53b   : > { %v3528_v53 = vsel %vm1246_vm3, %v3513_v40, %v7580_v32  ;;  %v4029_v9 = vsel %vm1684_vm8, %v7493_v34, %v4013_v47 }
 0x53c   : > { %v3579_v44 = vmul.f32 %v3551_v23, %v3528_v53  ;;  %v4077_v0 = vmul.f32 %v4043_v59, %v4029_v9 }
 0x53d   : > { %v4094_v23 = vld [vmem:[#allocation2 + $0x10] sm:$0xff] }
 0x53e   : > { %3587 = vst [vmem:[#allocation2 + $0x58] sm:$0xf] %v3579_v44  ;;  %4085 = vst [vmem:[#allocation2 + $0x108] sm:$0xf] %v4077_v0  ;;  %v7592_v21 = vpop.permute.xlu0 %4014  ;;  %v3715_v16 = vpop.permute.xlu1 %3714  ;;  %v3639_v44 = vrot.slane %v7393_v60, %v6385_v10  ;;  %v3859_v0 = vrot.slane %v7506_v37, %v7894_v31 }
 0x53f   : > { %v4028_v58 = vsel %vm1684_vm8, %v4013_v47, %v7592_v21  ;;  %v3728_v34 = vsel %vm1426_vm6, %v7508_v56, %v3715_v16 }
 0x540   : > { %v4078_v46 = vmul.f32 %v4047_v51, %v4028_v58  ;;  %v3778_v14 = vmul.f32 %v3747_v38, %v3728_v34 }
 0x541   : > { %v4102_v15 = vld [vmem:[#allocation2 + $0x50] sm:$0xff]  ;;  %v4095_v18 = vld [vmem:[#allocation2 + $0x18] sm:$0xff] }
 0x542   : > { %4086 = vst [vmem:[#allocation2 + $0x110] sm:$0xf] %v4078_v46  ;;  %v3794_v7 = vrot.slane %v3778_v14, 4  ;;  %v3907_v8 = vpop.permute.xlu1 %3906  ;;  %v7604_v30 = vpop.permute.xlu0 %3716  ;;  %v5012_v47 = vpack.c.bf16 %v4102_v15, %v4094_v23  ;;  %v3555_v14 = vrot.slane %v7439_v41, %v6385_v10 }
 0x543   : > { %v3920_v11 = vsel %vm1598_vm7, %v7520_v3, %v3907_v8  ;;  %v3727_v56 = vsel %vm1426_vm6, %v3715_v16, %v7604_v30 }
 0x544   : > { %3810 = vst [vmem:[#allocation2 + $0x90] sm:$0xf0] %v3794_v7  ;;  %v3970_v54 = vmul.f32 %v3939_v55, %v3920_v11  ;;  %v3779_v45 = vmul.f32 %v3751_v12, %v3727_v56  ;;  %v3447_v55 = vrot.slane %v7375_v22, %v6385_v10 }
 0x545   : > { %v4103_v40 = vld [vmem:[#allocation2 + $0x58] sm:$0xff] }
 0x546   : > { %v3986_v28 = vrot.slane %v3970_v54, 4  ;;  %v3795_v50 = vrot.slane %v3779_v45, 4  ;;  %v3823_v25 = vpop.permute.xlu1 %3822  ;;  %v7616_v3 = vpop.permute.xlu0 %3908  ;;  %v5010_v24 = vpack.c.bf16 %v4103_v40, %v4095_v18  ;;  %v4051_v45 = vrot.slane %v7463_v36, %v7894_v31 }
 0x547   : > { %v3836_v59 = vsel %vm1512_vm5, %v7532_v35, %v3823_v25  ;;  %v3919_v13 = vsel %vm1598_vm7, %v3907_v8, %v7616_v3 }
 0x548   : > { %4002 = vst [vmem:[#allocation2 + $0xd0] sm:$0xf0] %v3986_v28  ;;  %3811 = vst [vmem:[#allocation2 + $0x98] sm:$0xf0] %v3795_v50  ;;  %v3886_v53 = vmul.f32 %v3855_v62, %v3836_v59  ;;  %v3971_v9 = vmul.f32 %v3943_v17, %v3919_v13  ;;  %5011 = vmatprep.subr.bf16.mxu1 %v5010_v24  ;;  %v3363_v62 = vrot.slane %v7421_v33, %v6385_v10 }
 0x549   : > { %5013 = vmatpush1.bf16.msra.mxu1 %v5012_v47  ;;  %v3643_v28 = vrot.slane %v7393_v60, %v6525_v4  ;;  %v3451_v50 = vrot.slane %v7375_v22, %v6525_v4 }
 0x54a   : > { %3894 = vst [vmem:[#allocation2 + $0xd0] sm:$0xf] %v3886_v53  ;;  %v3987_v51 = vrot.slane %v3971_v9, 4  ;;  %v3601_v35 = vpop.permute.xlu1 %3600  ;;  %v7628_v38 = vpop.permute.xlu0 %3824 }
 0x54b   : > { %v3611_v16 = vsel %vm1332_vm4, %v7556_v1, %v3601_v35  ;;  %v3835_v58 = vsel %vm1512_vm5, %v3823_v25, %v7628_v38  ;;  %v4110_v47 = vld [vmem:[#allocation2 + $0x90] sm:$0xff] }
 0x54c   : > { %4003 = vst [vmem:[#allocation2 + $0xd8] sm:$0xf0] %v3987_v51  ;;  %v3664_v34 = vmul.f32 %v3639_v44, %v3611_v16  ;;  %v3887_v46 = vmul.f32 %v3859_v0, %v3835_v58  ;;  %v3559_v51 = vrot.slane %v7439_v41, %v6525_v4  ;;  %v3367_v16 = vrot.slane %v7421_v33, %v6525_v4 }
 0x54e   : > { %v3680_v12 = vrot.slane %v3664_v34, 4  ;;  %3895 = vst [vmem:[#allocation2 + $0xd8] sm:$0xf] %v3887_v46  ;;  %v3517_v7 = vpop.permute.xlu1 %3516  ;;  %v3409_v8 = vpop.permute.xlu0 %3408 }
 0x54f   : > { %v3527_v1 = vsel %vm1246_vm3, %v7580_v32, %v3517_v7  ;;  %v3419_v11 = vsel %vm1160_vm2, %v7544_v20, %v3409_v8  ;;  %v4111_v24 = vld [vmem:[#allocation2 + $0x98] sm:$0xff] }
 0x550   : > { %3696 = vst [vmem:[#allocation2 + $0x60] sm:$0xf0] %v3680_v12  ;;  %v3580_v56 = vmul.f32 %v3555_v14, %v3527_v1  ;;  %v3472_v54 = vmul.f32 %v3447_v55, %v3419_v11  ;;  %v3455_v1 = vrot.slane %v7375_v22, %v6528_v6  ;;  %v3755_v11 = vrot.slane %v7465_v52, %v6385_v10 }
 0x551   : > { %v4118_v25 = vld [vmem:[#allocation2 + $0xd0] sm:$0xff] }
 0x552   : > { %3588 = vst [vmem:[#allocation2 + $0x60] sm:$0xf] %v3580_v56  ;;  %v3488_v17 = vrot.slane %v3472_v54, 4  ;;  %v7650_v15 = vpop.permute.xlu1 %4016  ;;  %v3325_v18 = vpop.permute.xlu0 %3324  ;;  %v5016_v9 = vpack.c.bf16 %v4118_v25, %v4110_v47  ;;  %v7682_v54 = vld [vmem:[%s7850_s10] sm:$0xf]  ;;  %v3759_v47 = vrot.slane %v7465_v52, %v6525_v4 }
 0x553   : > { %v4027_v32 = vsel %vm1684_vm8, %v7592_v21, %v7650_v15  ;;  %v3335_v20 = vsel %vm1075_vm1, %v7568_v42, %v3325_v18 }
 0x554   : > { %3504 = vst [vmem:[#allocation2 + $0x20] sm:$0xf0] %v3488_v17  ;;  %v4079_v40 = vmul.f32 %v4051_v45, %v4027_v32  ;;  %v3388_v31 = vmul.f32 %v3363_v62, %v3335_v20  ;;  %v4126_v62 = vld [vmem:[#allocation2 + $0x110] sm:$0xf] }
 0x555   : > { %v4119_v23 = vld [vmem:[#allocation2 + $0xd8] sm:$0xff] }
 0x556   : > { %4087 = vst [vmem:[#allocation2 + $0x118] sm:$0xf] %v4079_v40  ;;  %3396 = vst [vmem:[#allocation2 + $0x20] sm:$0xf] %v3388_v31  ;;  %v3603_v59 = vpop.permute.xlu0 %3602  ;;  %v3411_v21 = vpop.permute.xlu1 %3410  ;;  %v5014_v13 = vpack.c.bf16 %v4119_v23, %v4111_v24  ;;  %v3371_v40 = vrot.slane %v7421_v33, %v6528_v6  ;;  %v3647_v31 = vrot.slane %v7393_v60, %v6528_v6 }
 0x557   : > { %v3610_v42 = vsel %vm1332_vm4, %v3601_v35, %v3603_v59  ;;  %v3418_v53 = vsel %vm1160_vm2, %v3409_v8, %v3411_v21 }
 0x558   : > { %v3665_v44 = vmul.f32 %v3643_v28, %v3610_v42  ;;  %v3473_v0 = vmul.f32 %v3451_v50, %v3418_v53  ;;  %5015 = vmatprep.subr.bf16.mxu1 %v5014_v13  ;;  %v3563_v42 = vrot.slane %v7439_v41, %v6528_v6 }
 0x559   : > { %5017 = vmatpush1.bf16.msra.mxu1 %v5016_v9 }
 0x55a   : > { %v3681_v58 = vrot.slane %v3665_v44, 4  ;;  %v3489_v34 = vrot.slane %v3473_v0, 4  ;;  %v3519_v46 = vpop.permute.xlu0 %3518  ;;  %v3327_v14 = vpop.permute.xlu1 %3326 }
 0x55b   : > { %v3526_v35 = vsel %vm1246_vm3, %v3517_v7, %v3519_v46  ;;  %v3334_v55 = vsel %vm1075_vm1, %v3325_v18, %v3327_v14 }
 0x55c   : > { %3697 = vst [vmem:[#allocation2 + $0x68] sm:$0xf0] %v3681_v58  ;;  %3505 = vst [vmem:[#allocation2 + $0x28] sm:$0xf0] %v3489_v34  ;;  %v3581_v12 = vmul.f32 %v3559_v51, %v3526_v35  ;;  %v3389_v8 = vmul.f32 %v3367_v16, %v3334_v55  ;;  %v3623_v51 = vrot.slane %v7393_v60, %v7897_v5 }
 0x55d   : > { %v4127_v56 = vld [vmem:[#allocation2 + $0x118] sm:$0xf]  ;;  %v3651_v16 = vrot.slane %v7393_v60, %v6451_v29  ;;  %v3459_v35 = vrot.slane %v7375_v22, %v6451_v29  ;;  %v3539_v55 = vrot.slane %v7439_v41, %v7897_v5  ;;  %v3347_v60 = vrot.slane %v7421_v33, %v7897_v5 }
 0x55e   : > { %3589 = vst [vmem:[#allocation2 + $0x68] sm:$0xf] %v3581_v12  ;;  %3397 = vst [vmem:[#allocation2 + $0x28] sm:$0xf] %v3389_v8  ;;  %4636 = vmatprep.subr.msk.mxu1 %vm1045_vm0, %v4127_v56  ;;  %v3413_v7 = vpop.permute.xlu0 %3412  ;;  %v3719_v45 = vpop.permute.xlu1 %3718 }
 0x55f   : > { %v3417_v17 = vsel %vm1160_vm2, %v3411_v21, %v3413_v7  ;;  %v3726_v18 = vsel %vm1426_vm6, %v7604_v30, %v3719_v45  ;;  %4637 = vmatpush1.msk.msra.mxu1 %vm1045_vm0, %v4126_v62 }
 0x560   : > { %v3474_v32 = vmul.f32 %v3455_v1, %v3417_v17  ;;  %v3780_v20 = vmul.f32 %v3755_v11, %v3726_v18  ;;  %4638 = vmatmul.mubr.msk.f32.vlgmr.msra.gmra.mrb[12].mxu1 %vm2967_vm10, %v7682_v54  ;;  %v3567_v1 = vrot.slane %v7439_v41, %v6451_v29  ;;  %v3375_v11 = vrot.slane %v7421_v33, %v6451_v29 }
 0x561   : > { %4436 = vmatprep.mubr.f32.mxu1 %v7886_v63  ;;  %v3947_v33 = vrot.slane %v7485_v39, %v6385_v10 }
 0x562   : > { %v3490_v28 = vrot.slane %v3474_v32, 4  ;;  %v3796_v50 = vrot.slane %v3780_v20, 4  ;;  %v3329_v25 = vpop.permute.xlu0 %3328  ;;  %v3605_v24 = vpop.permute.xlu1 %3604  ;;  %v3951_v32 = vrot.slane %v7485_v39, %v6525_v4 }
 0x563   : > { %v3333_v30 = vsel %vm1075_vm1, %v3327_v14, %v3329_v25  ;;  %v3609_v23 = vsel %vm1332_vm4, %v3603_v59, %v3605_v24  ;;  %v3431_v14 = vrot.slane %v7375_v22, %v7897_v5 }
 0x564   : > { %3506 = vst [vmem:[#allocation2 + $0x30] sm:$0xf0] %v3490_v28  ;;  %3812 = vst [vmem:[#allocation2 + $0xa0] sm:$0xf0] %v3796_v50  ;;  %v3390_v21 = vmul.f32 %v3371_v40, %v3333_v30  ;;  %v3666_v13 = vmul.f32 %v3647_v31, %v3609_v23 }
 0x566   : > { %3398 = vst [vmem:[#allocation2 + $0x30] sm:$0xf] %v3390_v21  ;;  %v3682_v53 = vrot.slane %v3666_v13, 4  ;;  %v7706_v9 = vpop.permute.xlu0 %3720  ;;  %v3521_v44 = vpop.permute.xlu1 %3520 }
 0x567   : > { %v3725_v0 = vsel %vm1426_vm6, %v3719_v45, %v7706_v9  ;;  %v3525_v59 = vsel %vm1246_vm3, %v3519_v46, %v3521_v44 }
 0x568   : > { %3698 = vst [vmem:[#allocation2 + $0x70] sm:$0xf0] %v3682_v53  ;;  %v3781_v58 = vmul.f32 %v3759_v47, %v3725_v0  ;;  %v3582_v34 = vmul.f32 %v3563_v42, %v3525_v59  ;;  %v3863_v0 = vrot.slane %v7506_v37, %v6385_v10  ;;  %v3867_v59 = vrot.slane %v7506_v37, %v6525_v4 }
 0x56a   : > { %v3797_v12 = vrot.slane %v3781_v58, 4  ;;  %3590 = vst [vmem:[#allocation2 + $0x70] sm:$0xf] %v3582_v34  ;;  %v3607_v46 = vpop.permute.xlu0 %3606  ;;  %v3415_v8 = vpop.permute.xlu1 %3414 }
 0x56b   : > { %v3608_v56 = vsel %vm1332_vm4, %v3605_v24, %v3607_v46  ;;  %v3615_v22 = vsel %vm1332_vm4, %v3607_v46, %v7385_v61  ;;  %v3416_v45 = vsel %vm1160_vm2, %v3413_v7, %v3415_v8  ;;  %v3423_v41 = vsel %vm1160_vm2, %v3415_v8, %v7369_v43  ;;  %v4112_v49 = vld [vmem:[#allocation2 + $0xa0] sm:$0xff] }
 0x56c   : > { %3813 = vst [vmem:[#allocation2 + $0xa8] sm:$0xf0] %v3797_v12  ;;  %v3660_v62 = vmul.f32 %v3623_v51, %v3615_v22  ;;  %v3667_v5 = vmul.f32 %v3651_v16, %v3608_v56  ;;  %v3468_v17 = vmul.f32 %v3431_v14, %v3423_v41  ;;  %v3475_v18 = vmul.f32 %v3459_v35, %v3416_v45  ;;  %v4117_v12 = vld [vmem:[#allocation2 + $0xc8] sm:$0xff]  ;;  %v4116_v45 = vld [vmem:[#allocation2 + $0xc0] sm:$0xff] }
 0x56d   : > { %v3955_v35 = vrot.slane %v7485_v39, %v6528_v6  ;;  %v4055_v22 = vrot.slane %v7463_v36, %v6385_v10 }
 0x56e   : > { %v3676_v20 = vrot.slane %v3660_v62, 4  ;;  %v3683_v61 = vrot.slane %v3667_v5, 4  ;;  %v3484_v40 = vrot.slane %v3468_v17, 4  ;;  %v3491_v31 = vrot.slane %v3475_v18, 4  ;;  %v3523_v7 = vpop.permute.xlu0 %3522  ;;  %v3331_v28 = vpop.permute.xlu1 %3330 }
 0x56f   : > { %v3524_v43 = vsel %vm1246_vm3, %v3521_v44, %v3523_v7  ;;  %v3531_v50 = vsel %vm1246_vm3, %v3523_v7, %v7431_v19  ;;  %v3332_v24 = vsel %vm1075_vm1, %v3329_v25, %v3331_v28  ;;  %v3339_v30 = vsel %vm1075_vm1, %v3331_v28, %v7403_v57 }
 0x570   : > { %3692 = vst [vmem:[#allocation2 + $0x40] sm:$0xf0] %v3676_v20  ;;  %3699 = vst [vmem:[#allocation2 + $0x78] sm:$0xf0] %v3683_v61  ;;  %v3576_v23 = vmul.f32 %v3539_v55, %v3531_v50  ;;  %v3583_v21 = vmul.f32 %v3567_v1, %v3524_v43  ;;  %v3384_v13 = vmul.f32 %v3347_v60, %v3339_v30  ;;  %v4108_v50 = vld [vmem:[#allocation2 + $0x80] sm:$0xff] }
 0x571   : > { %3500 = vst [vmem:[#allocation2] sm:$0xf0] %v3484_v40  ;;  %3507 = vst [vmem:[#allocation2 + $0x38] sm:$0xf0] %v3491_v31  ;;  %v3391_v47 = vmul.f32 %v3375_v11, %v3332_v24  ;;  %v3959_v55 = vrot.slane %v7485_v39, %v6451_v29  ;;  %v3763_v1 = vrot.slane %v7465_v52, %v6528_v6  ;;  %v4109_v11 = vld [vmem:[#allocation2 + $0x88] sm:$0xff] }
 0x572   : > { %3584 = vst [vmem:[#allocation2 + $0x40] sm:$0xf] %v3576_v23  ;;  %3591 = vst [vmem:[#allocation2 + $0x78] sm:$0xf] %v3583_v21  ;;  %v3911_v19 = vpop.permute.xlu0 %3910  ;;  %v3913_v42 = vpop.permute.xlu1 %3912  ;;  %v3767_v60 = vrot.slane %v7465_v52, %v6451_v29  ;;  %v3871_v39 = vrot.slane %v7506_v37, %v6528_v6  ;;  %v3875_v52 = vrot.slane %v7506_v37, %v6451_v29 }
 0x573   : > { %3392 = vst [vmem:[#allocation2] sm:$0xf] %v3384_v13  ;;  %3399 = vst [vmem:[#allocation2 + $0x38] sm:$0xf] %v3391_v47  ;;  %v3918_v25 = vsel %vm1598_vm7, %v7616_v3, %v3911_v19  ;;  %v3917_v57 = vsel %vm1598_vm7, %v3911_v19, %v3913_v42  ;;  %v4067_v20 = vrot.slane %v7463_v36, %v6451_v29  ;;  %v4098_v29 = vld [vmem:[#allocation2 + $0x30] sm:$0xff] }
 0x574   : > { %v3972_v53 = vmul.f32 %v3947_v33, %v3918_v25  ;;  %v3973_v44 = vmul.f32 %v3951_v32, %v3917_v57  ;;  %v5006_v33 = vpack.c.bf16 %v4117_v12, %v4109_v11  ;;  %v4106_v32 = vld [vmem:[#allocation2 + $0x70] sm:$0xff]  ;;  %v5008_v23 = vpack.c.bf16 %v4116_v45, %v4108_v50 }
 0x575   : > { %v5028_v30 = vpack.c.bf16 %v4106_v32, %v4098_v29 }
 0x576   : > { %v3988_v51 = vrot.slane %v3972_v53, 4  ;;  %v3989_v16 = vrot.slane %v3973_v44, 4  ;;  %v3829_v58 = vpop.permute.xlu0 %3828  ;;  %v3827_v34 = vpop.permute.xlu1 %3826 }
 0x577   : > { %v3833_v14 = vsel %vm1512_vm5, %v3827_v34, %v3829_v58  ;;  %v3834_v3 = vsel %vm1512_vm5, %v7628_v38, %v3827_v34 }
 0x578   : > { %4004 = vst [vmem:[#allocation2 + $0xe0] sm:$0xf0] %v3988_v51  ;;  %4005 = vst [vmem:[#allocation2 + $0xe8] sm:$0xf0] %v3989_v16  ;;  %v3888_v46 = vmul.f32 %v3863_v0, %v3834_v3  ;;  %v3889_v8 = vmul.f32 %v3867_v59, %v3833_v14  ;;  %v4097_v59 = vld [vmem:[#allocation2 + $0x28] sm:$0xff]  ;;  %v4096_v16 = vld [vmem:[#allocation2 + $0x20] sm:$0xff] }
 0x579   : > { %v4100_v38 = vld [vmem:[#allocation2 + $0x40] sm:$0xff]  ;;  %v4107_v18 = vld [vmem:[#allocation2 + $0x78] sm:$0xff]  ;;  %v4105_v51 = vld [vmem:[#allocation2 + $0x68] sm:$0xff] }
 0x57a   : > { %v4092_v56 = vld [vmem:[#allocation2] sm:$0xff]  ;;  %3896 = vst [vmem:[#allocation2 + $0xe0] sm:$0xf] %v3888_v46  ;;  %3897 = vst [vmem:[#allocation2 + $0xe8] sm:$0xf] %v3889_v8  ;;  %v3915_v41 = vpop.permute.xlu0 %3914  ;;  %v3723_v62 = vpop.permute.xlu1 %3722  ;;  %v4099_v17 = vld [vmem:[#allocation2 + $0x38] sm:$0xff] }
 0x57b   : > { %v5004_v5 = vpack.c.bf16 %v4100_v38, %v4092_v56  ;;  %v3916_v10 = vsel %vm1598_vm7, %v3913_v42, %v3915_v41  ;;  %v3923_v61 = vsel %vm1598_vm7, %v3915_v41, %v7367_v27  ;;  %v3724_v40 = vsel %vm1426_vm6, %v7706_v9, %v3723_v62  ;;  %v4124_v3 = vld [vmem:[#allocation2 + $0x100] sm:$0xf] }
 0x57c   : > { %v3731_v31 = vsel %vm1426_vm6, %v3723_v62, %v7455_v48  ;;  %v3974_v7 = vmul.f32 %v3955_v35, %v3916_v10  ;;  %v3975_v37 = vmul.f32 %v3959_v55, %v3923_v61  ;;  %v3782_v28 = vmul.f32 %v3763_v1, %v3724_v40  ;;  %v4104_v55 = vld [vmem:[#allocation2 + $0x60] sm:$0xff] }
 0x57d   : > { %v3783_v43 = vmul.f32 %v3767_v60, %v3731_v31  ;;  %5005 = vmatpush1.bf16.msra.mxu0 %v5004_v5  ;;  %v5026_v24 = vpack.c.bf16 %v4107_v18, %v4099_v17  ;;  %v4059_v27 = vrot.slane %v7463_v36, %v6525_v4  ;;  %v4063_v4 = vrot.slane %v7463_v36, %v6528_v6  ;;  %v4113_v60 = vld [vmem:[#allocation2 + $0xa8] sm:$0xff] }
 0x57e   : > { %5007 = vmatprep.subr.bf16.mxu0 %v5006_v33  ;;  %v3990_v21 = vrot.slane %v3974_v7, 4  ;;  %v3991_v9 = vrot.slane %v3975_v37, 4  ;;  %v3798_v13 = vrot.slane %v3782_v28, 4  ;;  %v4019_v19 = vpop.permute.xlu0 %4018  ;;  %v3831_v48 = vpop.permute.xlu1 %3830  ;;  %v5018_v35 = vpack.c.bf16 %v4105_v51, %v4097_v59 }
 0x57f   : > { %v3799_v47 = vrot.slane %v3783_v43, 4  ;;  %5027 = vmatprep.subr.bf16.mxu1 %v5026_v24  ;;  %v4026_v42 = vsel %vm1684_vm8, %v7650_v15, %v4019_v19  ;;  %v3832_v25 = vsel %vm1512_vm5, %v3829_v58, %v3831_v48  ;;  %v3839_v57 = vsel %vm1512_vm5, %v3831_v48, %v7475_v26  ;;  %v4125_v15 = vld [vmem:[#allocation2 + $0x108] sm:$0xf] }
 0x580   : > { %4006 = vst [vmem:[#allocation2 + $0xf0] sm:$0xf0] %v3990_v21  ;;  %4007 = vst [vmem:[#allocation2 + $0xf8] sm:$0xf0] %v3991_v9  ;;  %5029 = vmatpush1.bf16.msra.mxu1 %v5028_v30  ;;  %v4080_v53 = vmul.f32 %v4055_v22, %v4026_v42  ;;  %v3890_v44 = vmul.f32 %v3871_v39, %v3832_v25  ;;  %v3891_v0 = vmul.f32 %v3875_v52, %v3839_v57 }
 0x581   : > { %3814 = vst [vmem:[#allocation2 + $0xb0] sm:$0xf0] %v3798_v13  ;;  %3815 = vst [vmem:[#allocation2 + $0xb8] sm:$0xf0] %v3799_v47  ;;  %5009 = vmatpush1.bf16.msra.mxu0 %v5008_v23  ;;  %v4121_v36 = vld [vmem:[#allocation2 + $0xe8] sm:$0xff]  ;;  %v5020_v1 = vpack.c.bf16 %v4104_v55, %v4096_v16  ;;  %v4120_v11 = vld [vmem:[#allocation2 + $0xe0] sm:$0xff] }
 0x582   : > { %4633 = vmatprep.subr.msk.mxu0 %vm1045_vm0, %v4125_v15  ;;  %4088 = vst [vmem:[#allocation2 + $0x120] sm:$0xf] %v4080_v53  ;;  %3898 = vst [vmem:[#allocation2 + $0xf0] sm:$0xf] %v3890_v44  ;;  %v4023_v26 = vpop.permute.xlu0 %4022  ;;  %v4021_v6 = vpop.permute.xlu1 %4020  ;;  %v5024_v56 = vpack.c.bf16 %v4120_v11, %v4112_v49 }
 0x583   : > { %3899 = vst [vmem:[#allocation2 + $0xf8] sm:$0xf] %v3891_v0  ;;  %v4031_v58 = vsel %vm1684_vm8, %v4023_v26, %v7383_v2  ;;  %v4024_v34 = vsel %vm1684_vm8, %v4021_v6, %v4023_v26  ;;  %v4025_v14 = vsel %vm1684_vm8, %v4019_v19, %v4021_v6  ;;  %v5022_v2 = vpack.c.bf16 %v4121_v36, %v4113_v60 }
 0x584   : > { %v4083_v12 = vmul.f32 %v4067_v20, %v4031_v58  ;;  %v4081_v46 = vmul.f32 %v4059_v27, %v4025_v14  ;;  %v4082_v8 = vmul.f32 %v4063_v4, %v4024_v34 }
 0x585   : > { %4634 = vmatpush1.msk.msra.mxu0 %vm1045_vm0, %v4124_v3 }
 0x586   : > { %4635 = vmatmul.mubr.msk.f32.vlgmr.msra.gmra.mrb[12].mxu0 %vm2967_vm10, %v7682_v54  ;;  %5019 = vmatprep.subr.bf16.mxu0 %v5018_v35  ;;  %4091 = vst [vmem:[#allocation2 + $0x138] sm:$0xf] %v4083_v12  ;;  %4089 = vst [vmem:[#allocation2 + $0x128] sm:$0xf] %v4081_v46 }
 0x587   : > { %4090 = vst [vmem:[#allocation2 + $0x130] sm:$0xf] %v4082_v8  ;;  %5021 = vmatpush1.bf16.msra.mxu0 %v5020_v1  ;;  %4365 = vmatprep.mubr.f32.mxu0 %v7886_v63 }
 0x588   : > { %5023 = vmatprep.subr.bf16.mxu0 %v5022_v2  ;;  %v4115_v38 = vld [vmem:[#allocation2 + $0xb8] sm:$0xff]  ;;  %v4114_v39 = vld [vmem:[#allocation2 + $0xb0] sm:$0xff] }
 0x589   : > { %v4122_v45 = vld [vmem:[#allocation2 + $0xf0] sm:$0xff]  ;;  %v4128_v18 = vld [vmem:[#allocation2 + $0x120] sm:$0xf] }
 0x58a   : > { %v4123_v22 = vld [vmem:[#allocation2 + $0xf8] sm:$0xff]  ;;  %v5032_v62 = vpack.c.bf16 %v4122_v45, %v4114_v39 }
 0x58b   : > { %5025 = vmatpush1.bf16.msra.mxu0 %v5024_v56  ;;  %v5030_v41 = vpack.c.bf16 %v4123_v22, %v4115_v38 }
 0x58d   : > { %5031 = vmatprep.subr.bf16.mxu1 %v5030_v41  ;;  %v4129_v5 = vld [vmem:[#allocation2 + $0x128] sm:$0xf]  ;;  %v4131_v17 = vld [vmem:[#allocation2 + $0x138] sm:$0xf] }
 0x58e   : > { %5033 = vmatpush1.bf16.msra.mxu1 %v5032_v62  ;;  %4639 = vmatprep.subr.msk.mxu0 %vm1045_vm0, %v4129_v5  ;;  %v4130_v63 = vld [vmem:[#allocation2 + $0x130] sm:$0xf] }
 0x58f   : > { %4642 = vmatprep.subr.msk.mxu1 %vm1045_vm0, %v4131_v17  ;;  %4640 = vmatpush1.msk.msra.mxu0 %vm1045_vm0, %v4128_v18 }
 0x590   : > { %4641 = vmatmul.mubr.msk.f32.vlgmr.msra.gmra.mrb[14].mxu0 %vm2967_vm10, %v7682_v54 }
 0x592   : > { %4643 = vmatpush1.msk.msra.mxu1 %vm1045_vm0, %v4130_v63 }
 0x593   : > { %4644 = vmatmul.mubr.msk.f32.vlgmr.msra.gmra.mrb[14].mxu1 %vm2967_vm10, %v7682_v54  ;;  %v4446_v33 = vpop.permute.xlu1 %4445  ;;  %v4459_v10 = vpop.permute.xlu0 %4458 }
 0x633   : > { %v4296_v32 = vpop.f32.mrb[12].mxu1 }
 0x634   : > { %v4450_v52 = vmul.f32 %v4446_v33, %v4296_v32  ;;  %v4298_v20 = vpop.f32.mrb[13].mxu1 }
 0x635   : > { %v4451_v61 = vmul.f32 %v4446_v33, %v4298_v20 }
 0x636   : > { %v4463_v40 = vadd.f32 %v4459_v10, %v4450_v52 }
 0x637   : > { %v4464_v31 = vadd.f32 %v4459_v10, %v4451_v61 }
 0x638   : > { %v4471_v7 = vmax.f32 %v4463_v40, 0.0 }
 0x639   : > { %v4472_v37 = vmax.f32 %v4464_v31, 0.0 }
 0x63b   : > { %v4486_v28 = vcombine.low %v4471_v7, %v4472_v37 }
 0x63d   : > { %4494 = vst [vmem:[%s7831_s19 + $0x8] sm:$0xff] %v4486_v28 }
 0x659   : > { %v4225_v54 = vpop.f32.mrb[12].mxu0 }
 0x65a   : > { %v4448_v43 = vmul.f32 %v4446_v33, %v4225_v54  ;;  %v4227_v29 = vpop.f32.mrb[13].mxu0 }
 0x65b   : > { %v4449_v50 = vmul.f32 %v4446_v33, %v4227_v29 }
 0x65c   : > { %v4461_v24 = vadd.f32 %v4459_v10, %v4448_v43 }
 0x65d   : > { %v4462_v30 = vadd.f32 %v4459_v10, %v4449_v50 }
 0x65e   : > { %v4469_v23 = vmax.f32 %v4461_v24, 0.0 }
 0x65f   : > { %v4470_v27 = vmax.f32 %v4462_v30, 0.0 }
 0x661   : > { %v4485_v21 = vcombine.low %v4469_v23, %v4470_v27 }
 0x663   : > { %4493 = vst [vmem:[%s7831_s19] sm:$0xff] %v4485_v21  ;;  %v4367_v9 = vpop.f32.mrb[14].mxu0 }
 0x664   : > { %v4452_v13 = vmul.f32 %v4446_v33, %v4367_v9  ;;  %v4369_v47 = vpop.f32.mrb[15].mxu0 }
 0x665   : > { %v4453_v19 = vmul.f32 %v4446_v33, %v4369_v47 }
 0x666   : > { %v4438_v48 = vpop.f32.mrb[14].mxu1  ;;  %v4465_v42 = vadd.f32 %v4459_v10, %v4452_v13 }
 0x667   : > { %v4454_v25 = vmul.f32 %v4446_v33, %v4438_v48  ;;  %v4440_v57 = vpop.f32.mrb[15].mxu1  ;;  %v4466_v4 = vadd.f32 %v4459_v10, %v4453_v19 }
 0x668   : > { %v4455_v53 = vmul.f32 %v4446_v33, %v4440_v57  ;;  %v4473_v44 = vmax.f32 %v4465_v42, 0.0 }
 0x669   : > { %v4467_v0 = vadd.f32 %v4459_v10, %v4454_v25  ;;  %v4474_v15 = vmax.f32 %v4466_v4, 0.0 }
 0x66a   : > { %v4468_v59 = vadd.f32 %v4459_v10, %v4455_v53 }
 0x66b   : > { %v4475_v51 = vmax.f32 %v4467_v0, 0.0  ;;  %v4487_v16 = vcombine.low %v4473_v44, %v4474_v15 }
 0x66c   : > { %v4476_v26 = vmax.f32 %v4468_v59, 0.0 }
 0x66d   : > { %4495 = vst [vmem:[%s7831_s19 + $0x10] sm:$0xff] %v4487_v16 }
 0x66e   : > { %v4488_v6 = vcombine.low %v4475_v51, %v4476_v26 }
 0x670   : > { %4496 = vst [vmem:[%s7831_s19 + $0x18] sm:$0xff] %v4488_v6 }
 0x671 PF: > { %s23_s25 = sadd.s32 1, %s5065_s25  }
 0x672   : > { %p20_p4 = scmp.ge.s32.totalorder %s23_s25, 4  }
 0x674   :  { %22 = sbr.rel (!%p20_p4) target bundleno = 1 (0x1), region = 112 }

</bundles_post_ra>
